<compile_context>
chip_gen: v5e
topology: v5e:2x2
jax: 0.10.0
libtpu: 0.0.40
codegen_flags: <defaults>
</compile_context>

<pallas_src>
import functools

import jax
import jax.numpy as jnp
from jax import lax
from jax.experimental import pallas as pl
from jax.experimental.pallas import tpu as pltpu

LANES = 128


def _sigmoid(x):
    # sigmoid(x) = 0.5 * (1 + tanh(x/2))  -> a single EUP op per gate
    # (avoids an exp + reciprocal pair if the logistic lowering uses two).
    return 0.5 * jnp.tanh(0.5 * x) + 0.5


def _lstm_recurrence_kernel(pre_ref,    # (S, 4H, BN)  stream dtype (bf16/f32): input-side gate pre-activations
                            whh_t_ref,  # (H, 4H)      matmul dtype: W_hh^T, lane-dense, gate order i,f,g,o
                            wpred_ref,  # (H, 1)       f32: prediction weight column
                            pred_ref):  # (1, BN)      f32: fused prediction head output (no bias)
    S, _, BN = pre_ref.shape
    H = whh_t_ref.shape[0]
    n_chunks = BN // LANES
    mm_dtype = whh_t_ref.dtype

    # Loop-invariant weight loads (read once per grid step).
    whh_t = whh_t_ref[...]                                   # (H, 4H)
    wpred = wpred_ref[...]                                   # (H, 1)

    def gate_math(gates, c):
        # Gate boundaries land on the sublane axis at multiples of 8 (H=32),
        # so these slices select whole vregs (no cross-lane shuffles).
        i_g = _sigmoid(gates[0 * H:1 * H, :])
        f_g = _sigmoid(gates[1 * H:2 * H, :])
        g_g = jnp.tanh(gates[2 * H:3 * H, :])
        o_g = _sigmoid(gates[3 * H:4 * H, :])
        c_new = f_g * c + i_g * g_g
        h_new = o_g * jnp.tanh(c_new)
        return h_new, c_new

    # ---- t = 0 peeled: h0 = c0 = 0  =>  gates = pre[0], c1 = i*g (no matmul,
    #      no f*c), removing 1/S of the serial MXU chain for free.
    hs, cs = [], []
    for k in range(n_chunks):
        g0 = pre_ref[0, :, k * LANES:(k + 1) * LANES].astype(jnp.float32)
        i_g = _sigmoid(g0[0 * H:1 * H, :])
        g_g = jnp.tanh(g0[2 * H:3 * H, :])
        o_g = _sigmoid(g0[3 * H:4 * H, :])
        c0 = i_g * g_g
        h0 = o_g * jnp.tanh(c0)
        hs.append(h0)
        cs.append(c0)

    def step(t, carry):
        hs, cs = carry
        new_hs, new_cs = [], []
        # Independent 128-lane batch chunks in flight: chunk A's MXU matmul
        # overlaps chunk B's EUP/VPU gate math (and vice versa).
        for k in range(n_chunks):
            rec = lax.dot_general(                            # (4H, LANES) f32
                whh_t, hs[k].astype(mm_dtype),
                dimension_numbers=(((0,), (0,)), ((), ())),
                preferred_element_type=jnp.float32)
            pre_t = pre_ref[t, :, k * LANES:(k + 1) * LANES].astype(jnp.float32)
            h_new, c_new = gate_math(pre_t + rec, cs[k])
            new_hs.append(h_new)
            new_cs.append(c_new)
        return tuple(new_hs), tuple(new_cs)

    # S is small and static: fully unroll so the scheduler can interleave
    # MXU / EUP / VPU work across the two chunks and adjacent timesteps.
    # (If bundle dumps ever show vreg spills, drop unroll to 2-4 rather than
    #  shrinking the 2-chunk interleave.)
    hs, cs = lax.fori_loop(1, S, step, (tuple(hs), tuple(cs)), unroll=True)

    # Fused prediction head: pred = w_pred . h_fin (bias added in the wrapper).
    # Writes a (1, BN) lane-dense result instead of the (H, BN) hidden state.
    for k in range(n_chunks):
        pred_ref[:, k * LANES:(k + 1) * LANES] = jnp.sum(
            wpred * hs[k], axis=0, keepdims=True)


def init_params(key, hidden_size, in_features=4):
    H = hidden_size
    ks = jax.random.split(key, 8)
    bound_lin = 1.0 / jnp.sqrt(in_features)
    bound_lstm = 1.0 / jnp.sqrt(H)
    u = lambda k, shape, b: jax.random.uniform(k, shape, jnp.float32, -b, b)
    return {
        "w_lin": u(ks[0], (H, in_features), bound_lin),   # PyTorch layout (out,in)
        "b_lin": u(ks[1], (H,), bound_lin),
        "w_ih": u(ks[2], (4 * H, H), bound_lstm),          # gate order i,f,g,o
        "w_hh": u(ks[3], (4 * H, H), bound_lstm),
        "b_ih": u(ks[4], (4 * H,), bound_lstm),
        "b_hh": u(ks[5], (4 * H,), bound_lstm),
        "w_pred": u(ks[6], (1, H), bound_lstm),
        "b_pred": u(ks[7], (1,), bound_lstm),
    }


@functools.partial(jax.jit,
                   static_argnames=("block_n", "stream_dtype", "matmul_dtype"))
def lstm_forward(x, mask, params, block_n=256,
                 stream_dtype=jnp.bfloat16, matmul_dtype=jnp.bfloat16):
    # x: (B, T, S, 4) float32.  `mask` is intentionally ignored: the PyTorch
    # forward never uses it.
    del mask
    B, T, S, F = x.shape
    H = params["b_lin"].shape[0]
    N = B * (T - 1)

    BN = block_n
    assert BN % LANES == 0
    Np = ((N + BN - 1) // BN) * BN

    # Pad once up front on the cheap (N, S, 4) input, so no later pad/transpose
    # pass touches the large (S, 4H, N) pre-activation array.  Padded rows just
    # compute discarded (bounded) values.
    xr = x[:, :-1, :, :].reshape(N, S, F)
    xr = jnp.pad(xr, ((0, Np - N), (0, 0), (0, 0)))

    # ---- Hoisted input path (outside the serial recurrence), produced
    #      directly in the kernel layout:
    #      pre_t[s, g, n] = (tanh(x W_l^T + b_l) W_ih^T + b_ih + b_hh)[n, s, g]
    emb = jnp.tanh(xr @ params["w_lin"].T + params["b_lin"])            # (Np, S, H)
    pre_t = jnp.einsum("gh,nsh->sgn", params["w_ih"], emb)              # (S, 4H, Np)
    pre_t = (pre_t + (params["b_ih"] + params["b_hh"])[None, :, None]
             ).astype(stream_dtype)

    # Lane-dense recurrent weight (H, 4H) and prediction weight column (H, 1).
    whh_t = params["w_hh"].T.astype(matmul_dtype)
    wpred = params["w_pred"].T.astype(jnp.float32)

    grid = (Np // BN,)
    pred = pl.pallas_call(
        _lstm_recurrence_kernel,
        out_shape=jax.ShapeDtypeStruct((1, Np), jnp.float32),
        grid_spec=pltpu.PrefetchScalarGridSpec(
            num_scalar_prefetch=0,
            grid=grid,
            in_specs=[
                pl.BlockSpec((S, 4 * H, BN), lambda n: (0, 0, n)),  # streamed, lane-dense
                pl.BlockSpec((H, 4 * H), lambda n: (0, 0)),         # constant weight
                pl.BlockSpec((H, 1), lambda n: (0, 0)),             # constant weight
            ],
            out_specs=pl.BlockSpec((1, BN), lambda n: (0, n)),       # lane-dense output
        ),
        compiler_params=pltpu.CompilerParams(
            dimension_semantics=("parallel",)),
    )(pre_t, whh_t, wpred)                                           # (1, Np)

    # Prediction bias + reshape (tiny, fuses into one XLA op).
    return (pred[0, :N] + params["b_pred"][0]).reshape(B, T - 1)


def lstm_reference(x, mask, params):
    # Pure-JAX f32 reference mirroring the PyTorch forward.
    del mask
    B, T, S, F = x.shape
    H = params["b_lin"].shape[0]
    N = B * (T - 1)
    out = x[:, :-1, :, :].reshape(N, S, F)
    out = jnp.tanh(out @ params["w_lin"].T + params["b_lin"])     # (N, S, H)
    xs = jnp.transpose(out, (1, 0, 2))                            # (S, N, H)

    def step(carry, x_t):
        h, c = carry
        gates = (x_t @ params["w_ih"].T + params["b_ih"]
                 + h @ params["w_hh"].T + params["b_hh"])
        i, f, g, o = jnp.split(gates, 4, axis=-1)
        i = jax.nn.sigmoid(i)
        f = jax.nn.sigmoid(f)
        g = jnp.tanh(g)
        o = jax.nn.sigmoid(o)
        c = f * c + i * g
        h = o * jnp.tanh(c)
        return (h, c), None

    init = (jnp.zeros((N, H), jnp.float32), jnp.zeros((N, H), jnp.float32))
    (h, _), _ = lax.scan(step, init, xs)
    pred = h @ params["w_pred"].T + params["b_pred"]              # (N, 1)
    return pred.reshape(B, T - 1)


if __name__ == "__main__":
    key = jax.random.PRNGKey(0)
    k_x, k_p = jax.random.split(key)

    B, T, S, F = 2, 5, 8, 4
    hidden_size = 32

    x = jax.random.normal(k_x, (B, T, S, F), jnp.float32)
    mask = jnp.ones((B, T), jnp.float32)     # unused, as in the PyTorch forward
    params = init_params(k_p, hidden_size, F)

    ref = lstm_reference(x, mask, params)

    # Tight check of the kernel structure with an all-f32 path.
    out_f32 = jax.block_until_ready(
        lstm_forward(x, mask, params,
                     stream_dtype=jnp.float32, matmul_dtype=jnp.float32))
    assert out_f32.shape == (B, T - 1), out_f32.shape
    assert jnp.allclose(out_f32, ref, atol=1e-4, rtol=1e-4), \
        f"f32 max abs err {jnp.max(jnp.abs(out_f32 - ref))}"

    # Default fast path: bf16 pre-gate stream + bf16 recurrent matmul inputs
    # (f32 accumulation / f32 gate math) -> looser tolerance vs f32 reference.
    out = jax.block_until_ready(lstm_forward(x, mask, params))
    assert out.shape == (B, T - 1), out.shape
    assert jnp.allclose(out, ref, atol=5e-2, rtol=5e-2), \
        f"bf16 max abs err {jnp.max(jnp.abs(out - ref))}"

    print("KERNEL_OK")
</pallas_src>

<mosaic_0001>
module attributes {stable_mosaic.version = 11 : i64} {
  func.func @_lstm_recurrence_kernel(%arg0: i32, %arg1: memref<8x128x256xf32, #tpu.memory_space<vmem>>, %arg2: memref<32x128xf32, #tpu.memory_space<vmem>>, %arg3: memref<32x1xf32, #tpu.memory_space<vmem>>, %arg4: memref<1x256xf32, #tpu.memory_space<vmem>>) attributes {dimension_semantics = [#tpu.dimension_semantics<parallel>], iteration_bounds = array<i64: 1>, scalar_prefetch = 0 : i64, scratch_operands = 0 : i64, tpu.core_type = #tpu.core_type<tc>, window_params = [{transform_indices = @transform_0, window_bounds = array<i64: 8, 128, 256>}, {pipeline_mode = #tpu.pipeline_mode<synchronous>, transform_indices = @transform_1, window_bounds = array<i64: 32, 128>}, {pipeline_mode = #tpu.pipeline_mode<synchronous>, transform_indices = @transform_2, window_bounds = array<i64: 32, 1>}, {transform_indices = @transform_3, window_bounds = array<i64: 1, 256>}]} {
    %c0 = arith.constant 0 : index
    %c0_0 = arith.constant 0 : index
    %0 = vector.load %arg2[%c0, %c0_0] : memref<32x128xf32, #tpu.memory_space<vmem>>, vector<32x128xf32>
    %c0_1 = arith.constant 0 : index
    %c0_2 = arith.constant 0 : index
    %1 = vector.load %arg3[%c0_1, %c0_2] : memref<32x1xf32, #tpu.memory_space<vmem>>, vector<32x1xf32>
    %c0_3 = arith.constant 0 : index
    %c0_4 = arith.constant 0 : index
    %c0_5 = arith.constant 0 : index
    %2 = vector.load %arg1[%c0_3, %c0_4, %c0_5] : memref<8x128x256xf32, #tpu.memory_space<vmem>>, vector<1x128x128xf32>
    %3 = vector.shape_cast %2 : vector<1x128x128xf32> to vector<128x128xf32>
    %4 = vector.extract_strided_slice %3 {offsets = [0, 0], sizes = [32, 128], strides = [1, 1]} : vector<128x128xf32> to vector<32x128xf32>
    %cst = arith.constant 5.000000e-01 : f32
    %5 = vector.broadcast %cst : f32 to vector<32x128xf32>
    %6 = arith.mulf %5, %4 : vector<32x128xf32>
    %7 = math.tanh %6 : vector<32x128xf32>
    %cst_6 = arith.constant 5.000000e-01 : f32
    %8 = vector.broadcast %cst_6 : f32 to vector<32x128xf32>
    %9 = arith.mulf %8, %7 : vector<32x128xf32>
    %cst_7 = arith.constant 5.000000e-01 : f32
    %10 = vector.broadcast %cst_7 : f32 to vector<32x128xf32>
    %11 = arith.addf %9, %10 : vector<32x128xf32>
    %12 = vector.extract_strided_slice %3 {offsets = [64, 0], sizes = [32, 128], strides = [1, 1]} : vector<128x128xf32> to vector<32x128xf32>
    %13 = math.tanh %12 : vector<32x128xf32>
    %14 = vector.extract_strided_slice %3 {offsets = [96, 0], sizes = [32, 128], strides = [1, 1]} : vector<128x128xf32> to vector<32x128xf32>
    %cst_8 = arith.constant 5.000000e-01 : f32
    %15 = vector.broadcast %cst_8 : f32 to vector<32x128xf32>
    %16 = arith.mulf %15, %14 : vector<32x128xf32>
    %17 = math.tanh %16 : vector<32x128xf32>
    %cst_9 = arith.constant 5.000000e-01 : f32
    %18 = vector.broadcast %cst_9 : f32 to vector<32x128xf32>
    %19 = arith.mulf %18, %17 : vector<32x128xf32>
    %cst_10 = arith.constant 5.000000e-01 : f32
    %20 = vector.broadcast %cst_10 : f32 to vector<32x128xf32>
    %21 = arith.addf %19, %20 : vector<32x128xf32>
    %22 = arith.mulf %11, %13 : vector<32x128xf32>
    %23 = math.tanh %22 : vector<32x128xf32>
    %24 = arith.mulf %21, %23 : vector<32x128xf32>
    %c0_11 = arith.constant 0 : index
    %c0_12 = arith.constant 0 : index
    %c128 = arith.constant 128 : index
    %25 = vector.load %arg1[%c0_11, %c0_12, %c128] : memref<8x128x256xf32, #tpu.memory_space<vmem>>, vector<1x128x128xf32>
    %26 = vector.shape_cast %25 : vector<1x128x128xf32> to vector<128x128xf32>
    %27 = vector.extract_strided_slice %26 {offsets = [0, 0], sizes = [32, 128], strides = [1, 1]} : vector<128x128xf32> to vector<32x128xf32>
    %cst_13 = arith.constant 5.000000e-01 : f32
    %28 = vector.broadcast %cst_13 : f32 to vector<32x128xf32>
    %29 = arith.mulf %28, %27 : vector<32x128xf32>
    %30 = math.tanh %29 : vector<32x128xf32>
    %cst_14 = arith.constant 5.000000e-01 : f32
    %31 = vector.broadcast %cst_14 : f32 to vector<32x128xf32>
    %32 = arith.mulf %31, %30 : vector<32x128xf32>
    %cst_15 = arith.constant 5.000000e-01 : f32
    %33 = vector.broadcast %cst_15 : f32 to vector<32x128xf32>
    %34 = arith.addf %32, %33 : vector<32x128xf32>
    %35 = vector.extract_strided_slice %26 {offsets = [64, 0], sizes = [32, 128], strides = [1, 1]} : vector<128x128xf32> to vector<32x128xf32>
    %36 = math.tanh %35 : vector<32x128xf32>
    %37 = vector.extract_strided_slice %26 {offsets = [96, 0], sizes = [32, 128], strides = [1, 1]} : vector<128x128xf32> to vector<32x128xf32>
    %cst_16 = arith.constant 5.000000e-01 : f32
    %38 = vector.broadcast %cst_16 : f32 to vector<32x128xf32>
    %39 = arith.mulf %38, %37 : vector<32x128xf32>
    %40 = math.tanh %39 : vector<32x128xf32>
    %cst_17 = arith.constant 5.000000e-01 : f32
    %41 = vector.broadcast %cst_17 : f32 to vector<32x128xf32>
    %42 = arith.mulf %41, %40 : vector<32x128xf32>
    %cst_18 = arith.constant 5.000000e-01 : f32
    %43 = vector.broadcast %cst_18 : f32 to vector<32x128xf32>
    %44 = arith.addf %42, %43 : vector<32x128xf32>
    %45 = arith.mulf %34, %36 : vector<32x128xf32>
    %46 = math.tanh %45 : vector<32x128xf32>
    %47 = arith.mulf %44, %46 : vector<32x128xf32>
    %c1_i32 = arith.constant 1 : i32
    %cst_19 = arith.constant dense<0.000000e+00> : vector<128x128xf32>
    %48 = tpu.matmul %0, %24, %cst_19 {dimension_numbers = #tpu.dot_dimension_numbers<[0], [0], [1], [1], [0, 1, 1, 1], [], []>} : vector<32x128xf32>, vector<32x128xf32>, vector<128x128xf32> -> vector<128x128xf32>
    %49 = arith.index_cast %c1_i32 : i32 to index
    %c0_20 = arith.constant 0 : index
    %c0_21 = arith.constant 0 : index
    %50 = vector.load %arg1[%49, %c0_20, %c0_21] : memref<8x128x256xf32, #tpu.memory_space<vmem>>, vector<1x128x128xf32>
    %51 = vector.shape_cast %50 : vector<1x128x128xf32> to vector<128x128xf32>
    %52 = arith.addf %51, %48 : vector<128x128xf32>
    %53 = vector.extract_strided_slice %52 {offsets = [0, 0], sizes = [32, 128], strides = [1, 1]} : vector<128x128xf32> to vector<32x128xf32>
    %cst_22 = arith.constant 5.000000e-01 : f32
    %54 = vector.broadcast %cst_22 : f32 to vector<32x128xf32>
    %55 = arith.mulf %54, %53 : vector<32x128xf32>
    %56 = math.tanh %55 : vector<32x128xf32>
    %cst_23 = arith.constant 5.000000e-01 : f32
    %57 = vector.broadcast %cst_23 : f32 to vector<32x128xf32>
    %58 = arith.mulf %57, %56 : vector<32x128xf32>
    %cst_24 = arith.constant 5.000000e-01 : f32
    %59 = vector.broadcast %cst_24 : f32 to vector<32x128xf32>
    %60 = arith.addf %58, %59 : vector<32x128xf32>
    %61 = vector.extract_strided_slice %52 {offsets = [32, 0], sizes = [32, 128], strides = [1, 1]} : vector<128x128xf32> to vector<32x128xf32>
    %cst_25 = arith.constant 5.000000e-01 : f32
    %62 = vector.broadcast %cst_25 : f32 to vector<32x128xf32>
    %63 = arith.mulf %62, %61 : vector<32x128xf32>
    %64 = math.tanh %63 : vector<32x128xf32>
    %cst_26 = arith.constant 5.000000e-01 : f32
    %65 = vector.broadcast %cst_26 : f32 to vector<32x128xf32>
    %66 = arith.mulf %65, %64 : vector<32x128xf32>
    %cst_27 = arith.constant 5.000000e-01 : f32
    %67 = vector.broadcast %cst_27 : f32 to vector<32x128xf32>
    %68 = arith.addf %66, %67 : vector<32x128xf32>
    %69 = vector.extract_strided_slice %52 {offsets = [64, 0], sizes = [32, 128], strides = [1, 1]} : vector<128x128xf32> to vector<32x128xf32>
    %70 = math.tanh %69 : vector<32x128xf32>
    %71 = vector.extract_strided_slice %52 {offsets = [96, 0], sizes = [32, 128], strides = [1, 1]} : vector<128x128xf32> to vector<32x128xf32>
    %cst_28 = arith.constant 5.000000e-01 : f32
    %72 = vector.broadcast %cst_28 : f32 to vector<32x128xf32>
    %73 = arith.mulf %72, %71 : vector<32x128xf32>
    %74 = math.tanh %73 : vector<32x128xf32>
    %cst_29 = arith.constant 5.000000e-01 : f32
    %75 = vector.broadcast %cst_29 : f32 to vector<32x128xf32>
    %76 = arith.mulf %75, %74 : vector<32x128xf32>
    %cst_30 = arith.constant 5.000000e-01 : f32
    %77 = vector.broadcast %cst_30 : f32 to vector<32x128xf32>
    %78 = arith.addf %76, %77 : vector<32x128xf32>
    %79 = arith.mulf %68, %22 : vector<32x128xf32>
    %80 = arith.mulf %60, %70 : vector<32x128xf32>
    %81 = arith.addf %79, %80 : vector<32x128xf32>
    %82 = math.tanh %81 : vector<32x128xf32>
    %83 = arith.mulf %78, %82 : vector<32x128xf32>
    %cst_31 = arith.constant dense<0.000000e+00> : vector<128x128xf32>
    %84 = tpu.matmul %0, %47, %cst_31 {dimension_numbers = #tpu.dot_dimension_numbers<[0], [0], [1], [1], [0, 1, 1, 1], [], []>} : vector<32x128xf32>, vector<32x128xf32>, vector<128x128xf32> -> vector<128x128xf32>
    %85 = arith.index_cast %c1_i32 : i32 to index
    %c0_32 = arith.constant 0 : index
    %c128_33 = arith.constant 128 : index
    %86 = vector.load %arg1[%85, %c0_32, %c128_33] : memref<8x128x256xf32, #tpu.memory_space<vmem>>, vector<1x128x128xf32>
    %87 = vector.shape_cast %86 : vector<1x128x128xf32> to vector<128x128xf32>
    %88 = arith.addf %87, %84 : vector<128x128xf32>
    %89 = vector.extract_strided_slice %88 {offsets = [0, 0], sizes = [32, 128], strides = [1, 1]} : vector<128x128xf32> to vector<32x128xf32>
    %cst_34 = arith.constant 5.000000e-01 : f32
    %90 = vector.broadcast %cst_34 : f32 to vector<32x128xf32>
    %91 = arith.mulf %90, %89 : vector<32x128xf32>
    %92 = math.tanh %91 : vector<32x128xf32>
    %cst_35 = arith.constant 5.000000e-01 : f32
    %93 = vector.broadcast %cst_35 : f32 to vector<32x128xf32>
    %94 = arith.mulf %93, %92 : vector<32x128xf32>
    %cst_36 = arith.constant 5.000000e-01 : f32
    %95 = vector.broadcast %cst_36 : f32 to vector<32x128xf32>
    %96 = arith.addf %94, %95 : vector<32x128xf32>
    %97 = vector.extract_strided_slice %88 {offsets = [32, 0], sizes = [32, 128], strides = [1, 1]} : vector<128x128xf32> to vector<32x128xf32>
    %cst_37 = arith.constant 5.000000e-01 : f32
    %98 = vector.broadcast %cst_37 : f32 to vector<32x128xf32>
    %99 = arith.mulf %98, %97 : vector<32x128xf32>
    %100 = math.tanh %99 : vector<32x128xf32>
    %cst_38 = arith.constant 5.000000e-01 : f32
    %101 = vector.broadcast %cst_38 : f32 to vector<32x128xf32>
    %102 = arith.mulf %101, %100 : vector<32x128xf32>
    %cst_39 = arith.constant 5.000000e-01 : f32
    %103 = vector.broadcast %cst_39 : f32 to vector<32x128xf32>
    %104 = arith.addf %102, %103 : vector<32x128xf32>
    %105 = vector.extract_strided_slice %88 {offsets = [64, 0], sizes = [32, 128], strides = [1, 1]} : vector<128x128xf32> to vector<32x128xf32>
    %106 = math.tanh %105 : vector<32x128xf32>
    %107 = vector.extract_strided_slice %88 {offsets = [96, 0], sizes = [32, 128], strides = [1, 1]} : vector<128x128xf32> to vector<32x128xf32>
    %cst_40 = arith.constant 5.000000e-01 : f32
    %108 = vector.broadcast %cst_40 : f32 to vector<32x128xf32>
    %109 = arith.mulf %108, %107 : vector<32x128xf32>
    %110 = math.tanh %109 : vector<32x128xf32>
    %cst_41 = arith.constant 5.000000e-01 : f32
    %111 = vector.broadcast %cst_41 : f32 to vector<32x128xf32>
    %112 = arith.mulf %111, %110 : vector<32x128xf32>
    %cst_42 = arith.constant 5.000000e-01 : f32
    %113 = vector.broadcast %cst_42 : f32 to vector<32x128xf32>
    %114 = arith.addf %112, %113 : vector<32x128xf32>
    %115 = arith.mulf %104, %45 : vector<32x128xf32>
    %116 = arith.mulf %96, %106 : vector<32x128xf32>
    %117 = arith.addf %115, %116 : vector<32x128xf32>
    %118 = math.tanh %117 : vector<32x128xf32>
    %119 = arith.mulf %114, %118 : vector<32x128xf32>
    %c2_i32 = arith.constant 2 : i32
    %cst_43 = arith.constant dense<0.000000e+00> : vector<128x128xf32>
    %120 = tpu.matmul %0, %83, %cst_43 {dimension_numbers = #tpu.dot_dimension_numbers<[0], [0], [1], [1], [0, 1, 1, 1], [], []>} : vector<32x128xf32>, vector<32x128xf32>, vector<128x128xf32> -> vector<128x128xf32>
    %121 = arith.index_cast %c2_i32 : i32 to index
    %c0_44 = arith.constant 0 : index
    %c0_45 = arith.constant 0 : index
    %122 = vector.load %arg1[%121, %c0_44, %c0_45] : memref<8x128x256xf32, #tpu.memory_space<vmem>>, vector<1x128x128xf32>
    %123 = vector.shape_cast %122 : vector<1x128x128xf32> to vector<128x128xf32>
    %124 = arith.addf %123, %120 : vector<128x128xf32>
    %125 = vector.extract_strided_slice %124 {offsets = [0, 0], sizes = [32, 128], strides = [1, 1]} : vector<128x128xf32> to vector<32x128xf32>
    %cst_46 = arith.constant 5.000000e-01 : f32
    %126 = vector.broadcast %cst_46 : f32 to vector<32x128xf32>
    %127 = arith.mulf %126, %125 : vector<32x128xf32>
    %128 = math.tanh %127 : vector<32x128xf32>
    %cst_47 = arith.constant 5.000000e-01 : f32
    %129 = vector.broadcast %cst_47 : f32 to vector<32x128xf32>
    %130 = arith.mulf %129, %128 : vector<32x128xf32>
    %cst_48 = arith.constant 5.000000e-01 : f32
    %131 = vector.broadcast %cst_48 : f32 to vector<32x128xf32>
    %132 = arith.addf %130, %131 : vector<32x128xf32>
    %133 = vector.extract_strided_slice %124 {offsets = [32, 0], sizes = [32, 128], strides = [1, 1]} : vector<128x128xf32> to vector<32x128xf32>
    %cst_49 = arith.constant 5.000000e-01 : f32
    %134 = vector.broadcast %cst_49 : f32 to vector<32x128xf32>
    %135 = arith.mulf %134, %133 : vector<32x128xf32>
    %136 = math.tanh %135 : vector<32x128xf32>
    %cst_50 = arith.constant 5.000000e-01 : f32
    %137 = vector.broadcast %cst_50 : f32 to vector<32x128xf32>
    %138 = arith.mulf %137, %136 : vector<32x128xf32>
    %cst_51 = arith.constant 5.000000e-01 : f32
    %139 = vector.broadcast %cst_51 : f32 to vector<32x128xf32>
    %140 = arith.addf %138, %139 : vector<32x128xf32>
    %141 = vector.extract_strided_slice %124 {offsets = [64, 0], sizes = [32, 128], strides = [1, 1]} : vector<128x128xf32> to vector<32x128xf32>
    %142 = math.tanh %141 : vector<32x128xf32>
    %143 = vector.extract_strided_slice %124 {offsets = [96, 0], sizes = [32, 128], strides = [1, 1]} : vector<128x128xf32> to vector<32x128xf32>
    %cst_52 = arith.constant 5.000000e-01 : f32
    %144 = vector.broadcast %cst_52 : f32 to vector<32x128xf32>
    %145 = arith.mulf %144, %143 : vector<32x128xf32>
    %146 = math.tanh %145 : vector<32x128xf32>
    %cst_53 = arith.constant 5.000000e-01 : f32
    %147 = vector.broadcast %cst_53 : f32 to vector<32x128xf32>
    %148 = arith.mulf %147, %146 : vector<32x128xf32>
    %cst_54 = arith.constant 5.000000e-01 : f32
    %149 = vector.broadcast %cst_54 : f32 to vector<32x128xf32>
    %150 = arith.addf %148, %149 : vector<32x128xf32>
    %151 = arith.mulf %140, %81 : vector<32x128xf32>
    %152 = arith.mulf %132, %142 : vector<32x128xf32>
    %153 = arith.addf %151, %152 : vector<32x128xf32>
    %154 = math.tanh %153 : vector<32x128xf32>
    %155 = arith.mulf %150, %154 : vector<32x128xf32>
    %cst_55 = arith.constant dense<0.000000e+00> : vector<128x128xf32>
    %156 = tpu.matmul %0, %119, %cst_55 {dimension_numbers = #tpu.dot_dimension_numbers<[0], [0], [1], [1], [0, 1, 1, 1], [], []>} : vector<32x128xf32>, vector<32x128xf32>, vector<128x128xf32> -> vector<128x128xf32>
    %157 = arith.index_cast %c2_i32 : i32 to index
    %c0_56 = arith.constant 0 : index
    %c128_57 = arith.constant 128 : index
    %158 = vector.load %arg1[%157, %c0_56, %c128_57] : memref<8x128x256xf32, #tpu.memory_space<vmem>>, vector<1x128x128xf32>
    %159 = vector.shape_cast %158 : vector<1x128x128xf32> to vector<128x128xf32>
    %160 = arith.addf %159, %156 : vector<128x128xf32>
    %161 = vector.extract_strided_slice %160 {offsets = [0, 0], sizes = [32, 128], strides = [1, 1]} : vector<128x128xf32> to vector<32x128xf32>
    %cst_58 = arith.constant 5.000000e-01 : f32
    %162 = vector.broadcast %cst_58 : f32 to vector<32x128xf32>
    %163 = arith.mulf %162, %161 : vector<32x128xf32>
    %164 = math.tanh %163 : vector<32x128xf32>
    %cst_59 = arith.constant 5.000000e-01 : f32
    %165 = vector.broadcast %cst_59 : f32 to vector<32x128xf32>
    %166 = arith.mulf %165, %164 : vector<32x128xf32>
    %cst_60 = arith.constant 5.000000e-01 : f32
    %167 = vector.broadcast %cst_60 : f32 to vector<32x128xf32>
    %168 = arith.addf %166, %167 : vector<32x128xf32>
    %169 = vector.extract_strided_slice %160 {offsets = [32, 0], sizes = [32, 128], strides = [1, 1]} : vector<128x128xf32> to vector<32x128xf32>
    %cst_61 = arith.constant 5.000000e-01 : f32
    %170 = vector.broadcast %cst_61 : f32 to vector<32x128xf32>
    %171 = arith.mulf %170, %169 : vector<32x128xf32>
    %172 = math.tanh %171 : vector<32x128xf32>
    %cst_62 = arith.constant 5.000000e-01 : f32
    %173 = vector.broadcast %cst_62 : f32 to vector<32x128xf32>
    %174 = arith.mulf %173, %172 : vector<32x128xf32>
    %cst_63 = arith.constant 5.000000e-01 : f32
    %175 = vector.broadcast %cst_63 : f32 to vector<32x128xf32>
    %176 = arith.addf %174, %175 : vector<32x128xf32>
    %177 = vector.extract_strided_slice %160 {offsets = [64, 0], sizes = [32, 128], strides = [1, 1]} : vector<128x128xf32> to vector<32x128xf32>
    %178 = math.tanh %177 : vector<32x128xf32>
    %179 = vector.extract_strided_slice %160 {offsets = [96, 0], sizes = [32, 128], strides = [1, 1]} : vector<128x128xf32> to vector<32x128xf32>
    %cst_64 = arith.constant 5.000000e-01 : f32
    %180 = vector.broadcast %cst_64 : f32 to vector<32x128xf32>
    %181 = arith.mulf %180, %179 : vector<32x128xf32>
    %182 = math.tanh %181 : vector<32x128xf32>
    %cst_65 = arith.constant 5.000000e-01 : f32
    %183 = vector.broadcast %cst_65 : f32 to vector<32x128xf32>
    %184 = arith.mulf %183, %182 : vector<32x128xf32>
    %cst_66 = arith.constant 5.000000e-01 : f32
    %185 = vector.broadcast %cst_66 : f32 to vector<32x128xf32>
    %186 = arith.addf %184, %185 : vector<32x128xf32>
    %187 = arith.mulf %176, %117 : vector<32x128xf32>
    %188 = arith.mulf %168, %178 : vector<32x128xf32>
    %189 = arith.addf %187, %188 : vector<32x128xf32>
    %190 = math.tanh %189 : vector<32x128xf32>
    %191 = arith.mulf %186, %190 : vector<32x128xf32>
    %c3_i32 = arith.constant 3 : i32
    %cst_67 = arith.constant dense<0.000000e+00> : vector<128x128xf32>
    %192 = tpu.matmul %0, %155, %cst_67 {dimension_numbers = #tpu.dot_dimension_numbers<[0], [0], [1], [1], [0, 1, 1, 1], [], []>} : vector<32x128xf32>, vector<32x128xf32>, vector<128x128xf32> -> vector<128x128xf32>
    %193 = arith.index_cast %c3_i32 : i32 to index
    %c0_68 = arith.constant 0 : index
    %c0_69 = arith.constant 0 : index
    %194 = vector.load %arg1[%193, %c0_68, %c0_69] : memref<8x128x256xf32, #tpu.memory_space<vmem>>, vector<1x128x128xf32>
    %195 = vector.shape_cast %194 : vector<1x128x128xf32> to vector<128x128xf32>
    %196 = arith.addf %195, %192 : vector<128x128xf32>
    %197 = vector.extract_strided_slice %196 {offsets = [0, 0], sizes = [32, 128], strides = [1, 1]} : vector<128x128xf32> to vector<32x128xf32>
    %cst_70 = arith.constant 5.000000e-01 : f32
    %198 = vector.broadcast %cst_70 : f32 to vector<32x128xf32>
    %199 = arith.mulf %198, %197 : vector<32x128xf32>
    %200 = math.tanh %199 : vector<32x128xf32>
    %cst_71 = arith.constant 5.000000e-01 : f32
    %201 = vector.broadcast %cst_71 : f32 to vector<32x128xf32>
    %202 = arith.mulf %201, %200 : vector<32x128xf32>
    %cst_72 = arith.constant 5.000000e-01 : f32
    %203 = vector.broadcast %cst_72 : f32 to vector<32x128xf32>
    %204 = arith.addf %202, %203 : vector<32x128xf32>
    %205 = vector.extract_strided_slice %196 {offsets = [32, 0], sizes = [32, 128], strides = [1, 1]} : vector<128x128xf32> to vector<32x128xf32>
    %cst_73 = arith.constant 5.000000e-01 : f32
    %206 = vector.broadcast %cst_73 : f32 to vector<32x128xf32>
    %207 = arith.mulf %206, %205 : vector<32x128xf32>
    %208 = math.tanh %207 : vector<32x128xf32>
    %cst_74 = arith.constant 5.000000e-01 : f32
    %209 = vector.broadcast %cst_74 : f32 to vector<32x128xf32>
    %210 = arith.mulf %209, %208 : vector<32x128xf32>
    %cst_75 = arith.constant 5.000000e-01 : f32
    %211 = vector.broadcast %cst_75 : f32 to vector<32x128xf32>
    %212 = arith.addf %210, %211 : vector<32x128xf32>
    %213 = vector.extract_strided_slice %196 {offsets = [64, 0], sizes = [32, 128], strides = [1, 1]} : vector<128x128xf32> to vector<32x128xf32>
    %214 = math.tanh %213 : vector<32x128xf32>
    %215 = vector.extract_strided_slice %196 {offsets = [96, 0], sizes = [32, 128], strides = [1, 1]} : vector<128x128xf32> to vector<32x128xf32>
    %cst_76 = arith.constant 5.000000e-01 : f32
    %216 = vector.broadcast %cst_76 : f32 to vector<32x128xf32>
    %217 = arith.mulf %216, %215 : vector<32x128xf32>
    %218 = math.tanh %217 : vector<32x128xf32>
    %cst_77 = arith.constant 5.000000e-01 : f32
    %219 = vector.broadcast %cst_77 : f32 to vector<32x128xf32>
    %220 = arith.mulf %219, %218 : vector<32x128xf32>
    %cst_78 = arith.constant 5.000000e-01 : f32
    %221 = vector.broadcast %cst_78 : f32 to vector<32x128xf32>
    %222 = arith.addf %220, %221 : vector<32x128xf32>
    %223 = arith.mulf %212, %153 : vector<32x128xf32>
    %224 = arith.mulf %204, %214 : vector<32x128xf32>
    %225 = arith.addf %223, %224 : vector<32x128xf32>
    %226 = math.tanh %225 : vector<32x128xf32>
    %227 = arith.mulf %222, %226 : vector<32x128xf32>
    %cst_79 = arith.constant dense<0.000000e+00> : vector<128x128xf32>
    %228 = tpu.matmul %0, %191, %cst_79 {dimension_numbers = #tpu.dot_dimension_numbers<[0], [0], [1], [1], [0, 1, 1, 1], [], []>} : vector<32x128xf32>, vector<32x128xf32>, vector<128x128xf32> -> vector<128x128xf32>
    %229 = arith.index_cast %c3_i32 : i32 to index
    %c0_80 = arith.constant 0 : index
    %c128_81 = arith.constant 128 : index
    %230 = vector.load %arg1[%229, %c0_80, %c128_81] : memref<8x128x256xf32, #tpu.memory_space<vmem>>, vector<1x128x128xf32>
    %231 = vector.shape_cast %230 : vector<1x128x128xf32> to vector<128x128xf32>
    %232 = arith.addf %231, %228 : vector<128x128xf32>
    %233 = vector.extract_strided_slice %232 {offsets = [0, 0], sizes = [32, 128], strides = [1, 1]} : vector<128x128xf32> to vector<32x128xf32>
    %cst_82 = arith.constant 5.000000e-01 : f32
    %234 = vector.broadcast %cst_82 : f32 to vector<32x128xf32>
    %235 = arith.mulf %234, %233 : vector<32x128xf32>
    %236 = math.tanh %235 : vector<32x128xf32>
    %cst_83 = arith.constant 5.000000e-01 : f32
    %237 = vector.broadcast %cst_83 : f32 to vector<32x128xf32>
    %238 = arith.mulf %237, %236 : vector<32x128xf32>
    %cst_84 = arith.constant 5.000000e-01 : f32
    %239 = vector.broadcast %cst_84 : f32 to vector<32x128xf32>
    %240 = arith.addf %238, %239 : vector<32x128xf32>
    %241 = vector.extract_strided_slice %232 {offsets = [32, 0], sizes = [32, 128], strides = [1, 1]} : vector<128x128xf32> to vector<32x128xf32>
    %cst_85 = arith.constant 5.000000e-01 : f32
    %242 = vector.broadcast %cst_85 : f32 to vector<32x128xf32>
    %243 = arith.mulf %242, %241 : vector<32x128xf32>
    %244 = math.tanh %243 : vector<32x128xf32>
    %cst_86 = arith.constant 5.000000e-01 : f32
    %245 = vector.broadcast %cst_86 : f32 to vector<32x128xf32>
    %246 = arith.mulf %245, %244 : vector<32x128xf32>
    %cst_87 = arith.constant 5.000000e-01 : f32
    %247 = vector.broadcast %cst_87 : f32 to vector<32x128xf32>
    %248 = arith.addf %246, %247 : vector<32x128xf32>
    %249 = vector.extract_strided_slice %232 {offsets = [64, 0], sizes = [32, 128], strides = [1, 1]} : vector<128x128xf32> to vector<32x128xf32>
    %250 = math.tanh %249 : vector<32x128xf32>
    %251 = vector.extract_strided_slice %232 {offsets = [96, 0], sizes = [32, 128], strides = [1, 1]} : vector<128x128xf32> to vector<32x128xf32>
    %cst_88 = arith.constant 5.000000e-01 : f32
    %252 = vector.broadcast %cst_88 : f32 to vector<32x128xf32>
    %253 = arith.mulf %252, %251 : vector<32x128xf32>
    %254 = math.tanh %253 : vector<32x128xf32>
    %cst_89 = arith.constant 5.000000e-01 : f32
    %255 = vector.broadcast %cst_89 : f32 to vector<32x128xf32>
    %256 = arith.mulf %255, %254 : vector<32x128xf32>
    %cst_90 = arith.constant 5.000000e-01 : f32
    %257 = vector.broadcast %cst_90 : f32 to vector<32x128xf32>
    %258 = arith.addf %256, %257 : vector<32x128xf32>
    %259 = arith.mulf %248, %189 : vector<32x128xf32>
    %260 = arith.mulf %240, %250 : vector<32x128xf32>
    %261 = arith.addf %259, %260 : vector<32x128xf32>
    %262 = math.tanh %261 : vector<32x128xf32>
    %263 = arith.mulf %258, %262 : vector<32x128xf32>
    %c4_i32 = arith.constant 4 : i32
    %cst_91 = arith.constant dense<0.000000e+00> : vector<128x128xf32>
    %264 = tpu.matmul %0, %227, %cst_91 {dimension_numbers = #tpu.dot_dimension_numbers<[0], [0], [1], [1], [0, 1, 1, 1], [], []>} : vector<32x128xf32>, vector<32x128xf32>, vector<128x128xf32> -> vector<128x128xf32>
    %265 = arith.index_cast %c4_i32 : i32 to index
    %c0_92 = arith.constant 0 : index
    %c0_93 = arith.constant 0 : index
    %266 = vector.load %arg1[%265, %c0_92, %c0_93] : memref<8x128x256xf32, #tpu.memory_space<vmem>>, vector<1x128x128xf32>
    %267 = vector.shape_cast %266 : vector<1x128x128xf32> to vector<128x128xf32>
    %268 = arith.addf %267, %264 : vector<128x128xf32>
    %269 = vector.extract_strided_slice %268 {offsets = [0, 0], sizes = [32, 128], strides = [1, 1]} : vector<128x128xf32> to vector<32x128xf32>
    %cst_94 = arith.constant 5.000000e-01 : f32
    %270 = vector.broadcast %cst_94 : f32 to vector<32x128xf32>
    %271 = arith.mulf %270, %269 : vector<32x128xf32>
    %272 = math.tanh %271 : vector<32x128xf32>
    %cst_95 = arith.constant 5.000000e-01 : f32
    %273 = vector.broadcast %cst_95 : f32 to vector<32x128xf32>
    %274 = arith.mulf %273, %272 : vector<32x128xf32>
    %cst_96 = arith.constant 5.000000e-01 : f32
    %275 = vector.broadcast %cst_96 : f32 to vector<32x128xf32>
    %276 = arith.addf %274, %275 : vector<32x128xf32>
    %277 = vector.extract_strided_slice %268 {offsets = [32, 0], sizes = [32, 128], strides = [1, 1]} : vector<128x128xf32> to vector<32x128xf32>
    %cst_97 = arith.constant 5.000000e-01 : f32
    %278 = vector.broadcast %cst_97 : f32 to vector<32x128xf32>
    %279 = arith.mulf %278, %277 : vector<32x128xf32>
    %280 = math.tanh %279 : vector<32x128xf32>
    %cst_98 = arith.constant 5.000000e-01 : f32
    %281 = vector.broadcast %cst_98 : f32 to vector<32x128xf32>
    %282 = arith.mulf %281, %280 : vector<32x128xf32>
    %cst_99 = arith.constant 5.000000e-01 : f32
    %283 = vector.broadcast %cst_99 : f32 to vector<32x128xf32>
    %284 = arith.addf %282, %283 : vector<32x128xf32>
    %285 = vector.extract_strided_slice %268 {offsets = [64, 0], sizes = [32, 128], strides = [1, 1]} : vector<128x128xf32> to vector<32x128xf32>
    %286 = math.tanh %285 : vector<32x128xf32>
    %287 = vector.extract_strided_slice %268 {offsets = [96, 0], sizes = [32, 128], strides = [1, 1]} : vector<128x128xf32> to vector<32x128xf32>
    %cst_100 = arith.constant 5.000000e-01 : f32
    %288 = vector.broadcast %cst_100 : f32 to vector<32x128xf32>
    %289 = arith.mulf %288, %287 : vector<32x128xf32>
    %290 = math.tanh %289 : vector<32x128xf32>
    %cst_101 = arith.constant 5.000000e-01 : f32
    %291 = vector.broadcast %cst_101 : f32 to vector<32x128xf32>
    %292 = arith.mulf %291, %290 : vector<32x128xf32>
    %cst_102 = arith.constant 5.000000e-01 : f32
    %293 = vector.broadcast %cst_102 : f32 to vector<32x128xf32>
    %294 = arith.addf %292, %293 : vector<32x128xf32>
    %295 = arith.mulf %284, %225 : vector<32x128xf32>
    %296 = arith.mulf %276, %286 : vector<32x128xf32>
    %297 = arith.addf %295, %296 : vector<32x128xf32>
    %298 = math.tanh %297 : vector<32x128xf32>
    %299 = arith.mulf %294, %298 : vector<32x128xf32>
    %cst_103 = arith.constant dense<0.000000e+00> : vector<128x128xf32>
    %300 = tpu.matmul %0, %263, %cst_103 {dimension_numbers = #tpu.dot_dimension_numbers<[0], [0], [1], [1], [0, 1, 1, 1], [], []>} : vector<32x128xf32>, vector<32x128xf32>, vector<128x128xf32> -> vector<128x128xf32>
    %301 = arith.index_cast %c4_i32 : i32 to index
    %c0_104 = arith.constant 0 : index
    %c128_105 = arith.constant 128 : index
    %302 = vector.load %arg1[%301, %c0_104, %c128_105] : memref<8x128x256xf32, #tpu.memory_space<vmem>>, vector<1x128x128xf32>
    %303 = vector.shape_cast %302 : vector<1x128x128xf32> to vector<128x128xf32>
    %304 = arith.addf %303, %300 : vector<128x128xf32>
    %305 = vector.extract_strided_slice %304 {offsets = [0, 0], sizes = [32, 128], strides = [1, 1]} : vector<128x128xf32> to vector<32x128xf32>
    %cst_106 = arith.constant 5.000000e-01 : f32
    %306 = vector.broadcast %cst_106 : f32 to vector<32x128xf32>
    %307 = arith.mulf %306, %305 : vector<32x128xf32>
    %308 = math.tanh %307 : vector<32x128xf32>
    %cst_107 = arith.constant 5.000000e-01 : f32
    %309 = vector.broadcast %cst_107 : f32 to vector<32x128xf32>
    %310 = arith.mulf %309, %308 : vector<32x128xf32>
    %cst_108 = arith.constant 5.000000e-01 : f32
    %311 = vector.broadcast %cst_108 : f32 to vector<32x128xf32>
    %312 = arith.addf %310, %311 : vector<32x128xf32>
    %313 = vector.extract_strided_slice %304 {offsets = [32, 0], sizes = [32, 128], strides = [1, 1]} : vector<128x128xf32> to vector<32x128xf32>
    %cst_109 = arith.constant 5.000000e-01 : f32
    %314 = vector.broadcast %cst_109 : f32 to vector<32x128xf32>
    %315 = arith.mulf %314, %313 : vector<32x128xf32>
    %316 = math.tanh %315 : vector<32x128xf32>
    %cst_110 = arith.constant 5.000000e-01 : f32
    %317 = vector.broadcast %cst_110 : f32 to vector<32x128xf32>
    %318 = arith.mulf %317, %316 : vector<32x128xf32>
    %cst_111 = arith.constant 5.000000e-01 : f32
    %319 = vector.broadcast %cst_111 : f32 to vector<32x128xf32>
    %320 = arith.addf %318, %319 : vector<32x128xf32>
    %321 = vector.extract_strided_slice %304 {offsets = [64, 0], sizes = [32, 128], strides = [1, 1]} : vector<128x128xf32> to vector<32x128xf32>
    %322 = math.tanh %321 : vector<32x128xf32>
    %323 = vector.extract_strided_slice %304 {offsets = [96, 0], sizes = [32, 128], strides = [1, 1]} : vector<128x128xf32> to vector<32x128xf32>
    %cst_112 = arith.constant 5.000000e-01 : f32
    %324 = vector.broadcast %cst_112 : f32 to vector<32x128xf32>
    %325 = arith.mulf %324, %323 : vector<32x128xf32>
    %326 = math.tanh %325 : vector<32x128xf32>
    %cst_113 = arith.constant 5.000000e-01 : f32
    %327 = vector.broadcast %cst_113 : f32 to vector<32x128xf32>
    %328 = arith.mulf %327, %326 : vector<32x128xf32>
    %cst_114 = arith.constant 5.000000e-01 : f32
    %329 = vector.broadcast %cst_114 : f32 to vector<32x128xf32>
    %330 = arith.addf %328, %329 : vector<32x128xf32>
    %331 = arith.mulf %320, %261 : vector<32x128xf32>
    %332 = arith.mulf %312, %322 : vector<32x128xf32>
    %333 = arith.addf %331, %332 : vector<32x128xf32>
    %334 = math.tanh %333 : vector<32x128xf32>
    %335 = arith.mulf %330, %334 : vector<32x128xf32>
    %c5_i32 = arith.constant 5 : i32
    %cst_115 = arith.constant dense<0.000000e+00> : vector<128x128xf32>
    %336 = tpu.matmul %0, %299, %cst_115 {dimension_numbers = #tpu.dot_dimension_numbers<[0], [0], [1], [1], [0, 1, 1, 1], [], []>} : vector<32x128xf32>, vector<32x128xf32>, vector<128x128xf32> -> vector<128x128xf32>
    %337 = arith.index_cast %c5_i32 : i32 to index
    %c0_116 = arith.constant 0 : index
    %c0_117 = arith.constant 0 : index
    %338 = vector.load %arg1[%337, %c0_116, %c0_117] : memref<8x128x256xf32, #tpu.memory_space<vmem>>, vector<1x128x128xf32>
    %339 = vector.shape_cast %338 : vector<1x128x128xf32> to vector<128x128xf32>
    %340 = arith.addf %339, %336 : vector<128x128xf32>
    %341 = vector.extract_strided_slice %340 {offsets = [0, 0], sizes = [32, 128], strides = [1, 1]} : vector<128x128xf32> to vector<32x128xf32>
    %cst_118 = arith.constant 5.000000e-01 : f32
    %342 = vector.broadcast %cst_118 : f32 to vector<32x128xf32>
    %343 = arith.mulf %342, %341 : vector<32x128xf32>
    %344 = math.tanh %343 : vector<32x128xf32>
    %cst_119 = arith.constant 5.000000e-01 : f32
    %345 = vector.broadcast %cst_119 : f32 to vector<32x128xf32>
    %346 = arith.mulf %345, %344 : vector<32x128xf32>
    %cst_120 = arith.constant 5.000000e-01 : f32
    %347 = vector.broadcast %cst_120 : f32 to vector<32x128xf32>
    %348 = arith.addf %346, %347 : vector<32x128xf32>
    %349 = vector.extract_strided_slice %340 {offsets = [32, 0], sizes = [32, 128], strides = [1, 1]} : vector<128x128xf32> to vector<32x128xf32>
    %cst_121 = arith.constant 5.000000e-01 : f32
    %350 = vector.broadcast %cst_121 : f32 to vector<32x128xf32>
    %351 = arith.mulf %350, %349 : vector<32x128xf32>
    %352 = math.tanh %351 : vector<32x128xf32>
    %cst_122 = arith.constant 5.000000e-01 : f32
    %353 = vector.broadcast %cst_122 : f32 to vector<32x128xf32>
    %354 = arith.mulf %353, %352 : vector<32x128xf32>
    %cst_123 = arith.constant 5.000000e-01 : f32
    %355 = vector.broadcast %cst_123 : f32 to vector<32x128xf32>
    %356 = arith.addf %354, %355 : vector<32x128xf32>
    %357 = vector.extract_strided_slice %340 {offsets = [64, 0], sizes = [32, 128], strides = [1, 1]} : vector<128x128xf32> to vector<32x128xf32>
    %358 = math.tanh %357 : vector<32x128xf32>
    %359 = vector.extract_strided_slice %340 {offsets = [96, 0], sizes = [32, 128], strides = [1, 1]} : vector<128x128xf32> to vector<32x128xf32>
    %cst_124 = arith.constant 5.000000e-01 : f32
    %360 = vector.broadcast %cst_124 : f32 to vector<32x128xf32>
    %361 = arith.mulf %360, %359 : vector<32x128xf32>
    %362 = math.tanh %361 : vector<32x128xf32>
    %cst_125 = arith.constant 5.000000e-01 : f32
    %363 = vector.broadcast %cst_125 : f32 to vector<32x128xf32>
    %364 = arith.mulf %363, %362 : vector<32x128xf32>
    %cst_126 = arith.constant 5.000000e-01 : f32
    %365 = vector.broadcast %cst_126 : f32 to vector<32x128xf32>
    %366 = arith.addf %364, %365 : vector<32x128xf32>
    %367 = arith.mulf %356, %297 : vector<32x128xf32>
    %368 = arith.mulf %348, %358 : vector<32x128xf32>
    %369 = arith.addf %367, %368 : vector<32x128xf32>
    %370 = math.tanh %369 : vector<32x128xf32>
    %371 = arith.mulf %366, %370 : vector<32x128xf32>
    %cst_127 = arith.constant dense<0.000000e+00> : vector<128x128xf32>
    %372 = tpu.matmul %0, %335, %cst_127 {dimension_numbers = #tpu.dot_dimension_numbers<[0], [0], [1], [1], [0, 1, 1, 1], [], []>} : vector<32x128xf32>, vector<32x128xf32>, vector<128x128xf32> -> vector<128x128xf32>
    %373 = arith.index_cast %c5_i32 : i32 to index
    %c0_128 = arith.constant 0 : index
    %c128_129 = arith.constant 128 : index
    %374 = vector.load %arg1[%373, %c0_128, %c128_129] : memref<8x128x256xf32, #tpu.memory_space<vmem>>, vector<1x128x128xf32>
    %375 = vector.shape_cast %374 : vector<1x128x128xf32> to vector<128x128xf32>
    %376 = arith.addf %375, %372 : vector<128x128xf32>
    %377 = vector.extract_strided_slice %376 {offsets = [0, 0], sizes = [32, 128], strides = [1, 1]} : vector<128x128xf32> to vector<32x128xf32>
    %cst_130 = arith.constant 5.000000e-01 : f32
    %378 = vector.broadcast %cst_130 : f32 to vector<32x128xf32>
    %379 = arith.mulf %378, %377 : vector<32x128xf32>
    %380 = math.tanh %379 : vector<32x128xf32>
    %cst_131 = arith.constant 5.000000e-01 : f32
    %381 = vector.broadcast %cst_131 : f32 to vector<32x128xf32>
    %382 = arith.mulf %381, %380 : vector<32x128xf32>
    %cst_132 = arith.constant 5.000000e-01 : f32
    %383 = vector.broadcast %cst_132 : f32 to vector<32x128xf32>
    %384 = arith.addf %382, %383 : vector<32x128xf32>
    %385 = vector.extract_strided_slice %376 {offsets = [32, 0], sizes = [32, 128], strides = [1, 1]} : vector<128x128xf32> to vector<32x128xf32>
    %cst_133 = arith.constant 5.000000e-01 : f32
    %386 = vector.broadcast %cst_133 : f32 to vector<32x128xf32>
    %387 = arith.mulf %386, %385 : vector<32x128xf32>
    %388 = math.tanh %387 : vector<32x128xf32>
    %cst_134 = arith.constant 5.000000e-01 : f32
    %389 = vector.broadcast %cst_134 : f32 to vector<32x128xf32>
    %390 = arith.mulf %389, %388 : vector<32x128xf32>
    %cst_135 = arith.constant 5.000000e-01 : f32
    %391 = vector.broadcast %cst_135 : f32 to vector<32x128xf32>
    %392 = arith.addf %390, %391 : vector<32x128xf32>
    %393 = vector.extract_strided_slice %376 {offsets = [64, 0], sizes = [32, 128], strides = [1, 1]} : vector<128x128xf32> to vector<32x128xf32>
    %394 = math.tanh %393 : vector<32x128xf32>
    %395 = vector.extract_strided_slice %376 {offsets = [96, 0], sizes = [32, 128], strides = [1, 1]} : vector<128x128xf32> to vector<32x128xf32>
    %cst_136 = arith.constant 5.000000e-01 : f32
    %396 = vector.broadcast %cst_136 : f32 to vector<32x128xf32>
    %397 = arith.mulf %396, %395 : vector<32x128xf32>
    %398 = math.tanh %397 : vector<32x128xf32>
    %cst_137 = arith.constant 5.000000e-01 : f32
    %399 = vector.broadcast %cst_137 : f32 to vector<32x128xf32>
    %400 = arith.mulf %399, %398 : vector<32x128xf32>
    %cst_138 = arith.constant 5.000000e-01 : f32
    %401 = vector.broadcast %cst_138 : f32 to vector<32x128xf32>
    %402 = arith.addf %400, %401 : vector<32x128xf32>
    %403 = arith.mulf %392, %333 : vector<32x128xf32>
    %404 = arith.mulf %384, %394 : vector<32x128xf32>
    %405 = arith.addf %403, %404 : vector<32x128xf32>
    %406 = math.tanh %405 : vector<32x128xf32>
    %407 = arith.mulf %402, %406 : vector<32x128xf32>
    %c6_i32 = arith.constant 6 : i32
    %cst_139 = arith.constant dense<0.000000e+00> : vector<128x128xf32>
    %408 = tpu.matmul %0, %371, %cst_139 {dimension_numbers = #tpu.dot_dimension_numbers<[0], [0], [1], [1], [0, 1, 1, 1], [], []>} : vector<32x128xf32>, vector<32x128xf32>, vector<128x128xf32> -> vector<128x128xf32>
    %409 = arith.index_cast %c6_i32 : i32 to index
    %c0_140 = arith.constant 0 : index
    %c0_141 = arith.constant 0 : index
    %410 = vector.load %arg1[%409, %c0_140, %c0_141] : memref<8x128x256xf32, #tpu.memory_space<vmem>>, vector<1x128x128xf32>
    %411 = vector.shape_cast %410 : vector<1x128x128xf32> to vector<128x128xf32>
    %412 = arith.addf %411, %408 : vector<128x128xf32>
    %413 = vector.extract_strided_slice %412 {offsets = [0, 0], sizes = [32, 128], strides = [1, 1]} : vector<128x128xf32> to vector<32x128xf32>
    %cst_142 = arith.constant 5.000000e-01 : f32
    %414 = vector.broadcast %cst_142 : f32 to vector<32x128xf32>
    %415 = arith.mulf %414, %413 : vector<32x128xf32>
    %416 = math.tanh %415 : vector<32x128xf32>
    %cst_143 = arith.constant 5.000000e-01 : f32
    %417 = vector.broadcast %cst_143 : f32 to vector<32x128xf32>
    %418 = arith.mulf %417, %416 : vector<32x128xf32>
    %cst_144 = arith.constant 5.000000e-01 : f32
    %419 = vector.broadcast %cst_144 : f32 to vector<32x128xf32>
    %420 = arith.addf %418, %419 : vector<32x128xf32>
    %421 = vector.extract_strided_slice %412 {offsets = [32, 0], sizes = [32, 128], strides = [1, 1]} : vector<128x128xf32> to vector<32x128xf32>
    %cst_145 = arith.constant 5.000000e-01 : f32
    %422 = vector.broadcast %cst_145 : f32 to vector<32x128xf32>
    %423 = arith.mulf %422, %421 : vector<32x128xf32>
    %424 = math.tanh %423 : vector<32x128xf32>
    %cst_146 = arith.constant 5.000000e-01 : f32
    %425 = vector.broadcast %cst_146 : f32 to vector<32x128xf32>
    %426 = arith.mulf %425, %424 : vector<32x128xf32>
    %cst_147 = arith.constant 5.000000e-01 : f32
    %427 = vector.broadcast %cst_147 : f32 to vector<32x128xf32>
    %428 = arith.addf %426, %427 : vector<32x128xf32>
    %429 = vector.extract_strided_slice %412 {offsets = [64, 0], sizes = [32, 128], strides = [1, 1]} : vector<128x128xf32> to vector<32x128xf32>
    %430 = math.tanh %429 : vector<32x128xf32>
    %431 = vector.extract_strided_slice %412 {offsets = [96, 0], sizes = [32, 128], strides = [1, 1]} : vector<128x128xf32> to vector<32x128xf32>
    %cst_148 = arith.constant 5.000000e-01 : f32
    %432 = vector.broadcast %cst_148 : f32 to vector<32x128xf32>
    %433 = arith.mulf %432, %431 : vector<32x128xf32>
    %434 = math.tanh %433 : vector<32x128xf32>
    %cst_149 = arith.constant 5.000000e-01 : f32
    %435 = vector.broadcast %cst_149 : f32 to vector<32x128xf32>
    %436 = arith.mulf %435, %434 : vector<32x128xf32>
    %cst_150 = arith.constant 5.000000e-01 : f32
    %437 = vector.broadcast %cst_150 : f32 to vector<32x128xf32>
    %438 = arith.addf %436, %437 : vector<32x128xf32>
    %439 = arith.mulf %428, %369 : vector<32x128xf32>
    %440 = arith.mulf %420, %430 : vector<32x128xf32>
    %441 = arith.addf %439, %440 : vector<32x128xf32>
    %442 = math.tanh %441 : vector<32x128xf32>
    %443 = arith.mulf %438, %442 : vector<32x128xf32>
    %cst_151 = arith.constant dense<0.000000e+00> : vector<128x128xf32>
    %444 = tpu.matmul %0, %407, %cst_151 {dimension_numbers = #tpu.dot_dimension_numbers<[0], [0], [1], [1], [0, 1, 1, 1], [], []>} : vector<32x128xf32>, vector<32x128xf32>, vector<128x128xf32> -> vector<128x128xf32>
    %445 = arith.index_cast %c6_i32 : i32 to index
    %c0_152 = arith.constant 0 : index
    %c128_153 = arith.constant 128 : index
    %446 = vector.load %arg1[%445, %c0_152, %c128_153] : memref<8x128x256xf32, #tpu.memory_space<vmem>>, vector<1x128x128xf32>
    %447 = vector.shape_cast %446 : vector<1x128x128xf32> to vector<128x128xf32>
    %448 = arith.addf %447, %444 : vector<128x128xf32>
    %449 = vector.extract_strided_slice %448 {offsets = [0, 0], sizes = [32, 128], strides = [1, 1]} : vector<128x128xf32> to vector<32x128xf32>
    %cst_154 = arith.constant 5.000000e-01 : f32
    %450 = vector.broadcast %cst_154 : f32 to vector<32x128xf32>
    %451 = arith.mulf %450, %449 : vector<32x128xf32>
    %452 = math.tanh %451 : vector<32x128xf32>
    %cst_155 = arith.constant 5.000000e-01 : f32
    %453 = vector.broadcast %cst_155 : f32 to vector<32x128xf32>
    %454 = arith.mulf %453, %452 : vector<32x128xf32>
    %cst_156 = arith.constant 5.000000e-01 : f32
    %455 = vector.broadcast %cst_156 : f32 to vector<32x128xf32>
    %456 = arith.addf %454, %455 : vector<32x128xf32>
    %457 = vector.extract_strided_slice %448 {offsets = [32, 0], sizes = [32, 128], strides = [1, 1]} : vector<128x128xf32> to vector<32x128xf32>
    %cst_157 = arith.constant 5.000000e-01 : f32
    %458 = vector.broadcast %cst_157 : f32 to vector<32x128xf32>
    %459 = arith.mulf %458, %457 : vector<32x128xf32>
    %460 = math.tanh %459 : vector<32x128xf32>
    %cst_158 = arith.constant 5.000000e-01 : f32
    %461 = vector.broadcast %cst_158 : f32 to vector<32x128xf32>
    %462 = arith.mulf %461, %460 : vector<32x128xf32>
    %cst_159 = arith.constant 5.000000e-01 : f32
    %463 = vector.broadcast %cst_159 : f32 to vector<32x128xf32>
    %464 = arith.addf %462, %463 : vector<32x128xf32>
    %465 = vector.extract_strided_slice %448 {offsets = [64, 0], sizes = [32, 128], strides = [1, 1]} : vector<128x128xf32> to vector<32x128xf32>
    %466 = math.tanh %465 : vector<32x128xf32>
    %467 = vector.extract_strided_slice %448 {offsets = [96, 0], sizes = [32, 128], strides = [1, 1]} : vector<128x128xf32> to vector<32x128xf32>
    %cst_160 = arith.constant 5.000000e-01 : f32
    %468 = vector.broadcast %cst_160 : f32 to vector<32x128xf32>
    %469 = arith.mulf %468, %467 : vector<32x128xf32>
    %470 = math.tanh %469 : vector<32x128xf32>
    %cst_161 = arith.constant 5.000000e-01 : f32
    %471 = vector.broadcast %cst_161 : f32 to vector<32x128xf32>
    %472 = arith.mulf %471, %470 : vector<32x128xf32>
    %cst_162 = arith.constant 5.000000e-01 : f32
    %473 = vector.broadcast %cst_162 : f32 to vector<32x128xf32>
    %474 = arith.addf %472, %473 : vector<32x128xf32>
    %475 = arith.mulf %464, %405 : vector<32x128xf32>
    %476 = arith.mulf %456, %466 : vector<32x128xf32>
    %477 = arith.addf %475, %476 : vector<32x128xf32>
    %478 = math.tanh %477 : vector<32x128xf32>
    %479 = arith.mulf %474, %478 : vector<32x128xf32>
    %c7_i32 = arith.constant 7 : i32
    %cst_163 = arith.constant dense<0.000000e+00> : vector<128x128xf32>
    %480 = tpu.matmul %0, %443, %cst_163 {dimension_numbers = #tpu.dot_dimension_numbers<[0], [0], [1], [1], [0, 1, 1, 1], [], []>} : vector<32x128xf32>, vector<32x128xf32>, vector<128x128xf32> -> vector<128x128xf32>
    %481 = arith.index_cast %c7_i32 : i32 to index
    %c0_164 = arith.constant 0 : index
    %c0_165 = arith.constant 0 : index
    %482 = vector.load %arg1[%481, %c0_164, %c0_165] : memref<8x128x256xf32, #tpu.memory_space<vmem>>, vector<1x128x128xf32>
    %483 = vector.shape_cast %482 : vector<1x128x128xf32> to vector<128x128xf32>
    %484 = arith.addf %483, %480 : vector<128x128xf32>
    %485 = vector.extract_strided_slice %484 {offsets = [0, 0], sizes = [32, 128], strides = [1, 1]} : vector<128x128xf32> to vector<32x128xf32>
    %cst_166 = arith.constant 5.000000e-01 : f32
    %486 = vector.broadcast %cst_166 : f32 to vector<32x128xf32>
    %487 = arith.mulf %486, %485 : vector<32x128xf32>
    %488 = math.tanh %487 : vector<32x128xf32>
    %cst_167 = arith.constant 5.000000e-01 : f32
    %489 = vector.broadcast %cst_167 : f32 to vector<32x128xf32>
    %490 = arith.mulf %489, %488 : vector<32x128xf32>
    %cst_168 = arith.constant 5.000000e-01 : f32
    %491 = vector.broadcast %cst_168 : f32 to vector<32x128xf32>
    %492 = arith.addf %490, %491 : vector<32x128xf32>
    %493 = vector.extract_strided_slice %484 {offsets = [32, 0], sizes = [32, 128], strides = [1, 1]} : vector<128x128xf32> to vector<32x128xf32>
    %cst_169 = arith.constant 5.000000e-01 : f32
    %494 = vector.broadcast %cst_169 : f32 to vector<32x128xf32>
    %495 = arith.mulf %494, %493 : vector<32x128xf32>
    %496 = math.tanh %495 : vector<32x128xf32>
    %cst_170 = arith.constant 5.000000e-01 : f32
    %497 = vector.broadcast %cst_170 : f32 to vector<32x128xf32>
    %498 = arith.mulf %497, %496 : vector<32x128xf32>
    %cst_171 = arith.constant 5.000000e-01 : f32
    %499 = vector.broadcast %cst_171 : f32 to vector<32x128xf32>
    %500 = arith.addf %498, %499 : vector<32x128xf32>
    %501 = vector.extract_strided_slice %484 {offsets = [64, 0], sizes = [32, 128], strides = [1, 1]} : vector<128x128xf32> to vector<32x128xf32>
    %502 = math.tanh %501 : vector<32x128xf32>
    %503 = vector.extract_strided_slice %484 {offsets = [96, 0], sizes = [32, 128], strides = [1, 1]} : vector<128x128xf32> to vector<32x128xf32>
    %cst_172 = arith.constant 5.000000e-01 : f32
    %504 = vector.broadcast %cst_172 : f32 to vector<32x128xf32>
    %505 = arith.mulf %504, %503 : vector<32x128xf32>
    %506 = math.tanh %505 : vector<32x128xf32>
    %cst_173 = arith.constant 5.000000e-01 : f32
    %507 = vector.broadcast %cst_173 : f32 to vector<32x128xf32>
    %508 = arith.mulf %507, %506 : vector<32x128xf32>
    %cst_174 = arith.constant 5.000000e-01 : f32
    %509 = vector.broadcast %cst_174 : f32 to vector<32x128xf32>
    %510 = arith.addf %508, %509 : vector<32x128xf32>
    %511 = arith.mulf %500, %441 : vector<32x128xf32>
    %512 = arith.mulf %492, %502 : vector<32x128xf32>
    %513 = arith.addf %511, %512 : vector<32x128xf32>
    %514 = math.tanh %513 : vector<32x128xf32>
    %515 = arith.mulf %510, %514 : vector<32x128xf32>
    %cst_175 = arith.constant dense<0.000000e+00> : vector<128x128xf32>
    %516 = tpu.matmul %0, %479, %cst_175 {dimension_numbers = #tpu.dot_dimension_numbers<[0], [0], [1], [1], [0, 1, 1, 1], [], []>} : vector<32x128xf32>, vector<32x128xf32>, vector<128x128xf32> -> vector<128x128xf32>
    %517 = arith.index_cast %c7_i32 : i32 to index
    %c0_176 = arith.constant 0 : index
    %c128_177 = arith.constant 128 : index
    %518 = vector.load %arg1[%517, %c0_176, %c128_177] : memref<8x128x256xf32, #tpu.memory_space<vmem>>, vector<1x128x128xf32>
    %519 = vector.shape_cast %518 : vector<1x128x128xf32> to vector<128x128xf32>
    %520 = arith.addf %519, %516 : vector<128x128xf32>
    %521 = vector.extract_strided_slice %520 {offsets = [0, 0], sizes = [32, 128], strides = [1, 1]} : vector<128x128xf32> to vector<32x128xf32>
    %cst_178 = arith.constant 5.000000e-01 : f32
    %522 = vector.broadcast %cst_178 : f32 to vector<32x128xf32>
    %523 = arith.mulf %522, %521 : vector<32x128xf32>
    %524 = math.tanh %523 : vector<32x128xf32>
    %cst_179 = arith.constant 5.000000e-01 : f32
    %525 = vector.broadcast %cst_179 : f32 to vector<32x128xf32>
    %526 = arith.mulf %525, %524 : vector<32x128xf32>
    %cst_180 = arith.constant 5.000000e-01 : f32
    %527 = vector.broadcast %cst_180 : f32 to vector<32x128xf32>
    %528 = arith.addf %526, %527 : vector<32x128xf32>
    %529 = vector.extract_strided_slice %520 {offsets = [32, 0], sizes = [32, 128], strides = [1, 1]} : vector<128x128xf32> to vector<32x128xf32>
    %cst_181 = arith.constant 5.000000e-01 : f32
    %530 = vector.broadcast %cst_181 : f32 to vector<32x128xf32>
    %531 = arith.mulf %530, %529 : vector<32x128xf32>
    %532 = math.tanh %531 : vector<32x128xf32>
    %cst_182 = arith.constant 5.000000e-01 : f32
    %533 = vector.broadcast %cst_182 : f32 to vector<32x128xf32>
    %534 = arith.mulf %533, %532 : vector<32x128xf32>
    %cst_183 = arith.constant 5.000000e-01 : f32
    %535 = vector.broadcast %cst_183 : f32 to vector<32x128xf32>
    %536 = arith.addf %534, %535 : vector<32x128xf32>
    %537 = vector.extract_strided_slice %520 {offsets = [64, 0], sizes = [32, 128], strides = [1, 1]} : vector<128x128xf32> to vector<32x128xf32>
    %538 = math.tanh %537 : vector<32x128xf32>
    %539 = vector.extract_strided_slice %520 {offsets = [96, 0], sizes = [32, 128], strides = [1, 1]} : vector<128x128xf32> to vector<32x128xf32>
    %cst_184 = arith.constant 5.000000e-01 : f32
    %540 = vector.broadcast %cst_184 : f32 to vector<32x128xf32>
    %541 = arith.mulf %540, %539 : vector<32x128xf32>
    %542 = math.tanh %541 : vector<32x128xf32>
    %cst_185 = arith.constant 5.000000e-01 : f32
    %543 = vector.broadcast %cst_185 : f32 to vector<32x128xf32>
    %544 = arith.mulf %543, %542 : vector<32x128xf32>
    %cst_186 = arith.constant 5.000000e-01 : f32
    %545 = vector.broadcast %cst_186 : f32 to vector<32x128xf32>
    %546 = arith.addf %544, %545 : vector<32x128xf32>
    %547 = arith.mulf %536, %477 : vector<32x128xf32>
    %548 = arith.mulf %528, %538 : vector<32x128xf32>
    %549 = arith.addf %547, %548 : vector<32x128xf32>
    %550 = math.tanh %549 : vector<32x128xf32>
    %551 = arith.mulf %546, %550 : vector<32x128xf32>
    %c7_i32_187 = arith.constant 7 : i32
    %552 = vector.broadcast %1 : vector<32x1xf32> to vector<32x128xf32>
    %553 = arith.mulf %552, %515 : vector<32x128xf32>
    %cst_188 = arith.constant dense<0.000000e+00> : vector<128xf32>
    %554 = vector.multi_reduction <add>, %553, %cst_188 [0] : vector<32x128xf32> to vector<128xf32>
    %555 = vector.shape_cast %554 : vector<128xf32> to vector<1x128xf32>
    %c0_189 = arith.constant 0 : index
    %c0_190 = arith.constant 0 : index
    %556 = vector.load %arg4[%c0_189, %c0_190] : memref<1x256xf32, #tpu.memory_space<vmem>>, vector<1x128xf32>
    tpu.vector_store %arg4[%c0_189, %c0_190], %555 {strides = array<i32>} : memref<1x256xf32, #tpu.memory_space<vmem>>, vector<1x128xf32>,
    %557 = vector.broadcast %1 : vector<32x1xf32> to vector<32x128xf32>
    %558 = arith.mulf %557, %551 : vector<32x128xf32>
    %cst_191 = arith.constant dense<0.000000e+00> : vector<128xf32>
    %559 = vector.multi_reduction <add>, %558, %cst_191 [0] : vector<32x128xf32> to vector<128xf32>
    %560 = vector.shape_cast %559 : vector<128xf32> to vector<1x128xf32>
    %c0_192 = arith.constant 0 : index
    %c128_193 = arith.constant 128 : index
    %561 = vector.load %arg4[%c0_192, %c128_193] : memref<1x256xf32, #tpu.memory_space<vmem>>, vector<1x128xf32>
    tpu.vector_store %arg4[%c0_192, %c128_193], %560 {strides = array<i32>} : memref<1x256xf32, #tpu.memory_space<vmem>>, vector<1x128xf32>,
    return
  }
  func.func @transform_0(%arg0: i32) -> (i32, i32, i32) {
    %c0_i32 = arith.constant 0 : i32
    %c0_i32_0 = arith.constant 0 : i32
    %c0_i32_1 = arith.constant 0 : i32
    return %c0_i32, %c0_i32_0, %arg0 : i32, i32, i32
  }
  func.func @transform_1(%arg0: i32) -> (i32, i32) {
    %c0_i32 = arith.constant 0 : i32
    %c0_i32_0 = arith.constant 0 : i32
    %c0_i32_1 = arith.constant 0 : i32
    return %c0_i32, %c0_i32_0 : i32, i32
  }
  func.func @transform_2(%arg0: i32) -> (i32, i32) {
    %c0_i32 = arith.constant 0 : i32
    %c0_i32_0 = arith.constant 0 : i32
    %c0_i32_1 = arith.constant 0 : i32
    return %c0_i32, %c0_i32_0 : i32, i32
  }
  func.func @transform_3(%arg0: i32) -> (i32, i32) {
    %c0_i32 = arith.constant 0 : i32
    %c0_i32_0 = arith.constant 0 : i32
    return %c0_i32, %arg0 : i32, i32
  }
}

</mosaic_0001>

<bundles_post_ra>
// kernel: lstm_forward.1
= control target key start
LH: loop header
LB: loop body
LE: loop exit
PB: predicated region body
PF: predicated region fallthrough
CT: control target
= control target key end

     0   :  { %vm174_vm0 = vcmask 261120   ;;  %s5636_s1 = inlined_call_operand.vmem [shape: f32[32,128], index: 1, kind: input, shape index: {}]   ;;  %s5637_s0 = inlined_call_operand.vmem [shape: f32[8,128,256], index: 0, kind: input, shape index: {}]   ;;  %s5638_s2 = inlined_call_operand.vmem [shape: f32[32,1], index: 2, kind: input, shape index: {}]   ;;  %s5639_s3 = inlined_call_operand.vmem [shape: f32[1,256], index: 3, kind: output, shape index: {}]  }
   0x1   :  { %v14_v0 = vld [vmem:[%s5636_s1] sm:$0xff]  ;;  %v25_v1 = vld [vmem:[%s5637_s0 + $0x30] sm:$0xff]  ;;  %v85_v5 = vld [vmem:[%s5637_s0 + $0x38] sm:$0xff] }
   0x2   :  { %142 = vxpose.xlu0.b32.start [1/4] (short) %v14_v0, 128  ;;  %v29_v2 = vld [vmem:[%s5637_s0 + $0xb0] sm:$0xff]  ;;  %v37_v4 = vmul.f32 0.5, %v25_v1  ;;  %v89_v6 = vld [vmem:[%s5637_s0 + $0xb8] sm:$0xff]  ;;  %v97_v9 = vmul.f32 0.5, %v85_v5  ;;  %v24_v10 = vld [vmem:[%s5637_s0 + $0x20] sm:$0xff] }
   0x3   :  { %v33_v3 = vld [vmem:[%s5637_s0 + $0xf0] sm:$0xff]  ;;  %3113 = vtanh.f32 %v29_v2  ;;  %v93_v8 = vld [vmem:[%s5637_s0 + $0xf8] sm:$0xff]  ;;  %v32_v12 = vld [vmem:[%s5637_s0 + $0xe0] sm:$0xff]  ;;  %v36_v13 = vmul.f32 0.5, %v24_v10 }
   0x4   :  { %v57_v7 = vmul.f32 0.5, %v33_v3  ;;  %3115 = vtanh.f32 %v89_v6  ;;  %v117_v11 = vmul.f32 0.5, %v93_v8  ;;  %v84_v14 = vld [vmem:[%s5637_s0 + $0x28] sm:$0xff]  ;;  %v28_v16 = vld [vmem:[%s5637_s0 + $0xa0] sm:$0xff]  ;;  %v56_v17 = vmul.f32 0.5, %v32_v12  ;;  %v23_v20 = vld [vmem:[%s5637_s0 + $0x10] sm:$0xff] }
   0x5   :  { %3117 = vtanh.f32 %v37_v4  ;;  %v15_v15 = vld [vmem:[%s5636_s1 + $0x8] sm:$0xff]  ;;  %v96_v19 = vmul.f32 0.5, %v84_v14  ;;  %v31_v25 = vld [vmem:[%s5637_s0 + $0xd0] sm:$0xff]  ;;  %v35_v27 = vmul.f32 0.5, %v23_v20  ;;  %v83_v30 = vld [vmem:[%s5637_s0 + $0x18] sm:$0xff] }
   0x6   :  { %3119 = vtanh.f32 %v57_v7  ;;  %v92_v18 = vld [vmem:[%s5637_s0 + $0xe8] sm:$0xff]  ;;  %v27_v32 = vld [vmem:[%s5637_s0 + $0x90] sm:$0xff]  ;;  %v55_v33 = vmul.f32 0.5, %v31_v25  ;;  %v95_v39 = vmul.f32 0.5, %v83_v30  ;;  %v91_v44 = vld [vmem:[%s5637_s0 + $0xd8] sm:$0xff] }
   0x7   :  { %3121 = vtanh.f32 %v97_v9  ;;  %v88_v23 = vld [vmem:[%s5637_s0 + $0xa8] sm:$0xff]  ;;  %v116_v24 = vmul.f32 0.5, %v92_v18  ;;  %v16_v38 = vld [vmem:[%s5636_s1 + $0x10] sm:$0xff]  ;;  %v87_v50 = vld [vmem:[%s5637_s0 + $0x98] sm:$0xff]  ;;  %v115_v54 = vmul.f32 0.5, %v91_v44 }
   0x8   :  { %3123 = vtanh.f32 %v117_v11  ;;  %v17_v0 = vld [vmem:[%s5636_s1 + $0x18] sm:$0xff]  ;;  %v22_v30 = vld [vmem:[%s5637_s0] sm:$0xff] }
   0x9   :  { %v3114_v21 = vpop.eup %3113  ;;  %3125 = vtanh.f32 %v36_v13 }
   0xa   :  { %v3116_v22 = vpop.eup %3115  ;;  %143 = vxpose.xlu0.b32.cont [2/4] (short) %v15_v15, 128  ;;  %3127 = vtanh.f32 %v28_v16 }
   0xb   :  { %v3118_v26 = vpop.eup %3117  ;;  %3129 = vtanh.f32 %v56_v17 }
   0xc   :  { %v3120_v28 = vpop.eup %3119  ;;  %v45_v29 = vmul.f32 0.5, %v3118_v26  ;;  %3131 = vtanh.f32 %v96_v19 }
   0xd   :  { %v3122_v31 = vpop.eup %3121  ;;  %3133 = vtanh.f32 %v88_v23  ;;  %v65_v46 = vmul.f32 0.5, %v3120_v28 }
   0xe   :  { %v3124_v34 = vpop.eup %3123  ;;  %v49_v35 = vadd.f32 0.5, %v45_v29  ;;  %v105_v36 = vmul.f32 0.5, %v3122_v31  ;;  %3135 = vtanh.f32 %v116_v24  ;;  %v82_v31 = vld [vmem:[%s5637_s0 + $0x8] sm:$0xff] }
   0xf   :  { %v3126_v37 = vpop.eup %3125  ;;  %3137 = vtanh.f32 %v35_v27  ;;  %v125_v52 = vmul.f32 0.5, %v3124_v34  ;;  %v69_v58 = vadd.f32 0.5, %v65_v46  ;;  %v26_v34 = vld [vmem:[%s5637_s0 + $0x80] sm:$0xff] }
  0x10   :  { %v3128_v40 = vpop.eup %3127  ;;  %v3815_v41 = vmul.f32 %v3114_v21, %v49_v35  ;;  %v109_v42 = vadd.f32 0.5, %v105_v36  ;;  %v44_v43 = vmul.f32 0.5, %v3126_v37  ;;  %3139 = vtanh.f32 %v27_v32  ;;  %v86_v35 = vld [vmem:[%s5637_s0 + $0x88] sm:$0xff]  ;;  %v30_v37 = vld [vmem:[%s5637_s0 + $0xc0] sm:$0xff] }
  0x11   :  { %v3130_v45 = vpop.eup %3129  ;;  %3141 = vtanh.f32 %v55_v33  ;;  %v129_v1 = vadd.f32 0.5, %v125_v52  ;;  %v34_v32 = vmul.f32 0.5, %v22_v30  ;;  %v94_v33 = vmul.f32 0.5, %v82_v31 }
  0x12   :  { %v3132_v47 = vpop.eup %3131  ;;  %144 = vxpose.xlu0.b32.cont [3/4] (short) %v16_v38, 128  ;;  %3143 = vtanh.f32 %v3815_v41  ;;  %v3821_v48 = vmul.f32 %v3116_v22, %v109_v42  ;;  %v48_v49 = vadd.f32 0.5, %v44_v43  ;;  %v64_v59 = vmul.f32 0.5, %v3130_v45  ;;  %v90_v38 = vld [vmem:[%s5637_s0 + $0xc8] sm:$0xff] }
  0x13   :  { %v3134_v51 = vpop.eup %3133  ;;  %v104_v53 = vmul.f32 0.5, %v3132_v47  ;;  %3145 = vtanh.f32 %v95_v39  ;;  %v54_v42 = vmul.f32 0.5, %v30_v37  ;;  %v114_v43 = vmul.f32 0.5, %v90_v38  ;;  %v2669_v38 = vld [vmem:[%s5637_s0 + $0x110] sm:$0xff] }
  0x14   :  { %v3136_v55 = vpop.eup %3135  ;;  %3147 = vtanh.f32 %v3821_v48  ;;  %v3827_v56 = vmul.f32 %v3128_v40, %v48_v49  ;;  %v68_v8 = vadd.f32 0.5, %v64_v59 }
  0x15   :  { %v3138_v57 = vpop.eup %3137  ;;  %v108_v60 = vadd.f32 0.5, %v104_v53  ;;  %3149 = vtanh.f32 %v87_v50  ;;  %v124_v4 = vmul.f32 0.5, %v3136_v55 }
  0x16   :  { %v3140_v61 = vpop.eup %3139  ;;  %3151 = vtanh.f32 %v3827_v56  ;;  %v43_v62 = vmul.f32 0.5, %v3138_v57 }
  0x17   :  { %v3142_v63 = vpop.eup %3141  ;;  %v3833_v2 = vmul.f32 %v3134_v51, %v108_v60  ;;  %3153 = vtanh.f32 %v115_v54  ;;  %v128_v16 = vadd.f32 0.5, %v124_v4 }
  0x18   :  { %v3144_v3 = vpop.eup %3143  ;;  %v47_v5 = vadd.f32 0.5, %v43_v62  ;;  %v63_v14 = vmul.f32 0.5, %v3142_v63 }
  0x19   :  { %v3146_v6 = vpop.eup %3145  ;;  %v81_v7 = vmul.f32 %v3144_v3, %v69_v58  ;;  %3155 = vtanh.f32 %v3833_v2 }
  0x1a   :  { %v3148_v9 = vpop.eup %3147  ;;  %145 = vxpose.xlu0.b32.end [4/4] (short) %v17_v0, 128  ;;  %v3836_v10 = vmul.f32 %v3140_v61, %v47_v5  ;;  %v103_v11 = vmul.f32 0.5, %v3146_v6  ;;  %v67_v22 = vadd.f32 0.5, %v63_v14 }
  0x1b   :  { %v3150_v12 = vpop.eup %3149  ;;  %235 = vmatpush.msra.mxu0 %v81_v7  ;;  %v141_v13 = vmul.f32 %v3148_v9, %v129_v1  ;;  %3100 = vmatpush.msra.mxu2 %v81_v7 }
  0x1c   :  { %v3152_v15 = vpop.eup %3151  ;;  %3157 = vtanh.f32 %v3836_v10  ;;  %v107_v17 = vadd.f32 0.5, %v103_v11 }
  0x1d   :  { %v3154_v18 = vpop.eup %3153  ;;  %405 = vmatpush.msra.mxu1 %v141_v13  ;;  %v80_v19 = vmul.f32 %v3152_v15, %v68_v8  ;;  %3104 = vmatpush.msra.mxu3 %v141_v13 }
  0x1e   :  { %v3839_v20 = vmul.f32 %v3150_v12, %v107_v17  ;;  %v123_v23 = vmul.f32 0.5, %v3154_v18 }
  0x1f   :  { %v3156_v21 = vpop.eup %3155  ;;  %236 = vmatpush.msra.mxu0 %v80_v19  ;;  %3101 = vmatpush.msra.mxu2 %v80_v19 }
  0x20   :  { %v140_v24 = vmul.f32 %v3156_v21, %v128_v16  ;;  %3159 = vtanh.f32 %v3839_v20  ;;  %v127_v27 = vadd.f32 0.5, %v123_v23 }
  0x21   :  { %3161 = vtanh.f32 %v34_v32 }
  0x22   :  { %v3158_v25 = vpop.eup %3157  ;;  %406 = vmatpush.msra.mxu1 %v140_v24  ;;  %3105 = vmatpush.msra.mxu3 %v140_v24  ;;  %3163 = vtanh.f32 %v94_v33 }
  0x23   :  { %v79_v26 = vmul.f32 %v3158_v25, %v67_v22  ;;  %3165 = vtanh.f32 %v26_v34  ;;  %v2668_v34 = vld [vmem:[%s5637_s0 + $0x100] sm:$0xff] }
  0x24   :  { %3167 = vtanh.f32 %v86_v35  ;;  %v2700_v35 = vld [vmem:[%s5637_s0 + $0x108] sm:$0xff] }
  0x25   :  { %237 = vmatpush.msra.mxu0 %v79_v26  ;;  %3102 = vmatpush.msra.mxu2 %v79_v26  ;;  %3169 = vtanh.f32 %v54_v42 }
  0x26   :  { %v3160_v28 = vpop.eup %3159  ;;  %3171 = vtanh.f32 %v114_v43  ;;  %v2670_v43 = vld [vmem:[%s5637_s0 + $0x120] sm:$0xff] }
  0x27   :  { %v139_v29 = vmul.f32 %v3160_v28, %v127_v27  ;;  %v3162_v36 = vpop.eup %3161 }
  0x28   :  { %v3164_v39 = vpop.eup %3163  ;;  %v42_v40 = vmul.f32 0.5, %v3162_v36 }
  0x29   :  { %407 = vmatpush.msra.mxu1 %v139_v29  ;;  %3106 = vmatpush.msra.mxu3 %v139_v29  ;;  %v102_v44 = vmul.f32 0.5, %v3164_v39  ;;  %v3166_v46 = vpop.eup %3165 }
  0x2a   :  { %v46_v45 = vadd.f32 0.5, %v42_v40  ;;  %v3168_v49 = vpop.eup %3167  ;;  %v2701_v40 = vld [vmem:[%s5637_s0 + $0x118] sm:$0xff] }
  0x2b   :  { %v106_v47 = vadd.f32 0.5, %v102_v44  ;;  %v3170_v52 = vpop.eup %3169 }
  0x2c   :  { %v3860_v50 = vmul.f32 %v3166_v46, %v46_v45  ;;  %v3172_v53 = vpop.eup %3171  ;;  %v62_v54 = vmul.f32 0.5, %v3170_v52  ;;  %v2702_v45 = vld [vmem:[%s5637_s0 + $0x128] sm:$0xff] }
  0x2d   :  { %v3862_v51 = vmul.f32 %v3168_v49, %v106_v47  ;;  %v122_v55 = vmul.f32 0.5, %v3172_v53  ;;  %v2671_v49 = vld [vmem:[%s5637_s0 + $0x130] sm:$0xff] }
  0x2e   :  { %3173 = vtanh.f32 %v3860_v50  ;;  %v66_v57 = vadd.f32 0.5, %v62_v54 }
  0x2f   :  { %3175 = vtanh.f32 %v3862_v51  ;;  %v126_v59 = vadd.f32 0.5, %v122_v55  ;;  %v2703_v55 = vld [vmem:[%s5637_s0 + $0x138] sm:$0xff] }
  0x34   :  { %v3174_v58 = vpop.eup %3173 }
  0x35   :  { %v3176_v60 = vpop.eup %3175  ;;  %v78_v61 = vmul.f32 %v3174_v58, %v66_v57 }
  0x36   :  { %v138_v62 = vmul.f32 %v3176_v60, %v126_v59 }
  0x37   :  { %238 = vmatpush.msra.mxu0 %v78_v61  ;;  %3103 = vmatpush.msra.mxu2 %v78_v61 }
  0x38   :  { %408 = vmatpush.msra.mxu1 %v138_v62  ;;  %3107 = vmatpush.msra.mxu3 %v138_v62 }
  0xa6   :  { %v3866_v63 = vpop.trf.xlu0 }
  0xa7   :  { %2652 = vmatmul.msk.f32.vlgmr.msra.gmra.mxu0 %vm174_vm0, %v3866_v63  ;;  %2684 = vmatmul.msk.f32.vlgmr.msra.gmra.mxu1 %vm174_vm0, %v3866_v63 }
  0xae   :  { %v3872_v0 = vpop.trf.xlu0 }
  0xaf   :  { %2653 = vmatmul.msk.f32.gmra.mxu0 %vm174_vm0, %v3872_v0  ;;  %2685 = vmatmul.msk.f32.gmra.mxu1 %vm174_vm0, %v3872_v0 }
  0xb6   :  { %v3878_v1 = vpop.trf.xlu0 }
  0xb7   :  { %2654 = vmatmul.msk.f32.gmra.mxu0 %vm174_vm0, %v3878_v1  ;;  %2686 = vmatmul.msk.f32.gmra.mxu1 %vm174_vm0, %v3878_v1 }
  0xbe   :  { %v3884_v3 = vpop.trf.xlu0 }
  0xbf   :  { %2655 = vmatmul.msk.f32.gmra.mxu0 %vm174_vm0, %v3884_v3  ;;  %2687 = vmatmul.msk.f32.gmra.mxu1 %vm174_vm0, %v3884_v3 }
  0xc6   :  { %v3890_v4 = vpop.trf.xlu0 }
  0xc7   :  { %2656 = vmatmul.msk.f32.gmra.mxu0 %vm174_vm0, %v3890_v4  ;;  %2688 = vmatmul.msk.f32.gmra.mxu1 %vm174_vm0, %v3890_v4 }
  0xce   :  { %v3896_v5 = vpop.trf.xlu0 }
  0xcf   :  { %2657 = vmatmul.msk.f32.gmra.mxu0 %vm174_vm0, %v3896_v5  ;;  %2689 = vmatmul.msk.f32.gmra.mxu1 %vm174_vm0, %v3896_v5 }
  0xd6   :  { %v3902_v6 = vpop.trf.xlu0 }
  0xd7   :  { %2658 = vmatmul.msk.f32.gmra.mxu0 %vm174_vm0, %v3902_v6  ;;  %2690 = vmatmul.msk.f32.gmra.mxu1 %vm174_vm0, %v3902_v6 }
  0xde   :  { %v3908_v7 = vpop.trf.xlu0 }
  0xdf   :  { %2659 = vmatmul.msk.f32.gmra.mxu0 %vm174_vm0, %v3908_v7  ;;  %2691 = vmatmul.msk.f32.gmra.mxu1 %vm174_vm0, %v3908_v7 }
  0xe6   :  { %v3914_v8 = vpop.trf.xlu0 }
  0xe7   :  { %2660 = vmatmul.msk.f32.vlgmr.msra.gmra.mxu2 %vm174_vm0, %v3914_v8  ;;  %2692 = vmatmul.msk.f32.vlgmr.msra.gmra.mxu3 %vm174_vm0, %v3914_v8 }
  0xee   :  { %v3920_v9 = vpop.trf.xlu0 }
  0xef   :  { %2661 = vmatmul.msk.f32.gmra.mxu2 %vm174_vm0, %v3920_v9  ;;  %2693 = vmatmul.msk.f32.gmra.mxu3 %vm174_vm0, %v3920_v9 }
  0xf6   :  { %v3926_v11 = vpop.trf.xlu0 }
  0xf7   :  { %2662 = vmatmul.msk.f32.gmra.mxu2 %vm174_vm0, %v3926_v11  ;;  %2694 = vmatmul.msk.f32.gmra.mxu3 %vm174_vm0, %v3926_v11 }
  0xfe   :  { %v3932_v12 = vpop.trf.xlu0 }
  0xff   :  { %2663 = vmatmul.msk.f32.gmra.mxu2 %vm174_vm0, %v3932_v12  ;;  %2695 = vmatmul.msk.f32.gmra.mxu3 %vm174_vm0, %v3932_v12 }
 0x106   :  { %v3938_v13 = vpop.trf.xlu0 }
 0x107   :  { %5664 = vst [vmem:[#allocation2_spill] sm:$0xff] %v3938_v13  ;;  %2664 = vmatmul.msk.f32.gmra.mxu2 %vm174_vm0, %v3938_v13  ;;  %2696 = vmatmul.msk.f32.gmra.mxu3 %vm174_vm0, %v3938_v13 }
 0x10e   :  { %v3944_v14 = vpop.trf.xlu0 }
 0x10f   :  { %5665 = vst [vmem:[#allocation3_spill] sm:$0xff] %v3944_v14  ;;  %2665 = vmatmul.msk.f32.gmra.mxu2 %vm174_vm0, %v3944_v14  ;;  %2697 = vmatmul.msk.f32.gmra.mxu3 %vm174_vm0, %v3944_v14 }
 0x116   :  { %v3950_v15 = vpop.trf.xlu0 }
 0x117   :  { %5666 = vst [vmem:[#allocation4_spill] sm:$0xff] %v3950_v15  ;;  %2666 = vmatmul.msk.f32.gmra.mxu2 %vm174_vm0, %v3950_v15  ;;  %2698 = vmatmul.msk.f32.gmra.mxu3 %vm174_vm0, %v3950_v15 }
 0x11e   :  { %v3956_v16 = vpop.trf.xlu0 }
 0x11f   :  { %5667 = vst [vmem:[#allocation5_spill] sm:$0xff] %v3956_v16  ;;  %2667 = vmatmul.msk.f32.gmra.mxu2 %vm174_vm0, %v3956_v16  ;;  %2699 = vmatmul.msk.f32.gmra.mxu3 %vm174_vm0, %v3956_v16 }
 0x124   :  { %v240_v17 = vpop.f32.mrf.mxu0  ;;  %v410_v18 = vpop.f32.mrf.mxu1 }
 0x125   :  { %v305_v39 = vadd.f32 %v2668_v34, %v240_v17  ;;  %v474_v42 = vadd.f32 %v2700_v35, %v410_v18 }
 0x127   :  { %v321_v53 = vmul.f32 0.5, %v305_v39  ;;  %v490_v57 = vmul.f32 0.5, %v474_v42  ;;  %v2675_v39 = vld [vmem:[%s5637_s0 + $0x170] sm:$0xff]  ;;  %v2674_v42 = vld [vmem:[%s5637_s0 + $0x160] sm:$0xff] }
 0x129   :  { %3177 = vtanh.f32 %v321_v53 }
 0x12a   :  { %3179 = vtanh.f32 %v490_v57 }
 0x12c   :  { %v243_v19 = vpop.f32.mrf.mxu0  ;;  %v413_v21 = vpop.f32.mrf.mxu1 }
 0x12d   :  { %v306_v44 = vadd.f32 %v2669_v38, %v243_v19  ;;  %v475_v47 = vadd.f32 %v2701_v40, %v413_v21 }
 0x12f   :  { %v322_v59 = vmul.f32 0.5, %v306_v44  ;;  %v491_v17 = vmul.f32 0.5, %v475_v47  ;;  %v3178_v44 = vpop.eup %3177  ;;  %v2707_v47 = vld [vmem:[%s5637_s0 + $0x178] sm:$0xff] }
 0x130   :  { %v3180_v53 = vpop.eup %3179 }
 0x131   :  { %3181 = vtanh.f32 %v322_v59 }
 0x132   :  { %3183 = vtanh.f32 %v491_v17 }
 0x134   :  { %v246_v22 = vpop.f32.mrf.mxu0  ;;  %v416_v23 = vpop.f32.mrf.mxu1 }
 0x135   :  { %v307_v54 = vadd.f32 %v2670_v43, %v246_v22  ;;  %v476_v58 = vadd.f32 %v2702_v45, %v416_v23  ;;  %v2672_v22 = vld [vmem:[%s5637_s0 + $0x140] sm:$0xff]  ;;  %v2704_v23 = vld [vmem:[%s5637_s0 + $0x148] sm:$0xff] }
 0x137   :  { %v323_v19 = vmul.f32 0.5, %v307_v54  ;;  %v492_v21 = vmul.f32 0.5, %v476_v58  ;;  %v2706_v58 = vld [vmem:[%s5637_s0 + $0x168] sm:$0xff] }
 0x139   :  { %3185 = vtanh.f32 %v323_v19 }
 0x13a   :  { %3187 = vtanh.f32 %v492_v21 }
 0x13c   :  { %v249_v24 = vpop.f32.mrf.mxu0  ;;  %v419_v25 = vpop.f32.mrf.mxu1 }
 0x13d   :  { %v308_v60 = vadd.f32 %v2671_v49, %v249_v24  ;;  %v477_v18 = vadd.f32 %v2703_v55, %v419_v25  ;;  %v2673_v25 = vld [vmem:[%s5637_s0 + $0x150] sm:$0xff] }
 0x13f   :  { %v324_v34 = vmul.f32 0.5, %v308_v60  ;;  %v493_v24 = vmul.f32 0.5, %v477_v18  ;;  %v2705_v60 = vld [vmem:[%s5637_s0 + $0x158] sm:$0xff] }
 0x141   :  { %3189 = vtanh.f32 %v324_v34 }
 0x142   :  { %3191 = vtanh.f32 %v493_v24 }
 0x144   :  { %v252_v26 = vpop.f32.mrf.mxu0  ;;  %v422_v29 = vpop.f32.mrf.mxu1 }
 0x145   :  { %v309_v35 = vadd.f32 %v2672_v22, %v252_v26  ;;  %v478_v40 = vadd.f32 %v2704_v23, %v422_v29  ;;  %v3182_v29 = vpop.eup %3181 }
 0x146   :  { %v3184_v59 = vpop.eup %3183 }
 0x147   :  { %v337_v55 = vmul.f32 0.5, %v309_v35  ;;  %v3186_v18 = vpop.eup %3185  ;;  %v329_v35 = vmul.f32 0.5, %v3178_v44  ;;  %v2679_v44 = vld [vmem:[%s5637_s0 + $0x1b0] sm:$0xff] }
 0x148   :  { %v3188_v21 = vpop.eup %3187 }
 0x149   :  { %v3190_v23 = vpop.eup %3189  ;;  %3193 = vtanh.f32 %v337_v55 }
 0x14c   :  { %v255_v32 = vpop.f32.mrf.mxu0  ;;  %v3970_v33 = vpop.f32.mrf.mxu1 }
 0x14d   :  { %v310_v45 = vadd.f32 %v2673_v25, %v255_v32  ;;  %v506_v32 = vmul.f32 0.5, %v478_v40  ;;  %v3192_v25 = vpop.eup %3191  ;;  %v330_v40 = vmul.f32 0.5, %v3182_v29 }
 0x14e   :  { %v501_v29 = vmul.f32 0.5, %v3192_v25 }
 0x14f   :  { %v338_v19 = vmul.f32 0.5, %v310_v45  ;;  %3195 = vtanh.f32 %v506_v32  ;;  %v2678_v32 = vld [vmem:[%s5637_s0 + $0x1a0] sm:$0xff] }
 0x151   :  { %3197 = vtanh.f32 %v338_v19 }
 0x154   :  { %v258_v46 = vpop.f32.mrf.mxu0  ;;  %v428_v52 = vpop.f32.mrf.mxu1 }
 0x155   :  { %v311_v57 = vadd.f32 %v2674_v42, %v258_v46  ;;  %v480_v22 = vadd.f32 %v2706_v58, %v428_v52  ;;  %v479_v46 = vadd.f32 %v2705_v60, %v3970_v33  ;;  %v499_v42 = vmul.f32 0.5, %v3184_v59  ;;  %v3194_v60 = vpop.eup %3193 }
 0x156   :  { %v4046_v58 = vadd.f32 0.5, %v329_v35 }
 0x157   :  { %v339_v24 = vmul.f32 0.5, %v311_v57  ;;  %v508_v33 = vmul.f32 0.5, %v480_v22  ;;  %v507_v55 = vmul.f32 0.5, %v479_v46  ;;  %v2711_v57 = vld [vmem:[%s5637_s0 + $0x1b8] sm:$0xff]  ;;  %v4056_v19 = vadd.f32 0.5, %v499_v42 }
 0x15c   :  { %v261_v38 = vpop.f32.mrf.mxu0  ;;  %v431_v43 = vpop.f32.mrf.mxu1 }
 0x15d   :  { %v312_v54 = vadd.f32 %v2675_v39, %v261_v38  ;;  %v481_v17 = vadd.f32 %v2707_v47, %v431_v43  ;;  %v498_v39 = vmul.f32 0.5, %v3180_v53  ;;  %v2676_v43 = vld [vmem:[%s5637_s0 + $0x180] sm:$0xff]  ;;  %v331_v47 = vmul.f32 0.5, %v3186_v18 }
 0x15e   :  { %v332_v53 = vmul.f32 0.5, %v3190_v23  ;;  %v4054_v18 = vadd.f32 0.5, %v330_v40  ;;  %v2709_v40 = vld [vmem:[%s5637_s0 + $0x198] sm:$0xff] }
 0x15f   :  { %v340_v34 = vmul.f32 0.5, %v312_v54  ;;  %v509_v38 = vmul.f32 0.5, %v481_v17  ;;  %v500_v54 = vmul.f32 0.5, %v3188_v21  ;;  %v4052_v17 = vadd.f32 0.5, %v498_v39  ;;  %v2710_v21 = vld [vmem:[%s5637_s0 + $0x1a8] sm:$0xff] }
 0x160   :  { %v4065_v23 = vadd.f32 0.5, %v331_v47  ;;  %v4078_v39 = vadd.f32 0.5, %v501_v29  ;;  %v345_v47 = vmul.f32 0.5, %v3194_v60 }
 0x161   :  { %3199 = vtanh.f32 %v340_v34  ;;  %v3196_v34 = vpop.eup %3195  ;;  %v4067_v46 = vadd.f32 0.5, %v500_v54  ;;  %v2708_v54 = vld [vmem:[%s5637_s0 + $0x188] sm:$0xff] }
 0x162   :  { %3201 = vtanh.f32 %v339_v24  ;;  %v2677_v24 = vld [vmem:[%s5637_s0 + $0x190] sm:$0xff]  ;;  %v3198_v35 = vpop.eup %3197  ;;  %v514_v29 = vmul.f32 0.5, %v3196_v34  ;;  %v349_v13 = vadd.f32 0.5, %v345_v47 }
 0x163   :  { %3203 = vtanh.f32 %v509_v38  ;;  %v4076_v38 = vadd.f32 0.5, %v332_v53  ;;  %v2714_v53 = vld [vmem:[%s5637_s0 + $0x1e8] sm:$0xff] }
 0x164   :  { %3205 = vtanh.f32 %v508_v33 }
 0x165   :  { %3207 = vtanh.f32 %v507_v55 }
 0x16a   :  { %v3962_v27 = vpop.f32.mrf.mxu2  ;;  %v3964_v28 = vpop.f32.mrf.mxu3 }
 0x16b   :  { %v313_v59 = vadd.f32 %v2676_v43, %v3962_v27  ;;  %v2680_v27 = vld [vmem:[%s5637_s0 + $0x1c0] sm:$0xff]  ;;  %v3200_v43 = vpop.eup %3199 }
 0x16d   :  { %3209 = vtanh.f32 %v313_v59  ;;  %v2681_v59 = vld [vmem:[%s5637_s0 + $0x1d0] sm:$0xff] }
 0x172   :  { %v3966_v30 = vpop.f32.mrf.mxu2  ;;  %v3968_v31 = vpop.f32.mrf.mxu3 }
 0x173   :  { %v314_v55 = vadd.f32 %v2677_v24, %v3966_v30  ;;  %v348_v30 = vmul.f32 0.5, %v3200_v43 }
 0x17a   :  { %v3978_v36 = vpop.f32.mrf.mxu2  ;;  %v3980_v37 = vpop.f32.mrf.mxu3 }
 0x17b   :  { %v315_v42 = vadd.f32 %v2678_v32, %v3978_v36  ;;  %v484_v33 = vadd.f32 %v2710_v21, %v3980_v37  ;;  %v3202_v36 = vpop.eup %3201  ;;  %v346_v21 = vmul.f32 0.5, %v3198_v35 }
 0x17c   :  { %v3204_v37 = vpop.eup %3203 }
 0x17d   :  { %v3206_v24 = vpop.eup %3205  ;;  %v517_v14 = vmul.f32 0.5, %v3204_v37 }
 0x17e   :  { %v3208_v35 = vpop.eup %3207  ;;  %v516_v43 = vmul.f32 0.5, %v3206_v24 }
 0x17f   :  { %v515_v47 = vmul.f32 0.5, %v3208_v35 }
 0x181   :  { %v519_v35 = vadd.f32 0.5, %v515_v47 }
 0x182   :  { %v4000_v61 = vpop.f32.mrf.mxu2  ;;  %v4002_v62 = vpop.f32.mrf.mxu3 }
 0x183   :  { %v316_v22 = vadd.f32 %v2679_v44, %v4000_v61  ;;  %v485_v25 = vadd.f32 %v2711_v57, %v4002_v62  ;;  %v2712_v61 = vld [vmem:[%s5637_s0 + $0x1c8] sm:$0xff]  ;;  %v2682_v62 = vld [vmem:[%s5637_s0 + $0x1e0] sm:$0xff] }
 0x185   :  { %3211 = vtanh.f32 %v316_v22  ;;  %v482_v22 = vadd.f32 %v2708_v54, %v3964_v28  ;;  %v352_v54 = vadd.f32 0.5, %v348_v30 }
 0x186   :  { %3213 = vtanh.f32 %v485_v25 }
 0x187   :  { %3215 = vtanh.f32 %v315_v42 }
 0x188   :  { %3217 = vtanh.f32 %v484_v33 }
 0x189   :  { %3219 = vtanh.f32 %v314_v55 }
 0x18a   :  { %v4022_v26 = vpop.f32.mrf.mxu2  ;;  %v4024_v49 = vpop.f32.mrf.mxu3 }
 0x18b   :  { %v317_v44 = vadd.f32 %v2680_v27, %v4022_v26  ;;  %v486_v57 = vadd.f32 %v2712_v61, %v4024_v49  ;;  %v483_v26 = vadd.f32 %v2709_v40, %v3968_v31  ;;  %v2713_v27 = vld [vmem:[%s5637_s0 + $0x1d8] sm:$0xff]  ;;  %v347_v61 = vmul.f32 0.5, %v3202_v36  ;;  %v3210_v40 = vpop.eup %3209 }
 0x18c   :  { %v3212_v42 = vpop.eup %3211 }
 0x18d   :  { %v357_v16 = vmul.f32 0.5, %v317_v44  ;;  %v526_v31 = vmul.f32 0.5, %v486_v57  ;;  %3221 = vtanh.f32 %v483_v26  ;;  %v2715_v44 = vld [vmem:[%s5637_s0 + $0x1f8] sm:$0xff]  ;;  %v351_v55 = vadd.f32 0.5, %v347_v61 }
 0x18e   :  { %3223 = vtanh.f32 %v482_v22  ;;  %v521_v57 = vadd.f32 0.5, %v517_v14  ;;  %v380_v26 = vmul.f32 %v3212_v42, %v4076_v38  ;;  %v520_v22 = vadd.f32 0.5, %v516_v43 }
 0x18f   :  { %3225 = vtanh.f32 %v357_v16 }
 0x190   :  { %3227 = vtanh.f32 %v526_v31  ;;  %v545_v38 = vmul.f32 %v521_v57, %v3821_v48 }
 0x192   :  { %v4036_v45 = vpop.f32.mrf.mxu2  ;;  %v4038_v52 = vpop.f32.mrf.mxu3 }
 0x193   :  { %v318_v15 = vadd.f32 %v2681_v59, %v4036_v45  ;;  %v487_v25 = vadd.f32 %v2713_v27, %v4038_v52  ;;  %v2683_v45 = vld [vmem:[%s5637_s0 + $0x1f0] sm:$0xff]  ;;  %v3214_v52 = vpop.eup %3213 }
 0x194   :  { %v549_v16 = vmul.f32 %v3214_v52, %v4078_v39 }
 0x195   :  { %v358_v36 = vmul.f32 0.5, %v318_v15  ;;  %v527_v59 = vmul.f32 0.5, %v487_v25 }
 0x19a   :  { %v282_v32 = vpop.f32.mrf.mxu2  ;;  %v452_v60 = vpop.f32.mrf.mxu3 }
 0x19b   :  { %v319_v34 = vadd.f32 %v2682_v62, %v282_v32  ;;  %v488_v49 = vadd.f32 %v2714_v53, %v452_v60  ;;  %v4107_v62 = vadd.f32 0.5, %v514_v29  ;;  %v350_v53 = vadd.f32 0.5, %v346_v21  ;;  %v3216_v29 = vpop.eup %3215 }
 0x19c   :  { %v3218_v37 = vpop.eup %3217  ;;  %v376_v21 = vmul.f32 %v352_v54, %v3815_v41  ;;  %v379_v14 = vmul.f32 %v3216_v29, %v4065_v23  ;;  %v544_v23 = vmul.f32 %v520_v22, %v3833_v2  ;;  %v4127_v54 = vadd.f32 %v549_v16, %v545_v38 }
 0x19d   :  { %v359_v28 = vmul.f32 0.5, %v319_v34  ;;  %v528_v33 = vmul.f32 0.5, %v488_v49  ;;  %v3220_v30 = vpop.eup %3219  ;;  %v548_v31 = vmul.f32 %v3218_v37, %v4067_v46  ;;  %v374_v46 = vmul.f32 %v350_v53, %v3836_v10 }
 0x19e   :  { %v3222_v15 = vpop.eup %3221  ;;  %v378_v41 = vmul.f32 %v3220_v30, %v4054_v18  ;;  %v4123_v39 = vadd.f32 %v380_v26, %v376_v21  ;;  %v543_v18 = vmul.f32 %v519_v35, %v3839_v20  ;;  %v542_v10 = vmul.f32 %v4107_v62, %v3862_v51 }
 0x19f   :  { %3229 = vtanh.f32 %v359_v28  ;;  %v3224_v61 = vpop.eup %3223  ;;  %v375_v28 = vmul.f32 %v351_v55, %v3827_v56  ;;  %v547_v43 = vmul.f32 %v3222_v15, %v4056_v19  ;;  %v4135_v52 = vadd.f32 %v548_v31, %v544_v23 }
 0x1a0   :  { %3231 = vtanh.f32 %v528_v33  ;;  %v3226_v25 = vpop.eup %3225  ;;  %v377_v33 = vmul.f32 %v3210_v40, %v4046_v58  ;;  %v373_v19 = vmul.f32 %v349_v13, %v3860_v50  ;;  %v4139_v47 = vadd.f32 %v378_v41, %v374_v46  ;;  %v5669_v46 = vld [vmem:[#allocation3_spill] sm:$0xff] }
 0x1a1   :  { %3233 = vtanh.f32 %v358_v36  ;;  %v3228_v42 = vpop.eup %3227  ;;  %v4144_v40 = vadd.f32 %v547_v43, %v543_v18 }
 0x1a2   :  { %v285_v32 = vpop.f32.mrf.mxu2  ;;  %v455_v60 = vpop.f32.mrf.mxu3  ;;  %3235 = vtanh.f32 %v527_v59  ;;  %v4147_v53 = vadd.f32 %v377_v33, %v373_v19  ;;  %v5670_v33 = vld [vmem:[#allocation4_spill] sm:$0xff] }
 0x1a3   :  { %v320_v27 = vadd.f32 %v2683_v45, %v285_v32  ;;  %v489_v34 = vadd.f32 %v2715_v44, %v455_v60  ;;  %v4131_v45 = vadd.f32 %v379_v14, %v375_v28  ;;  %v546_v44 = vmul.f32 %v3224_v61, %v4052_v17 }
 0x1a4   :  { %v365_v32 = vmul.f32 0.5, %v3226_v25 }
 0x1a5   :  { %v360_v49 = vmul.f32 0.5, %v320_v27  ;;  %v529_v24 = vmul.f32 0.5, %v489_v34  ;;  %v3230_v48 = vpop.eup %3229  ;;  %v4150_v55 = vadd.f32 %v546_v44, %v542_v10  ;;  %v534_v27 = vmul.f32 0.5, %v3228_v42 }
 0x1a6   :  { %v3232_v56 = vpop.eup %3231  ;;  %v367_v58 = vmul.f32 0.5, %v3230_v48  ;;  %v5668_v48 = vld [vmem:[#allocation2_spill] sm:$0xff] }
 0x1a7   :  { %3237 = vtanh.f32 %v360_v49  ;;  %v3234_v2 = vpop.eup %3233  ;;  %v536_v17 = vmul.f32 0.5, %v3232_v56  ;;  %v538_v38 = vadd.f32 0.5, %v534_v27  ;;  %v5671_v56 = vld [vmem:[#allocation5_spill] sm:$0xff]  ;;  %v2732_v27 = vld [vmem:[%s5637_s0 + $0x200] sm:$0xff] }
 0x1a8   :  { %3239 = vtanh.f32 %v529_v24  ;;  %v3236_v36 = vpop.eup %3235  ;;  %v366_v29 = vmul.f32 0.5, %v3234_v2  ;;  %v371_v59 = vadd.f32 0.5, %v367_v58  ;;  %v369_v24 = vadd.f32 0.5, %v365_v32 }
 0x1a9   :  { %3241 = vtanh.f32 %v4123_v39  ;;  %v535_v51 = vmul.f32 0.5, %v3236_v36  ;;  %v540_v26 = vadd.f32 0.5, %v536_v17 }
 0x1aa   :  { %3243 = vtanh.f32 %v4127_v54  ;;  %v370_v22 = vadd.f32 0.5, %v366_v29 }
 0x1ab   :  { %3245 = vtanh.f32 %v4131_v45  ;;  %v539_v15 = vadd.f32 0.5, %v535_v51 }
 0x1ac   :  { %3247 = vtanh.f32 %v4135_v52 }
 0x1ad   :  { %v3238_v20 = vpop.eup %3237  ;;  %3249 = vtanh.f32 %v4139_v47 }
 0x1ae   :  { %v3240_v50 = vpop.eup %3239  ;;  %v368_v13 = vmul.f32 0.5, %v3238_v20  ;;  %3251 = vtanh.f32 %v4144_v40 }
 0x1af   :  { %v537_v57 = vmul.f32 0.5, %v3240_v50  ;;  %v3242_v60 = vpop.eup %3241  ;;  %3253 = vtanh.f32 %v4147_v53 }
 0x1b0   :  { %v372_v62 = vadd.f32 0.5, %v368_v13  ;;  %v3244_v34 = vpop.eup %3243  ;;  %3255 = vtanh.f32 %v4150_v55 }
 0x1b1   :  { %v541_v37 = vadd.f32 0.5, %v537_v57  ;;  %v3246_v21 = vpop.eup %3245 }
 0x1b2   :  { %v392_v30 = vmul.f32 %v3242_v60, %v372_v62  ;;  %v3248_v14 = vpop.eup %3247  ;;  %v391_v49 = vmul.f32 %v3246_v21, %v371_v59 }
 0x1b3   :  { %v561_v16 = vmul.f32 %v3244_v34, %v541_v37  ;;  %v3250_v61 = vpop.eup %3249  ;;  %v560_v35 = vmul.f32 %v3248_v14, %v540_v26  ;;  %v2764_v34 = vld [vmem:[%s5637_s0 + $0x208] sm:$0xff] }
 0x1b4   :  { %574 = vmatpush.msrb.mxu2 %v392_v30  ;;  %v3252_v31 = vpop.eup %3251  ;;  %v390_v25 = vmul.f32 %v3250_v61, %v370_v22  ;;  %v2733_v22 = vld [vmem:[%s5637_s0 + $0x210] sm:$0xff]  ;;  %v2766_v61 = vld [vmem:[%s5637_s0 + $0x228] sm:$0xff] }
 0x1b5   :  { %744 = vmatpush.msrb.mxu3 %v561_v16  ;;  %v3254_v28 = vpop.eup %3253  ;;  %v559_v41 = vmul.f32 %v3252_v31, %v539_v15  ;;  %v2765_v15 = vld [vmem:[%s5637_s0 + $0x218] sm:$0xff] }
 0x1b6   :  { %575 = vmatpush.msrb.mxu2 %v391_v49  ;;  %v3256_v42 = vpop.eup %3255  ;;  %v389_v23 = vmul.f32 %v3254_v28, %v369_v24  ;;  %v2734_v49 = vld [vmem:[%s5637_s0 + $0x220] sm:$0xff]  ;;  %v2767_v28 = vld [vmem:[%s5637_s0 + $0x238] sm:$0xff] }
 0x1b7   :  { %745 = vmatpush.msrb.mxu3 %v560_v35  ;;  %v558_v43 = vmul.f32 %v3256_v42, %v538_v38  ;;  %v2735_v38 = vld [vmem:[%s5637_s0 + $0x230] sm:$0xff] }
 0x1b8   :  { %576 = vmatpush.msrb.mxu2 %v390_v25 }
 0x1b9   :  { %746 = vmatpush.msrb.mxu3 %v559_v41 }
 0x1ba   :  { %577 = vmatpush.msrb.mxu2 %v389_v23 }
 0x1bb   :  { %747 = vmatpush.msrb.mxu3 %v558_v43  ;;  %2716 = vmatmul.msk.f32.vlgmr.msrb.gmra.mxu2 %vm174_vm0, %v3866_v63 }
 0x1bc   :  { %2748 = vmatmul.msk.f32.vlgmr.msrb.gmra.mxu3 %vm174_vm0, %v3866_v63 }
 0x1c3   :  { %2717 = vmatmul.msk.f32.gmra.mxu2 %vm174_vm0, %v3872_v0 }
 0x1c4   :  { %2749 = vmatmul.msk.f32.gmra.mxu3 %vm174_vm0, %v3872_v0 }
 0x1cb   :  { %2718 = vmatmul.msk.f32.gmra.mxu2 %vm174_vm0, %v3878_v1 }
 0x1cc   :  { %2750 = vmatmul.msk.f32.gmra.mxu3 %vm174_vm0, %v3878_v1 }
 0x1d3   :  { %2719 = vmatmul.msk.f32.gmra.mxu2 %vm174_vm0, %v3884_v3 }
 0x1d4   :  { %2751 = vmatmul.msk.f32.gmra.mxu3 %vm174_vm0, %v3884_v3 }
 0x1db   :  { %2720 = vmatmul.msk.f32.gmra.mxu2 %vm174_vm0, %v3890_v4 }
 0x1dc   :  { %2752 = vmatmul.msk.f32.gmra.mxu3 %vm174_vm0, %v3890_v4 }
 0x1e3   :  { %2721 = vmatmul.msk.f32.gmra.mxu2 %vm174_vm0, %v3896_v5 }
 0x1e4   :  { %2753 = vmatmul.msk.f32.gmra.mxu3 %vm174_vm0, %v3896_v5 }
 0x1eb   :  { %2722 = vmatmul.msk.f32.gmra.mxu2 %vm174_vm0, %v3902_v6 }
 0x1ec   :  { %2754 = vmatmul.msk.f32.gmra.mxu3 %vm174_vm0, %v3902_v6 }
 0x1f3   :  { %2723 = vmatmul.msk.f32.gmra.mxu2 %vm174_vm0, %v3908_v7 }
 0x1f4   :  { %2755 = vmatmul.msk.f32.gmra.mxu3 %vm174_vm0, %v3908_v7 }
 0x1fb   :  { %2724 = vmatmul.msk.f32.gmra.mxu2 %vm174_vm0, %v3914_v8 }
 0x1fc   :  { %2756 = vmatmul.msk.f32.gmra.mxu3 %vm174_vm0, %v3914_v8 }
 0x203   :  { %2725 = vmatmul.msk.f32.gmra.mxu2 %vm174_vm0, %v3920_v9 }
 0x204   :  { %2757 = vmatmul.msk.f32.gmra.mxu3 %vm174_vm0, %v3920_v9 }
 0x20b   :  { %2726 = vmatmul.msk.f32.gmra.mxu2 %vm174_vm0, %v3926_v11 }
 0x20c   :  { %2758 = vmatmul.msk.f32.gmra.mxu3 %vm174_vm0, %v3926_v11 }
 0x213   :  { %2727 = vmatmul.msk.f32.gmra.mxu2 %vm174_vm0, %v3932_v12 }
 0x214   :  { %2759 = vmatmul.msk.f32.gmra.mxu3 %vm174_vm0, %v3932_v12 }
 0x21b   :  { %2728 = vmatmul.msk.f32.gmra.mxu2 %vm174_vm0, %v5668_v48 }
 0x21c   :  { %2760 = vmatmul.msk.f32.gmra.mxu3 %vm174_vm0, %v5668_v48 }
 0x223   :  { %2729 = vmatmul.msk.f32.gmra.mxu2 %vm174_vm0, %v5669_v46 }
 0x224   :  { %2761 = vmatmul.msk.f32.gmra.mxu3 %vm174_vm0, %v5669_v46 }
 0x22b   :  { %2730 = vmatmul.msk.f32.gmra.mxu2 %vm174_vm0, %v5670_v33 }
 0x22c   :  { %2762 = vmatmul.msk.f32.gmra.mxu3 %vm174_vm0, %v5670_v33 }
 0x233   :  { %2731 = vmatmul.msk.f32.gmra.mxu2 %vm174_vm0, %v5671_v56 }
 0x234   :  { %2763 = vmatmul.msk.f32.gmra.mxu3 %vm174_vm0, %v5671_v56 }
 0x23e   :  { %v579_v18 = vpop.f32.mrf.mxu2 }
 0x23f   :  { %v749_v44 = vpop.f32.mrf.mxu3  ;;  %v644_v16 = vadd.f32 %v2732_v27, %v579_v18 }
 0x240   :  { %v813_v14 = vadd.f32 %v2764_v34, %v749_v44 }
 0x241   :  { %v660_v31 = vmul.f32 0.5, %v644_v16 }
 0x242   :  { %v829_v41 = vmul.f32 0.5, %v813_v14 }
 0x243   :  { %3257 = vtanh.f32 %v660_v31 }
 0x244   :  { %3259 = vtanh.f32 %v829_v41 }
 0x246   :  { %v582_v2 = vpop.f32.mrf.mxu2 }
 0x247   :  { %v752_v19 = vpop.f32.mrf.mxu3  ;;  %v645_v24 = vadd.f32 %v2733_v22, %v582_v2 }
 0x248   :  { %v814_v35 = vadd.f32 %v2765_v15, %v752_v19  ;;  %v2769_v15 = vld [vmem:[%s5637_s0 + $0x258] sm:$0xff] }
 0x249   :  { %v661_v23 = vmul.f32 0.5, %v645_v24  ;;  %v3258_v24 = vpop.eup %3257 }
 0x24a   :  { %v830_v44 = vmul.f32 0.5, %v814_v35  ;;  %v2771_v35 = vld [vmem:[%s5637_s0 + $0x278] sm:$0xff] }
 0x24b   :  { %3261 = vtanh.f32 %v661_v23 }
 0x24c   :  { %3263 = vtanh.f32 %v830_v44 }
 0x24e   :  { %v585_v36 = vpop.f32.mrf.mxu2 }
 0x24f   :  { %v755_v10 = vpop.f32.mrf.mxu3  ;;  %v646_v25 = vadd.f32 %v2734_v49, %v585_v36  ;;  %v2736_v36 = vld [vmem:[%s5637_s0 + $0x240] sm:$0xff]  ;;  %v2739_v49 = vld [vmem:[%s5637_s0 + $0x270] sm:$0xff] }
 0x250   :  { %v815_v42 = vadd.f32 %v2766_v61, %v755_v10  ;;  %v2768_v10 = vld [vmem:[%s5637_s0 + $0x248] sm:$0xff] }
 0x251   :  { %v662_v19 = vmul.f32 0.5, %v646_v25 }
 0x252   :  { %v831_v34 = vmul.f32 0.5, %v815_v42 }
 0x253   :  { %3265 = vtanh.f32 %v662_v19 }
 0x254   :  { %3267 = vtanh.f32 %v831_v34 }
 0x256   :  { %v588_v58 = vpop.f32.mrf.mxu2 }
 0x257   :  { %v758_v20 = vpop.f32.mrf.mxu3  ;;  %v647_v43 = vadd.f32 %v2735_v38, %v588_v58 }
 0x258   :  { %v816_v2 = vadd.f32 %v2767_v28, %v758_v20  ;;  %v2737_v20 = vld [vmem:[%s5637_s0 + $0x250] sm:$0xff] }
 0x259   :  { %v663_v22 = vmul.f32 0.5, %v647_v43 }
 0x25a   :  { %v832_v58 = vmul.f32 0.5, %v816_v2 }
 0x25b   :  { %3269 = vtanh.f32 %v663_v22 }
 0x25c   :  { %3271 = vtanh.f32 %v832_v58 }
 0x25e   :  { %v591_v17 = vpop.f32.mrf.mxu2 }
 0x25f   :  { %v761_v50 = vpop.f32.mrf.mxu3  ;;  %v648_v16 = vadd.f32 %v2736_v36, %v591_v17  ;;  %v3260_v17 = vpop.eup %3259 }
 0x260   :  { %v817_v14 = vadd.f32 %v2768_v10, %v761_v50  ;;  %v2738_v50 = vld [vmem:[%s5637_s0 + $0x260] sm:$0xff]  ;;  %v3262_v28 = vpop.eup %3261  ;;  %v837_v56 = vmul.f32 0.5, %v3260_v17 }
 0x261   :  { %v676_v41 = vmul.f32 0.5, %v648_v16  ;;  %v3264_v23 = vpop.eup %3263  ;;  %v668_v16 = vmul.f32 0.5, %v3258_v24  ;;  %v2743_v24 = vld [vmem:[%s5637_s0 + $0x2b0] sm:$0xff] }
 0x262   :  { %v845_v43 = vmul.f32 0.5, %v817_v14  ;;  %v3266_v2 = vpop.eup %3265 }
 0x263   :  { %v3268_v34 = vpop.eup %3267  ;;  %3273 = vtanh.f32 %v676_v41  ;;  %v4307_v41 = vadd.f32 0.5, %v668_v16 }
 0x264   :  { %v3270_v10 = vpop.eup %3269  ;;  %3275 = vtanh.f32 %v845_v43  ;;  %v839_v17 = vmul.f32 0.5, %v3268_v34  ;;  %v4313_v43 = vadd.f32 0.5, %v837_v56  ;;  %v2741_v56 = vld [vmem:[%s5637_s0 + $0x290] sm:$0xff] }
 0x266   :  { %v594_v13 = vpop.f32.mrf.mxu2 }
 0x267   :  { %v764_v29 = vpop.f32.mrf.mxu3  ;;  %v649_v61 = vadd.f32 %v2737_v20, %v594_v13  ;;  %v2770_v13 = vld [vmem:[%s5637_s0 + $0x268] sm:$0xff]  ;;  %v3272_v20 = vpop.eup %3271 }
 0x268   :  { %v818_v31 = vadd.f32 %v2769_v15, %v764_v29 }
 0x269   :  { %v677_v19 = vmul.f32 0.5, %v649_v61  ;;  %v670_v61 = vmul.f32 0.5, %v3266_v2  ;;  %v2774_v2 = vld [vmem:[%s5637_s0 + $0x2a8] sm:$0xff] }
 0x26a   :  { %v846_v36 = vmul.f32 0.5, %v818_v31  ;;  %v671_v31 = vmul.f32 0.5, %v3270_v10 }
 0x26b   :  { %3277 = vtanh.f32 %v677_v19 }
 0x26c   :  { %3279 = vtanh.f32 %v846_v36  ;;  %v4326_v36 = vadd.f32 0.5, %v670_v61 }
 0x26e   :  { %v4220_v57 = vpop.f32.mrf.mxu2 }
 0x26f   :  { %v4222_v51 = vpop.f32.mrf.mxu3  ;;  %v650_v29 = vadd.f32 %v2738_v50, %v4220_v57  ;;  %v840_v50 = vmul.f32 0.5, %v3272_v20  ;;  %v4337_v20 = vadd.f32 0.5, %v671_v31 }
 0x270   :  { %v819_v22 = vadd.f32 %v2770_v13, %v4222_v51 }
 0x271   :  { %v678_v14 = vmul.f32 0.5, %v650_v29  ;;  %v4339_v16 = vadd.f32 0.5, %v840_v50 }
 0x272   :  { %v847_v51 = vmul.f32 0.5, %v819_v22 }
 0x276   :  { %v600_v62 = vpop.f32.mrf.mxu2 }
 0x277   :  { %v770_v59 = vpop.f32.mrf.mxu3  ;;  %v651_v42 = vadd.f32 %v2739_v49, %v600_v62  ;;  %v669_v62 = vmul.f32 0.5, %v3262_v28  ;;  %v838_v49 = vmul.f32 0.5, %v3264_v23  ;;  %v2775_v28 = vld [vmem:[%s5637_s0 + $0x2b8] sm:$0xff]  ;;  %v3274_v23 = vpop.eup %3273 }
 0x278   :  { %v820_v44 = vadd.f32 %v2771_v35, %v770_v59  ;;  %v2740_v59 = vld [vmem:[%s5637_s0 + $0x280] sm:$0xff]  ;;  %v3276_v29 = vpop.eup %3275 }
 0x279   :  { %v679_v58 = vmul.f32 0.5, %v651_v42  ;;  %v2742_v42 = vld [vmem:[%s5637_s0 + $0x2a0] sm:$0xff]  ;;  %v4324_v34 = vadd.f32 0.5, %v838_v49  ;;  %v3278_v10 = vpop.eup %3277  ;;  %v2772_v49 = vld [vmem:[%s5637_s0 + $0x288] sm:$0xff] }
 0x27a   :  { %v848_v15 = vmul.f32 0.5, %v820_v44  ;;  %v4315_v44 = vadd.f32 0.5, %v669_v62 }
 0x27b   :  { %3281 = vtanh.f32 %v679_v58  ;;  %v4335_v58 = vadd.f32 0.5, %v839_v17  ;;  %v853_v17 = vmul.f32 0.5, %v3276_v29 }
 0x27c   :  { %3283 = vtanh.f32 %v848_v15  ;;  %v2773_v15 = vld [vmem:[%s5637_s0 + $0x298] sm:$0xff] }
 0x27d   :  { %3285 = vtanh.f32 %v678_v14  ;;  %v3280_v14 = vpop.eup %3279 }
 0x27e   :  { %v4224_v32 = vpop.f32.mrf.mxu2  ;;  %3287 = vtanh.f32 %v847_v51 }
 0x27f   :  { %v4226_v60 = vpop.f32.mrf.mxu3  ;;  %v652_v13 = vadd.f32 %v2740_v59, %v4224_v32  ;;  %v2744_v32 = vld [vmem:[%s5637_s0 + $0x2c0] sm:$0xff]  ;;  %v684_v59 = vmul.f32 0.5, %v3274_v23  ;;  %v2777_v23 = vld [vmem:[%s5637_s0 + $0x2d8] sm:$0xff] }
 0x281   :  { %3289 = vtanh.f32 %v652_v13 }
 0x286   :  { %v4228_v37 = vpop.f32.mrf.mxu2 }
 0x287   :  { %v4230_v26 = vpop.f32.mrf.mxu3  ;;  %v653_v31 = vadd.f32 %v2741_v56, %v4228_v37 }
 0x28e   :  { %v4238_v30 = vpop.f32.mrf.mxu2 }
 0x28f   :  { %v4243_v21 = vpop.f32.mrf.mxu3  ;;  %v654_v62 = vadd.f32 %v2742_v42, %v4238_v30  ;;  %v3282_v30 = vpop.eup %3281 }
 0x290   :  { %v823_v61 = vadd.f32 %v2774_v2, %v4243_v21  ;;  %v3284_v42 = vpop.eup %3283  ;;  %v685_v21 = vmul.f32 0.5, %v3278_v10 }
 0x291   :  { %v3286_v37 = vpop.eup %3285 }
 0x292   :  { %v3288_v56 = vpop.eup %3287 }
 0x293   :  { %v3290_v46 = vpop.eup %3289 }
 0x296   :  { %v4260_v18 = vpop.f32.mrf.mxu2 }
 0x297   :  { %v4262_v27 = vpop.f32.mrf.mxu3  ;;  %v655_v19 = vadd.f32 %v2743_v24, %v4260_v18  ;;  %v2776_v18 = vld [vmem:[%s5637_s0 + $0x2c8] sm:$0xff] }
 0x298   :  { %v824_v22 = vadd.f32 %v2775_v28, %v4262_v27  ;;  %v2746_v27 = vld [vmem:[%s5637_s0 + $0x2e0] sm:$0xff]  ;;  %v2778_v24 = vld [vmem:[%s5637_s0 + $0x2e8] sm:$0xff]  ;;  %v2745_v28 = vld [vmem:[%s5637_s0 + $0x2d0] sm:$0xff] }
 0x299   :  { %3291 = vtanh.f32 %v655_v19  ;;  %v854_v19 = vmul.f32 0.5, %v3280_v14 }
 0x29a   :  { %3293 = vtanh.f32 %v824_v22 }
 0x29b   :  { %3295 = vtanh.f32 %v654_v62  ;;  %v855_v62 = vmul.f32 0.5, %v3288_v56 }
 0x29c   :  { %3297 = vtanh.f32 %v823_v61  ;;  %v2747_v61 = vld [vmem:[%s5637_s0 + $0x2f0] sm:$0xff] }
 0x29d   :  { %3299 = vtanh.f32 %v653_v31  ;;  %v858_v31 = vadd.f32 0.5, %v854_v19 }
 0x29e   :  { %v4282_v38 = vpop.f32.mrf.mxu2 }
 0x29f   :  { %v4287_v25 = vpop.f32.mrf.mxu3  ;;  %v656_v51 = vadd.f32 %v2744_v32, %v4282_v38  ;;  %v822_v38 = vadd.f32 %v2773_v15, %v4230_v26  ;;  %v856_v26 = vmul.f32 0.5, %v3284_v42  ;;  %v3292_v48 = vpop.eup %3291 }
 0x2a0   :  { %v825_v50 = vadd.f32 %v2776_v18, %v4287_v25  ;;  %v821_v25 = vadd.f32 %v2772_v49, %v4226_v60  ;;  %v687_v18 = vmul.f32 0.5, %v3282_v30  ;;  %v857_v60 = vadd.f32 0.5, %v853_v17 }
 0x2a1   :  { %v696_v33 = vmul.f32 0.5, %v656_v51  ;;  %3301 = vtanh.f32 %v822_v38  ;;  %v689_v51 = vadd.f32 0.5, %v685_v21 }
 0x2a2   :  { %v865_v22 = vmul.f32 0.5, %v825_v50  ;;  %3303 = vtanh.f32 %v821_v25  ;;  %v860_v50 = vadd.f32 0.5, %v856_v26 }
 0x2a3   :  { %3305 = vtanh.f32 %v696_v33  ;;  %v859_v33 = vadd.f32 0.5, %v855_v62 }
 0x2a4   :  { %3307 = vtanh.f32 %v865_v22  ;;  %v884_v26 = vmul.f32 %v860_v50, %v4127_v54 }
 0x2a6   :  { %v4297_v57 = vpop.f32.mrf.mxu2 }
 0x2a7   :  { %v4302_v35 = vpop.f32.mrf.mxu3  ;;  %v657_v10 = vadd.f32 %v2745_v28, %v4297_v57  ;;  %v3294_v57 = vpop.eup %3293 }
 0x2a8   :  { %v826_v15 = vadd.f32 %v2777_v23, %v4302_v35  ;;  %v2779_v35 = vld [vmem:[%s5637_s0 + $0x2f8] sm:$0xff]  ;;  %v719_v23 = vmul.f32 %v3292_v48, %v4337_v20 }
 0x2a9   :  { %v697_v30 = vmul.f32 0.5, %v657_v10 }
 0x2aa   :  { %v866_v17 = vmul.f32 0.5, %v826_v15 }
 0x2ae   :  { %v621_v13 = vpop.f32.mrf.mxu2 }
 0x2af   :  { %v658_v2 = vadd.f32 %v2746_v27, %v621_v13  ;;  %v791_v32 = vpop.f32.mrf.mxu3  ;;  %v688_v27 = vadd.f32 0.5, %v684_v59  ;;  %v686_v13 = vmul.f32 0.5, %v3286_v37  ;;  %v3296_v59 = vpop.eup %3295  ;;  %v888_v37 = vmul.f32 %v3294_v57, %v4339_v16 }
 0x2b0   :  { %v827_v29 = vadd.f32 %v2778_v24, %v791_v32  ;;  %v691_v24 = vadd.f32 0.5, %v687_v18  ;;  %v3298_v42 = vpop.eup %3297  ;;  %v718_v56 = vmul.f32 %v3296_v59, %v4326_v36  ;;  %v883_v36 = vmul.f32 %v859_v33, %v4135_v52 }
 0x2b1   :  { %v698_v14 = vmul.f32 0.5, %v658_v2  ;;  %v690_v38 = vadd.f32 0.5, %v686_v13  ;;  %v3300_v32 = vpop.eup %3299  ;;  %v887_v48 = vmul.f32 %v3298_v42, %v4335_v58  ;;  %v4386_v62 = vadd.f32 %v888_v37, %v884_v26 }
 0x2b2   :  { %v867_v49 = vmul.f32 0.5, %v827_v29  ;;  %v3302_v29 = vpop.eup %3301  ;;  %v715_v19 = vmul.f32 %v691_v24, %v4123_v39  ;;  %v717_v16 = vmul.f32 %v3300_v32, %v4315_v44  ;;  %v713_v58 = vmul.f32 %v689_v51, %v4139_v47 }
 0x2b3   :  { %3309 = vtanh.f32 %v698_v14  ;;  %v3304_v10 = vpop.eup %3303  ;;  %v714_v15 = vmul.f32 %v690_v38, %v4131_v45  ;;  %v886_v14 = vmul.f32 %v3302_v29, %v4324_v34  ;;  %v882_v44 = vmul.f32 %v858_v31, %v4144_v40 }
 0x2b4   :  { %3311 = vtanh.f32 %v867_v49  ;;  %v3306_v22 = vpop.eup %3305  ;;  %v4382_v13 = vadd.f32 %v719_v23, %v715_v19  ;;  %v716_v49 = vmul.f32 %v3290_v46, %v4307_v41  ;;  %v885_v57 = vmul.f32 %v3304_v10, %v4313_v43 }
 0x2b5   :  { %3313 = vtanh.f32 %v697_v30  ;;  %v3308_v39 = vpop.eup %3307  ;;  %v4394_v24 = vadd.f32 %v887_v48, %v883_v36  ;;  %v712_v34 = vmul.f32 %v688_v27, %v4147_v53  ;;  %v4398_v30 = vadd.f32 %v717_v16, %v713_v58  ;;  %v5673_v58 = vld [vmem:[#allocation3_spill] sm:$0xff] }
 0x2b6   :  { %v624_v28 = vpop.f32.mrf.mxu2  ;;  %3315 = vtanh.f32 %v866_v17  ;;  %v881_v47 = vmul.f32 %v857_v60, %v4150_v55  ;;  %v4402_v41 = vadd.f32 %v886_v14, %v882_v44 }
 0x2b7   :  { %v659_v2 = vadd.f32 %v2747_v61, %v624_v28  ;;  %v794_v21 = vpop.f32.mrf.mxu3  ;;  %v4390_v61 = vadd.f32 %v718_v56, %v714_v15  ;;  %v4405_v51 = vadd.f32 %v716_v49, %v712_v34  ;;  %v704_v28 = vmul.f32 0.5, %v3306_v22  ;;  %v5674_v49 = vld [vmem:[#allocation4_spill] sm:$0xff] }
 0x2b8   :  { %v828_v25 = vadd.f32 %v2779_v35, %v794_v21  ;;  %v4408_v31 = vadd.f32 %v885_v57, %v881_v47 }
 0x2b9   :  { %v699_v18 = vmul.f32 0.5, %v659_v2  ;;  %v3310_v54 = vpop.eup %3309  ;;  %v873_v2 = vmul.f32 0.5, %v3308_v39 }
 0x2ba   :  { %v868_v20 = vmul.f32 0.5, %v828_v25  ;;  %v3312_v45 = vpop.eup %3311  ;;  %v706_v46 = vmul.f32 0.5, %v3310_v54  ;;  %v5672_v54 = vld [vmem:[#allocation2_spill] sm:$0xff] }
 0x2bb   :  { %3317 = vtanh.f32 %v699_v18  ;;  %v3314_v52 = vpop.eup %3313  ;;  %v875_v43 = vmul.f32 0.5, %v3312_v45  ;;  %v708_v18 = vadd.f32 0.5, %v704_v28  ;;  %v877_v48 = vadd.f32 0.5, %v873_v2  ;;  %v5675_v45 = vld [vmem:[#allocation5_spill] sm:$0xff]  ;;  %v2796_v2 = vld [vmem:[%s5637_s0 + $0x300] sm:$0xff] }
 0x2bc   :  { %3319 = vtanh.f32 %v868_v20  ;;  %v3316_v35 = vpop.eup %3315  ;;  %v705_v27 = vmul.f32 0.5, %v3314_v52  ;;  %v710_v17 = vadd.f32 0.5, %v706_v46 }
 0x2bd   :  { %3321 = vtanh.f32 %v4382_v13  ;;  %v874_v55 = vmul.f32 0.5, %v3316_v35  ;;  %v879_v23 = vadd.f32 0.5, %v875_v43 }
 0x2be   :  { %3323 = vtanh.f32 %v4386_v62  ;;  %v709_v33 = vadd.f32 0.5, %v705_v27 }
 0x2bf   :  { %3325 = vtanh.f32 %v4390_v61  ;;  %v878_v29 = vadd.f32 0.5, %v874_v55 }
 0x2c0   :  { %3327 = vtanh.f32 %v4394_v24 }
 0x2c1   :  { %v3318_v40 = vpop.eup %3317  ;;  %3329 = vtanh.f32 %v4398_v30 }
 0x2c2   :  { %v3320_v59 = vpop.eup %3319  ;;  %v707_v53 = vmul.f32 0.5, %v3318_v40  ;;  %3331 = vtanh.f32 %v4402_v41 }
 0x2c3   :  { %v876_v50 = vmul.f32 0.5, %v3320_v59  ;;  %v3322_v42 = vpop.eup %3321  ;;  %3333 = vtanh.f32 %v4405_v51 }
 0x2c4   :  { %v711_v60 = vadd.f32 0.5, %v707_v53  ;;  %v3324_v21 = vpop.eup %3323  ;;  %3335 = vtanh.f32 %v4408_v31 }
 0x2c5   :  { %v880_v38 = vadd.f32 0.5, %v876_v50  ;;  %v3326_v37 = vpop.eup %3325 }
 0x2c6   :  { %v731_v32 = vmul.f32 %v3322_v42, %v711_v60  ;;  %v3328_v19 = vpop.eup %3327  ;;  %v730_v56 = vmul.f32 %v3326_v37, %v710_v17 }
 0x2c7   :  { %v900_v25 = vmul.f32 %v3324_v21, %v880_v38  ;;  %v3330_v10 = vpop.eup %3329  ;;  %v899_v26 = vmul.f32 %v3328_v19, %v879_v23  ;;  %v2828_v21 = vld [vmem:[%s5637_s0 + $0x308] sm:$0xff] }
 0x2c8   :  { %913 = vmatpush.msrb.mxu0 %v731_v32  ;;  %v3332_v20 = vpop.eup %3331  ;;  %v729_v22 = vmul.f32 %v3330_v10, %v709_v33  ;;  %v2797_v33 = vld [vmem:[%s5637_s0 + $0x310] sm:$0xff]  ;;  %v2830_v10 = vld [vmem:[%s5637_s0 + $0x328] sm:$0xff] }
 0x2c9   :  { %1083 = vmatpush.msrb.mxu1 %v900_v25  ;;  %v3334_v15 = vpop.eup %3333  ;;  %v898_v16 = vmul.f32 %v3332_v20, %v878_v29  ;;  %v2829_v29 = vld [vmem:[%s5637_s0 + $0x318] sm:$0xff] }
 0x2ca   :  { %914 = vmatpush.msrb.mxu0 %v730_v56  ;;  %v3336_v39 = vpop.eup %3335  ;;  %v728_v36 = vmul.f32 %v3334_v15, %v708_v18  ;;  %v2798_v56 = vld [vmem:[%s5637_s0 + $0x320] sm:$0xff]  ;;  %v2831_v15 = vld [vmem:[%s5637_s0 + $0x338] sm:$0xff] }
 0x2cb   :  { %1084 = vmatpush.msrb.mxu1 %v899_v26  ;;  %v897_v14 = vmul.f32 %v3336_v39, %v877_v48  ;;  %v2799_v48 = vld [vmem:[%s5637_s0 + $0x330] sm:$0xff] }
 0x2cc   :  { %915 = vmatpush.msrb.mxu0 %v729_v22 }
 0x2cd   :  { %1085 = vmatpush.msrb.mxu1 %v898_v16 }
 0x2ce   :  { %916 = vmatpush.msrb.mxu0 %v728_v36 }
 0x2cf   :  { %1086 = vmatpush.msrb.mxu1 %v897_v14  ;;  %2780 = vmatmul.msk.f32.vlgmr.msrb.gmra.mxu0 %vm174_vm0, %v3866_v63 }
 0x2d0   :  { %2812 = vmatmul.msk.f32.vlgmr.msrb.gmra.mxu1 %vm174_vm0, %v3866_v63 }
 0x2d7   :  { %2781 = vmatmul.msk.f32.gmra.mxu0 %vm174_vm0, %v3872_v0 }
 0x2d8   :  { %2813 = vmatmul.msk.f32.gmra.mxu1 %vm174_vm0, %v3872_v0 }
 0x2df   :  { %2782 = vmatmul.msk.f32.gmra.mxu0 %vm174_vm0, %v3878_v1 }
 0x2e0   :  { %2814 = vmatmul.msk.f32.gmra.mxu1 %vm174_vm0, %v3878_v1 }
 0x2e7   :  { %2783 = vmatmul.msk.f32.gmra.mxu0 %vm174_vm0, %v3884_v3 }
 0x2e8   :  { %2815 = vmatmul.msk.f32.gmra.mxu1 %vm174_vm0, %v3884_v3 }
 0x2ef   :  { %2784 = vmatmul.msk.f32.gmra.mxu0 %vm174_vm0, %v3890_v4 }
 0x2f0   :  { %2816 = vmatmul.msk.f32.gmra.mxu1 %vm174_vm0, %v3890_v4 }
 0x2f7   :  { %2785 = vmatmul.msk.f32.gmra.mxu0 %vm174_vm0, %v3896_v5 }
 0x2f8   :  { %2817 = vmatmul.msk.f32.gmra.mxu1 %vm174_vm0, %v3896_v5 }
 0x2ff   :  { %2786 = vmatmul.msk.f32.gmra.mxu0 %vm174_vm0, %v3902_v6 }
 0x300   :  { %2818 = vmatmul.msk.f32.gmra.mxu1 %vm174_vm0, %v3902_v6 }
 0x307   :  { %2787 = vmatmul.msk.f32.gmra.mxu0 %vm174_vm0, %v3908_v7 }
 0x308   :  { %2819 = vmatmul.msk.f32.gmra.mxu1 %vm174_vm0, %v3908_v7 }
 0x30f   :  { %2788 = vmatmul.msk.f32.gmra.mxu0 %vm174_vm0, %v3914_v8 }
 0x310   :  { %2820 = vmatmul.msk.f32.gmra.mxu1 %vm174_vm0, %v3914_v8 }
 0x317   :  { %2789 = vmatmul.msk.f32.gmra.mxu0 %vm174_vm0, %v3920_v9 }
 0x318   :  { %2821 = vmatmul.msk.f32.gmra.mxu1 %vm174_vm0, %v3920_v9 }
 0x31f   :  { %2790 = vmatmul.msk.f32.gmra.mxu0 %vm174_vm0, %v3926_v11 }
 0x320   :  { %2822 = vmatmul.msk.f32.gmra.mxu1 %vm174_vm0, %v3926_v11 }
 0x327   :  { %2791 = vmatmul.msk.f32.gmra.mxu0 %vm174_vm0, %v3932_v12 }
 0x328   :  { %2823 = vmatmul.msk.f32.gmra.mxu1 %vm174_vm0, %v3932_v12 }
 0x32f   :  { %2792 = vmatmul.msk.f32.gmra.mxu0 %vm174_vm0, %v5672_v54 }
 0x330   :  { %2824 = vmatmul.msk.f32.gmra.mxu1 %vm174_vm0, %v5672_v54 }
 0x337   :  { %2793 = vmatmul.msk.f32.gmra.mxu0 %vm174_vm0, %v5673_v58 }
 0x338   :  { %2825 = vmatmul.msk.f32.gmra.mxu1 %vm174_vm0, %v5673_v58 }
 0x33f   :  { %2794 = vmatmul.msk.f32.gmra.mxu0 %vm174_vm0, %v5674_v49 }
 0x340   :  { %2826 = vmatmul.msk.f32.gmra.mxu1 %vm174_vm0, %v5674_v49 }
 0x347   :  { %2795 = vmatmul.msk.f32.gmra.mxu0 %vm174_vm0, %v5675_v45 }
 0x348   :  { %2827 = vmatmul.msk.f32.gmra.mxu1 %vm174_vm0, %v5675_v45 }
 0x34c   :  { %v918_v44 = vpop.f32.mrf.mxu0 }
 0x34d   :  { %v1088_v57 = vpop.f32.mrf.mxu1  ;;  %v983_v25 = vadd.f32 %v2796_v2, %v918_v44 }
 0x34e   :  { %v1152_v19 = vadd.f32 %v2828_v21, %v1088_v57 }
 0x34f   :  { %v999_v20 = vmul.f32 0.5, %v983_v25 }
 0x350   :  { %v1168_v16 = vmul.f32 0.5, %v1152_v19 }
 0x351   :  { %3337 = vtanh.f32 %v999_v20 }
 0x352   :  { %3339 = vtanh.f32 %v1168_v16 }
 0x354   :  { %v921_v52 = vpop.f32.mrf.mxu0 }
 0x355   :  { %v1091_v34 = vpop.f32.mrf.mxu1  ;;  %v984_v18 = vadd.f32 %v2797_v33, %v921_v52 }
 0x356   :  { %v1153_v26 = vadd.f32 %v2829_v29, %v1091_v34  ;;  %v2833_v29 = vld [vmem:[%s5637_s0 + $0x358] sm:$0xff] }
 0x357   :  { %v1000_v36 = vmul.f32 0.5, %v984_v18  ;;  %v3338_v18 = vpop.eup %3337 }
 0x358   :  { %v1169_v57 = vmul.f32 0.5, %v1153_v26  ;;  %v2835_v26 = vld [vmem:[%s5637_s0 + $0x378] sm:$0xff] }
 0x359   :  { %3341 = vtanh.f32 %v1000_v36 }
 0x35a   :  { %3343 = vtanh.f32 %v1169_v57 }
 0x35c   :  { %v924_v35 = vpop.f32.mrf.mxu0 }
 0x35d   :  { %v1094_v47 = vpop.f32.mrf.mxu1  ;;  %v985_v22 = vadd.f32 %v2798_v56, %v924_v35  ;;  %v2800_v35 = vld [vmem:[%s5637_s0 + $0x340] sm:$0xff]  ;;  %v2803_v56 = vld [vmem:[%s5637_s0 + $0x370] sm:$0xff] }
 0x35e   :  { %v1154_v39 = vadd.f32 %v2830_v10, %v1094_v47  ;;  %v2832_v47 = vld [vmem:[%s5637_s0 + $0x348] sm:$0xff] }
 0x35f   :  { %v1001_v34 = vmul.f32 0.5, %v985_v22 }
 0x360   :  { %v1170_v21 = vmul.f32 0.5, %v1154_v39 }
 0x361   :  { %3345 = vtanh.f32 %v1001_v34 }
 0x362   :  { %3347 = vtanh.f32 %v1170_v21 }
 0x364   :  { %v927_v46 = vpop.f32.mrf.mxu0 }
 0x365   :  { %v1097_v40 = vpop.f32.mrf.mxu1  ;;  %v986_v14 = vadd.f32 %v2799_v48, %v927_v46 }
 0x366   :  { %v1155_v52 = vadd.f32 %v2831_v15, %v1097_v40  ;;  %v2801_v40 = vld [vmem:[%s5637_s0 + $0x350] sm:$0xff] }
 0x367   :  { %v1002_v33 = vmul.f32 0.5, %v986_v14 }
 0x368   :  { %v1171_v46 = vmul.f32 0.5, %v1155_v52 }
 0x369   :  { %3349 = vtanh.f32 %v1002_v33 }
 0x36a   :  { %3351 = vtanh.f32 %v1171_v46 }
 0x36c   :  { %v930_v43 = vpop.f32.mrf.mxu0 }
 0x36d   :  { %v1100_v59 = vpop.f32.mrf.mxu1  ;;  %v987_v25 = vadd.f32 %v2800_v35, %v930_v43  ;;  %v3340_v43 = vpop.eup %3339 }
 0x36e   :  { %v1156_v19 = vadd.f32 %v2832_v47, %v1100_v59  ;;  %v2802_v59 = vld [vmem:[%s5637_s0 + $0x360] sm:$0xff]  ;;  %v3342_v15 = vpop.eup %3341  ;;  %v1176_v45 = vmul.f32 0.5, %v3340_v43 }
 0x36f   :  { %v1015_v16 = vmul.f32 0.5, %v987_v25  ;;  %v3344_v36 = vpop.eup %3343  ;;  %v1007_v25 = vmul.f32 0.5, %v3338_v18  ;;  %v2807_v18 = vld [vmem:[%s5637_s0 + $0x3b0] sm:$0xff] }
 0x370   :  { %v1184_v14 = vmul.f32 0.5, %v1156_v19  ;;  %v3346_v52 = vpop.eup %3345 }
 0x371   :  { %v3348_v21 = vpop.eup %3347  ;;  %3353 = vtanh.f32 %v1015_v16  ;;  %v4565_v16 = vadd.f32 0.5, %v1007_v25 }
 0x372   :  { %v3350_v47 = vpop.eup %3349  ;;  %3355 = vtanh.f32 %v1184_v14  ;;  %v1178_v43 = vmul.f32 0.5, %v3348_v21  ;;  %v4571_v14 = vadd.f32 0.5, %v1176_v45  ;;  %v2805_v45 = vld [vmem:[%s5637_s0 + $0x390] sm:$0xff] }
 0x374   :  { %v933_v53 = vpop.f32.mrf.mxu0 }
 0x375   :  { %v1103_v27 = vpop.f32.mrf.mxu1  ;;  %v988_v10 = vadd.f32 %v2801_v40, %v933_v53  ;;  %v2834_v53 = vld [vmem:[%s5637_s0 + $0x368] sm:$0xff]  ;;  %v3352_v40 = vpop.eup %3351 }
 0x376   :  { %v1157_v20 = vadd.f32 %v2833_v29, %v1103_v27 }
 0x377   :  { %v1016_v34 = vmul.f32 0.5, %v988_v10  ;;  %v1009_v10 = vmul.f32 0.5, %v3346_v52  ;;  %v2838_v52 = vld [vmem:[%s5637_s0 + $0x3a8] sm:$0xff] }
 0x378   :  { %v1185_v35 = vmul.f32 0.5, %v1157_v20  ;;  %v1010_v20 = vmul.f32 0.5, %v3350_v47 }
 0x379   :  { %3357 = vtanh.f32 %v1016_v34 }
 0x37a   :  { %3359 = vtanh.f32 %v1185_v35  ;;  %v4584_v35 = vadd.f32 0.5, %v1009_v10 }
 0x37c   :  { %v4478_v50 = vpop.f32.mrf.mxu0 }
 0x37d   :  { %v4480_v55 = vpop.f32.mrf.mxu1  ;;  %v989_v27 = vadd.f32 %v2802_v59, %v4478_v50  ;;  %v1179_v59 = vmul.f32 0.5, %v3352_v40  ;;  %v4595_v40 = vadd.f32 0.5, %v1010_v20 }
 0x37e   :  { %v1158_v33 = vadd.f32 %v2834_v53, %v4480_v55 }
 0x37f   :  { %v1017_v19 = vmul.f32 0.5, %v989_v27  ;;  %v4597_v25 = vadd.f32 0.5, %v1179_v59 }
 0x380   :  { %v1186_v55 = vmul.f32 0.5, %v1158_v33 }
 0x384   :  { %v939_v60 = vpop.f32.mrf.mxu0 }
 0x385   :  { %v1109_v17 = vpop.f32.mrf.mxu1  ;;  %v990_v39 = vadd.f32 %v2803_v56, %v939_v60  ;;  %v1008_v60 = vmul.f32 0.5, %v3342_v15  ;;  %v1177_v56 = vmul.f32 0.5, %v3344_v36  ;;  %v2839_v15 = vld [vmem:[%s5637_s0 + $0x3b8] sm:$0xff]  ;;  %v3354_v36 = vpop.eup %3353 }
 0x386   :  { %v1159_v57 = vadd.f32 %v2835_v26, %v1109_v17  ;;  %v2804_v17 = vld [vmem:[%s5637_s0 + $0x380] sm:$0xff]  ;;  %v3356_v27 = vpop.eup %3355 }
 0x387   :  { %v1018_v46 = vmul.f32 0.5, %v990_v39  ;;  %v2806_v39 = vld [vmem:[%s5637_s0 + $0x3a0] sm:$0xff]  ;;  %v4582_v21 = vadd.f32 0.5, %v1177_v56  ;;  %v3358_v47 = vpop.eup %3357  ;;  %v2836_v56 = vld [vmem:[%s5637_s0 + $0x388] sm:$0xff] }
 0x388   :  { %v1187_v29 = vmul.f32 0.5, %v1159_v57  ;;  %v4573_v57 = vadd.f32 0.5, %v1008_v60 }
 0x389   :  { %3361 = vtanh.f32 %v1018_v46  ;;  %v4593_v46 = vadd.f32 0.5, %v1178_v43  ;;  %v1192_v43 = vmul.f32 0.5, %v3356_v27 }
 0x38a   :  { %3363 = vtanh.f32 %v1187_v29  ;;  %v2837_v29 = vld [vmem:[%s5637_s0 + $0x398] sm:$0xff] }
 0x38b   :  { %3365 = vtanh.f32 %v1017_v19  ;;  %v3360_v19 = vpop.eup %3359 }
 0x38c   :  { %v4482_v28 = vpop.f32.mrf.mxu0  ;;  %3367 = vtanh.f32 %v1186_v55 }
 0x38d   :  { %v4484_v42 = vpop.f32.mrf.mxu1  ;;  %v991_v53 = vadd.f32 %v2804_v17, %v4482_v28  ;;  %v2808_v28 = vld [vmem:[%s5637_s0 + $0x3c0] sm:$0xff]  ;;  %v1023_v17 = vmul.f32 0.5, %v3354_v36  ;;  %v2841_v36 = vld [vmem:[%s5637_s0 + $0x3d8] sm:$0xff] }
 0x38f   :  { %3369 = vtanh.f32 %v991_v53 }
 0x394   :  { %v4486_v38 = vpop.f32.mrf.mxu0 }
 0x395   :  { %v4488_v23 = vpop.f32.mrf.mxu1  ;;  %v992_v20 = vadd.f32 %v2805_v45, %v4486_v38 }
 0x39c   :  { %v4496_v32 = vpop.f32.mrf.mxu0 }
 0x39d   :  { %v4501_v37 = vpop.f32.mrf.mxu1  ;;  %v993_v60 = vadd.f32 %v2806_v39, %v4496_v32  ;;  %v3362_v32 = vpop.eup %3361 }
 0x39e   :  { %v1162_v10 = vadd.f32 %v2838_v52, %v4501_v37  ;;  %v3364_v39 = vpop.eup %3363  ;;  %v1024_v37 = vmul.f32 0.5, %v3358_v47 }
 0x39f   :  { %v3366_v38 = vpop.eup %3365 }
 0x3a0   :  { %v3368_v45 = vpop.eup %3367 }
 0x3a1   :  { %v3370_v58 = vpop.eup %3369 }
 0x3a4   :  { %v4518_v44 = vpop.f32.mrf.mxu0 }
 0x3a5   :  { %v4520_v2 = vpop.f32.mrf.mxu1  ;;  %v994_v34 = vadd.f32 %v2807_v18, %v4518_v44  ;;  %v2840_v44 = vld [vmem:[%s5637_s0 + $0x3c8] sm:$0xff] }
 0x3a6   :  { %v1163_v33 = vadd.f32 %v2839_v15, %v4520_v2  ;;  %v2810_v2 = vld [vmem:[%s5637_s0 + $0x3e0] sm:$0xff]  ;;  %v2842_v18 = vld [vmem:[%s5637_s0 + $0x3e8] sm:$0xff]  ;;  %v2809_v15 = vld [vmem:[%s5637_s0 + $0x3d0] sm:$0xff] }
 0x3a7   :  { %3371 = vtanh.f32 %v994_v34  ;;  %v1193_v34 = vmul.f32 0.5, %v3360_v19 }
 0x3a8   :  { %3373 = vtanh.f32 %v1163_v33 }
 0x3a9   :  { %3375 = vtanh.f32 %v993_v60  ;;  %v1194_v60 = vmul.f32 0.5, %v3368_v45 }
 0x3aa   :  { %3377 = vtanh.f32 %v1162_v10  ;;  %v2811_v10 = vld [vmem:[%s5637_s0 + $0x3f0] sm:$0xff] }
 0x3ab   :  { %3379 = vtanh.f32 %v992_v20  ;;  %v1197_v20 = vadd.f32 0.5, %v1193_v34 }
 0x3ac   :  { %v4540_v48 = vpop.f32.mrf.mxu0 }
 0x3ad   :  { %v4545_v22 = vpop.f32.mrf.mxu1  ;;  %v995_v55 = vadd.f32 %v2808_v28, %v4540_v48  ;;  %v1161_v48 = vadd.f32 %v2837_v29, %v4488_v23  ;;  %v1195_v23 = vmul.f32 0.5, %v3364_v39  ;;  %v3372_v54 = vpop.eup %3371 }
 0x3ae   :  { %v1164_v59 = vadd.f32 %v2840_v44, %v4545_v22  ;;  %v1160_v22 = vadd.f32 %v2836_v56, %v4484_v42  ;;  %v1026_v44 = vmul.f32 0.5, %v3362_v32  ;;  %v1196_v42 = vadd.f32 0.5, %v1192_v43 }
 0x3af   :  { %v1035_v49 = vmul.f32 0.5, %v995_v55  ;;  %3381 = vtanh.f32 %v1161_v48  ;;  %v1028_v55 = vadd.f32 0.5, %v1024_v37 }
 0x3b0   :  { %v1204_v33 = vmul.f32 0.5, %v1164_v59  ;;  %3383 = vtanh.f32 %v1160_v22  ;;  %v1199_v59 = vadd.f32 0.5, %v1195_v23 }
 0x3b1   :  { %3385 = vtanh.f32 %v1035_v49  ;;  %v1198_v49 = vadd.f32 0.5, %v1194_v60 }
 0x3b2   :  { %3387 = vtanh.f32 %v1204_v33  ;;  %v1223_v23 = vmul.f32 %v1199_v59, %v4386_v62 }
 0x3b4   :  { %v4555_v50 = vpop.f32.mrf.mxu0 }
 0x3b5   :  { %v4560_v26 = vpop.f32.mrf.mxu1  ;;  %v996_v47 = vadd.f32 %v2809_v15, %v4555_v50  ;;  %v3374_v50 = vpop.eup %3373 }
 0x3b6   :  { %v1165_v29 = vadd.f32 %v2841_v36, %v4560_v26  ;;  %v2843_v26 = vld [vmem:[%s5637_s0 + $0x3f8] sm:$0xff]  ;;  %v1058_v36 = vmul.f32 %v3372_v54, %v4595_v40 }
 0x3b7   :  { %v1036_v32 = vmul.f32 0.5, %v996_v47 }
 0x3b8   :  { %v1205_v43 = vmul.f32 0.5, %v1165_v29 }
 0x3bc   :  { %v960_v53 = vpop.f32.mrf.mxu0 }
 0x3bd   :  { %v997_v52 = vadd.f32 %v2810_v2, %v960_v53  ;;  %v1130_v28 = vpop.f32.mrf.mxu1  ;;  %v1027_v2 = vadd.f32 0.5, %v1023_v17  ;;  %v1025_v53 = vmul.f32 0.5, %v3366_v38  ;;  %v3376_v17 = vpop.eup %3375  ;;  %v1227_v38 = vmul.f32 %v3374_v50, %v4597_v25 }
 0x3be   :  { %v1166_v27 = vadd.f32 %v2842_v18, %v1130_v28  ;;  %v1030_v18 = vadd.f32 0.5, %v1026_v44  ;;  %v3378_v39 = vpop.eup %3377  ;;  %v1057_v45 = vmul.f32 %v3376_v17, %v4584_v35  ;;  %v1222_v35 = vmul.f32 %v1198_v49, %v4394_v24 }
 0x3bf   :  { %v1037_v19 = vmul.f32 0.5, %v997_v52  ;;  %v1029_v48 = vadd.f32 0.5, %v1025_v53  ;;  %v3380_v28 = vpop.eup %3379  ;;  %v1226_v54 = vmul.f32 %v3378_v39, %v4593_v46  ;;  %v4644_v60 = vadd.f32 %v1227_v38, %v1223_v23 }
 0x3c0   :  { %v1206_v56 = vmul.f32 0.5, %v1166_v27  ;;  %v3382_v27 = vpop.eup %3381  ;;  %v1054_v34 = vmul.f32 %v1030_v18, %v4382_v13  ;;  %v1056_v25 = vmul.f32 %v3380_v28, %v4573_v57  ;;  %v1052_v46 = vmul.f32 %v1028_v55, %v4398_v30 }
 0x3c1   :  { %3389 = vtanh.f32 %v1037_v19  ;;  %v3384_v47 = vpop.eup %3383  ;;  %v1053_v29 = vmul.f32 %v1029_v48, %v4390_v61  ;;  %v1225_v19 = vmul.f32 %v3382_v27, %v4582_v21  ;;  %v1221_v57 = vmul.f32 %v1197_v20, %v4402_v41 }
 0x3c2   :  { %3391 = vtanh.f32 %v1206_v56  ;;  %v3386_v33 = vpop.eup %3385  ;;  %v4640_v53 = vadd.f32 %v1058_v36, %v1054_v34  ;;  %v1055_v56 = vmul.f32 %v3370_v58, %v4565_v16  ;;  %v1224_v50 = vmul.f32 %v3384_v47, %v4571_v14 }
 0x3c3   :  { %3393 = vtanh.f32 %v1036_v32  ;;  %v3388_v13 = vpop.eup %3387  ;;  %v4652_v18 = vadd.f32 %v1226_v54, %v1222_v35  ;;  %v1051_v21 = vmul.f32 %v1027_v2, %v4405_v51  ;;  %v4655_v32 = vadd.f32 %v1056_v25, %v1052_v46  ;;  %v5677_v46 = vld [vmem:[#allocation3_spill] sm:$0xff] }
 0x3c4   :  { %v963_v15 = vpop.f32.mrf.mxu0  ;;  %3395 = vtanh.f32 %v1205_v43  ;;  %v1220_v30 = vmul.f32 %v1196_v42, %v4408_v31  ;;  %v4659_v58 = vadd.f32 %v1225_v19, %v1221_v57  ;;  %v1043_v42 = vmul.f32 0.5, %v3386_v33 }
 0x3c5   :  { %v998_v52 = vadd.f32 %v2811_v10, %v963_v15  ;;  %v1133_v37 = vpop.f32.mrf.mxu1  ;;  %v4648_v10 = vadd.f32 %v1057_v45, %v1053_v29  ;;  %v4662_v55 = vadd.f32 %v1055_v56, %v1051_v21  ;;  %v1212_v48 = vmul.f32 0.5, %v3388_v13  ;;  %v5678_v56 = vld [vmem:[#allocation4_spill] sm:$0xff] }
 0x3c6   :  { %v1167_v22 = vadd.f32 %v2843_v26, %v1133_v37  ;;  %v4665_v51 = vadd.f32 %v1224_v50, %v1220_v30  ;;  %v1047_v45 = vadd.f32 0.5, %v1043_v42 }
 0x3c7   :  { %v1038_v44 = vmul.f32 0.5, %v998_v52  ;;  %v3390_v62 = vpop.eup %3389  ;;  %v1216_v23 = vadd.f32 0.5, %v1212_v48 }
 0x3c8   :  { %v1207_v40 = vmul.f32 0.5, %v1167_v22  ;;  %v3392_v61 = vpop.eup %3391  ;;  %v1045_v16 = vmul.f32 0.5, %v3390_v62  ;;  %v5676_v62 = vld [vmem:[#allocation2_spill] sm:$0xff] }
 0x3c9   :  { %3397 = vtanh.f32 %v1038_v44  ;;  %v3394_v24 = vpop.eup %3393  ;;  %v1214_v14 = vmul.f32 0.5, %v3392_v61  ;;  %v5679_v61 = vld [vmem:[#allocation5_spill] sm:$0xff] }
 0x3ca   :  { %3399 = vtanh.f32 %v1207_v40  ;;  %v3396_v26 = vpop.eup %3395  ;;  %v1044_v2 = vmul.f32 0.5, %v3394_v24  ;;  %v1049_v43 = vadd.f32 0.5, %v1045_v16 }
 0x3cb   :  { %3401 = vtanh.f32 %v4640_v53  ;;  %v1213_v59 = vmul.f32 0.5, %v3396_v26  ;;  %v1218_v36 = vadd.f32 0.5, %v1214_v14 }
 0x3cc   :  { %3403 = vtanh.f32 %v4644_v60  ;;  %v1048_v28 = vadd.f32 0.5, %v1044_v2 }
 0x3cd   :  { %3405 = vtanh.f32 %v4648_v10  ;;  %v1217_v22 = vadd.f32 0.5, %v1213_v59 }
 0x3ce   :  { %3407 = vtanh.f32 %v4652_v18 }
 0x3cf   :  { %v3398_v41 = vpop.eup %3397  ;;  %3409 = vtanh.f32 %v4655_v32 }
 0x3d0   :  { %v3400_v17 = vpop.eup %3399  ;;  %v1046_v20 = vmul.f32 0.5, %v3398_v41  ;;  %3411 = vtanh.f32 %v4659_v58 }
 0x3d1   :  { %v1215_v31 = vmul.f32 0.5, %v3400_v17  ;;  %v3402_v39 = vpop.eup %3401  ;;  %3413 = vtanh.f32 %v4662_v55 }
 0x3d2   :  { %v1050_v15 = vadd.f32 0.5, %v1046_v20  ;;  %v3404_v37 = vpop.eup %3403  ;;  %3415 = vtanh.f32 %v4665_v51 }
 0x3d3   :  { %v1219_v52 = vadd.f32 0.5, %v1215_v31  ;;  %v3406_v38 = vpop.eup %3405 }
 0x3d4   :  { %v1070_v49 = vmul.f32 %v3402_v39, %v1050_v15  ;;  %v3408_v34 = vpop.eup %3407  ;;  %v1069_v44 = vmul.f32 %v3406_v38, %v1049_v43 }
 0x3d5   :  { %v1239_v27 = vmul.f32 %v3404_v37, %v1219_v52  ;;  %v3410_v47 = vpop.eup %3409  ;;  %v1238_v54 = vmul.f32 %v3408_v34, %v1218_v36  ;;  %v2860_v52 = vld [vmem:[%s5637_s0 + $0x400] sm:$0xff]  ;;  %v2892_v37 = vld [vmem:[%s5637_s0 + $0x408] sm:$0xff] }
 0x3d6   :  { %1252 = vmatpush.msra.mxu2 %v1070_v49  ;;  %v3412_v40 = vpop.eup %3411  ;;  %v1068_v33 = vmul.f32 %v3410_v47, %v1048_v28  ;;  %v2861_v49 = vld [vmem:[%s5637_s0 + $0x410] sm:$0xff]  ;;  %v2894_v47 = vld [vmem:[%s5637_s0 + $0x428] sm:$0xff] }
 0x3d7   :  { %1422 = vmatpush.msra.mxu3 %v1239_v27  ;;  %v3414_v29 = vpop.eup %3413  ;;  %v1237_v25 = vmul.f32 %v3412_v40, %v1217_v22  ;;  %v2893_v27 = vld [vmem:[%s5637_s0 + $0x418] sm:$0xff] }
 0x3d8   :  { %1253 = vmatpush.msra.mxu2 %v1069_v44  ;;  %v3416_v13 = vpop.eup %3415  ;;  %v1067_v35 = vmul.f32 %v3414_v29, %v1047_v45  ;;  %v2862_v45 = vld [vmem:[%s5637_s0 + $0x420] sm:$0xff]  ;;  %v2895_v29 = vld [vmem:[%s5637_s0 + $0x438] sm:$0xff] }
 0x3d9   :  { %1423 = vmatpush.msra.mxu3 %v1238_v54  ;;  %v1236_v19 = vmul.f32 %v3416_v13, %v1216_v23  ;;  %v2863_v54 = vld [vmem:[%s5637_s0 + $0x430] sm:$0xff] }
 0x3da   :  { %1254 = vmatpush.msra.mxu2 %v1068_v33 }
 0x3db   :  { %1424 = vmatpush.msra.mxu3 %v1237_v25 }
 0x3dc   :  { %1255 = vmatpush.msra.mxu2 %v1067_v35 }
 0x3dd   :  { %1425 = vmatpush.msra.mxu3 %v1236_v19  ;;  %2844 = vmatmul.msk.f32.vlgmr.msra.gmra.mxu2 %vm174_vm0, %v3866_v63 }
 0x3de   :  { %2876 = vmatmul.msk.f32.vlgmr.msra.gmra.mxu3 %vm174_vm0, %v3866_v63 }
 0x3e5   :  { %2845 = vmatmul.msk.f32.gmra.mxu2 %vm174_vm0, %v3872_v0 }
 0x3e6   :  { %2877 = vmatmul.msk.f32.gmra.mxu3 %vm174_vm0, %v3872_v0 }
 0x3ed   :  { %2846 = vmatmul.msk.f32.gmra.mxu2 %vm174_vm0, %v3878_v1 }
 0x3ee   :  { %2878 = vmatmul.msk.f32.gmra.mxu3 %vm174_vm0, %v3878_v1 }
 0x3f5   :  { %2847 = vmatmul.msk.f32.gmra.mxu2 %vm174_vm0, %v3884_v3 }
 0x3f6   :  { %2879 = vmatmul.msk.f32.gmra.mxu3 %vm174_vm0, %v3884_v3 }
 0x3fd   :  { %2848 = vmatmul.msk.f32.gmra.mxu2 %vm174_vm0, %v3890_v4 }
 0x3fe   :  { %2880 = vmatmul.msk.f32.gmra.mxu3 %vm174_vm0, %v3890_v4 }
 0x405   :  { %2849 = vmatmul.msk.f32.gmra.mxu2 %vm174_vm0, %v3896_v5 }
 0x406   :  { %2881 = vmatmul.msk.f32.gmra.mxu3 %vm174_vm0, %v3896_v5 }
 0x40d   :  { %2850 = vmatmul.msk.f32.gmra.mxu2 %vm174_vm0, %v3902_v6 }
 0x40e   :  { %2882 = vmatmul.msk.f32.gmra.mxu3 %vm174_vm0, %v3902_v6 }
 0x415   :  { %2851 = vmatmul.msk.f32.gmra.mxu2 %vm174_vm0, %v3908_v7 }
 0x416   :  { %2883 = vmatmul.msk.f32.gmra.mxu3 %vm174_vm0, %v3908_v7 }
 0x41d   :  { %2852 = vmatmul.msk.f32.gmra.mxu2 %vm174_vm0, %v3914_v8 }
 0x41e   :  { %2884 = vmatmul.msk.f32.gmra.mxu3 %vm174_vm0, %v3914_v8 }
 0x425   :  { %2853 = vmatmul.msk.f32.gmra.mxu2 %vm174_vm0, %v3920_v9 }
 0x426   :  { %2885 = vmatmul.msk.f32.gmra.mxu3 %vm174_vm0, %v3920_v9 }
 0x42d   :  { %2854 = vmatmul.msk.f32.gmra.mxu2 %vm174_vm0, %v3926_v11 }
 0x42e   :  { %2886 = vmatmul.msk.f32.gmra.mxu3 %vm174_vm0, %v3926_v11 }
 0x435   :  { %2855 = vmatmul.msk.f32.gmra.mxu2 %vm174_vm0, %v3932_v12 }
 0x436   :  { %2887 = vmatmul.msk.f32.gmra.mxu3 %vm174_vm0, %v3932_v12 }
 0x43d   :  { %2856 = vmatmul.msk.f32.gmra.mxu2 %vm174_vm0, %v5676_v62 }
 0x43e   :  { %2888 = vmatmul.msk.f32.gmra.mxu3 %vm174_vm0, %v5676_v62 }
 0x445   :  { %2857 = vmatmul.msk.f32.gmra.mxu2 %vm174_vm0, %v5677_v46 }
 0x446   :  { %2889 = vmatmul.msk.f32.gmra.mxu3 %vm174_vm0, %v5677_v46 }
 0x44d   :  { %2858 = vmatmul.msk.f32.gmra.mxu2 %vm174_vm0, %v5678_v56 }
 0x44e   :  { %2890 = vmatmul.msk.f32.gmra.mxu3 %vm174_vm0, %v5678_v56 }
 0x455   :  { %2859 = vmatmul.msk.f32.gmra.mxu2 %vm174_vm0, %v5679_v61 }
 0x456   :  { %2891 = vmatmul.msk.f32.gmra.mxu3 %vm174_vm0, %v5679_v61 }
 0x460   :  { %v1257_v57 = vpop.f32.mrf.mxu2 }
 0x461   :  { %v1427_v50 = vpop.f32.mrf.mxu3  ;;  %v1322_v22 = vadd.f32 %v2860_v52, %v1257_v57 }
 0x462   :  { %v1491_v34 = vadd.f32 %v2892_v37, %v1427_v50 }
 0x463   :  { %v1338_v40 = vmul.f32 0.5, %v1322_v22 }
 0x464   :  { %v1507_v25 = vmul.f32 0.5, %v1491_v34 }
 0x465   :  { %3417 = vtanh.f32 %v1338_v40 }
 0x466   :  { %3419 = vtanh.f32 %v1507_v25 }
 0x468   :  { %v1260_v24 = vpop.f32.mrf.mxu2 }
 0x469   :  { %v1430_v21 = vpop.f32.mrf.mxu3  ;;  %v1323_v44 = vadd.f32 %v2861_v49, %v1260_v24 }
 0x46a   :  { %v1492_v23 = vadd.f32 %v2893_v27, %v1430_v21  ;;  %v2897_v27 = vld [vmem:[%s5637_s0 + $0x458] sm:$0xff] }
 0x46b   :  { %v1339_v35 = vmul.f32 0.5, %v1323_v44  ;;  %v3418_v44 = vpop.eup %3417 }
 0x46c   :  { %v1508_v50 = vmul.f32 0.5, %v1492_v23  ;;  %v2899_v23 = vld [vmem:[%s5637_s0 + $0x478] sm:$0xff] }
 0x46d   :  { %3421 = vtanh.f32 %v1339_v35 }
 0x46e   :  { %3423 = vtanh.f32 %v1508_v50 }
 0x470   :  { %v1263_v26 = vpop.f32.mrf.mxu2 }
 0x471   :  { %v1433_v30 = vpop.f32.mrf.mxu3  ;;  %v1324_v33 = vadd.f32 %v2862_v45, %v1263_v26  ;;  %v2864_v26 = vld [vmem:[%s5637_s0 + $0x440] sm:$0xff]  ;;  %v2867_v45 = vld [vmem:[%s5637_s0 + $0x470] sm:$0xff] }
 0x472   :  { %v1493_v13 = vadd.f32 %v2894_v47, %v1433_v30  ;;  %v2896_v30 = vld [vmem:[%s5637_s0 + $0x448] sm:$0xff] }
 0x473   :  { %v1340_v21 = vmul.f32 0.5, %v1324_v33 }
 0x474   :  { %v1509_v37 = vmul.f32 0.5, %v1493_v13 }
 0x475   :  { %3425 = vtanh.f32 %v1340_v21 }
 0x476   :  { %3427 = vtanh.f32 %v1509_v37 }
 0x478   :  { %v1266_v16 = vpop.f32.mrf.mxu2 }
 0x479   :  { %v1436_v41 = vpop.f32.mrf.mxu3  ;;  %v1325_v19 = vadd.f32 %v2863_v54, %v1266_v16 }
 0x47a   :  { %v1494_v24 = vadd.f32 %v2895_v29, %v1436_v41  ;;  %v2865_v41 = vld [vmem:[%s5637_s0 + $0x450] sm:$0xff] }
 0x47b   :  { %v1341_v49 = vmul.f32 0.5, %v1325_v19 }
 0x47c   :  { %v1510_v16 = vmul.f32 0.5, %v1494_v24 }
 0x47d   :  { %3429 = vtanh.f32 %v1341_v49 }
 0x47e   :  { %3431 = vtanh.f32 %v1510_v16 }
 0x480   :  { %v1269_v14 = vpop.f32.mrf.mxu2 }
 0x481   :  { %v1439_v17 = vpop.f32.mrf.mxu3  ;;  %v1326_v22 = vadd.f32 %v2864_v26, %v1269_v14  ;;  %v3420_v14 = vpop.eup %3419 }
 0x482   :  { %v1495_v34 = vadd.f32 %v2896_v30, %v1439_v17  ;;  %v2866_v17 = vld [vmem:[%s5637_s0 + $0x460] sm:$0xff]  ;;  %v3422_v29 = vpop.eup %3421  ;;  %v1515_v61 = vmul.f32 0.5, %v3420_v14 }
 0x483   :  { %v1354_v25 = vmul.f32 0.5, %v1326_v22  ;;  %v3424_v35 = vpop.eup %3423  ;;  %v1346_v22 = vmul.f32 0.5, %v3418_v44  ;;  %v2871_v44 = vld [vmem:[%s5637_s0 + $0x4b0] sm:$0xff] }
 0x484   :  { %v1523_v19 = vmul.f32 0.5, %v1495_v34  ;;  %v3426_v24 = vpop.eup %3425 }
 0x485   :  { %v3428_v37 = vpop.eup %3427  ;;  %3433 = vtanh.f32 %v1354_v25  ;;  %v4823_v25 = vadd.f32 0.5, %v1346_v22 }
 0x486   :  { %v3430_v30 = vpop.eup %3429  ;;  %3435 = vtanh.f32 %v1523_v19  ;;  %v1517_v14 = vmul.f32 0.5, %v3428_v37  ;;  %v4829_v19 = vadd.f32 0.5, %v1515_v61  ;;  %v2869_v61 = vld [vmem:[%s5637_s0 + $0x490] sm:$0xff] }
 0x488   :  { %v1272_v2 = vpop.f32.mrf.mxu2 }
 0x489   :  { %v1442_v20 = vpop.f32.mrf.mxu3  ;;  %v1327_v47 = vadd.f32 %v2865_v41, %v1272_v2  ;;  %v2898_v2 = vld [vmem:[%s5637_s0 + $0x468] sm:$0xff]  ;;  %v3432_v41 = vpop.eup %3431 }
 0x48a   :  { %v1496_v40 = vadd.f32 %v2897_v27, %v1442_v20 }
 0x48b   :  { %v1355_v21 = vmul.f32 0.5, %v1327_v47  ;;  %v1348_v47 = vmul.f32 0.5, %v3426_v24  ;;  %v2902_v24 = vld [vmem:[%s5637_s0 + $0x4a8] sm:$0xff] }
 0x48c   :  { %v1524_v26 = vmul.f32 0.5, %v1496_v40  ;;  %v1349_v40 = vmul.f32 0.5, %v3430_v30 }
 0x48d   :  { %3437 = vtanh.f32 %v1355_v21 }
 0x48e   :  { %3439 = vtanh.f32 %v1524_v26  ;;  %v4842_v26 = vadd.f32 0.5, %v1348_v47 }
 0x490   :  { %v4736_v59 = vpop.f32.mrf.mxu2 }
 0x491   :  { %v4738_v31 = vpop.f32.mrf.mxu3  ;;  %v1328_v20 = vadd.f32 %v2866_v17, %v4736_v59  ;;  %v1518_v17 = vmul.f32 0.5, %v3432_v41  ;;  %v4853_v41 = vadd.f32 0.5, %v1349_v40 }
 0x492   :  { %v1497_v49 = vadd.f32 %v2898_v2, %v4738_v31 }
 0x493   :  { %v1356_v34 = vmul.f32 0.5, %v1328_v20  ;;  %v4855_v22 = vadd.f32 0.5, %v1518_v17 }
 0x494   :  { %v1525_v31 = vmul.f32 0.5, %v1497_v49 }
 0x498   :  { %v1278_v42 = vpop.f32.mrf.mxu2 }
 0x499   :  { %v1448_v43 = vpop.f32.mrf.mxu3  ;;  %v1329_v13 = vadd.f32 %v2867_v45, %v1278_v42  ;;  %v1347_v42 = vmul.f32 0.5, %v3422_v29  ;;  %v1516_v45 = vmul.f32 0.5, %v3424_v35  ;;  %v2903_v29 = vld [vmem:[%s5637_s0 + $0x4b8] sm:$0xff]  ;;  %v3434_v35 = vpop.eup %3433 }
 0x49a   :  { %v1498_v50 = vadd.f32 %v2899_v23, %v1448_v43  ;;  %v2868_v43 = vld [vmem:[%s5637_s0 + $0x480] sm:$0xff]  ;;  %v3436_v20 = vpop.eup %3435 }
 0x49b   :  { %v1357_v16 = vmul.f32 0.5, %v1329_v13  ;;  %v2870_v13 = vld [vmem:[%s5637_s0 + $0x4a0] sm:$0xff]  ;;  %v4840_v37 = vadd.f32 0.5, %v1516_v45  ;;  %v3438_v30 = vpop.eup %3437  ;;  %v2900_v45 = vld [vmem:[%s5637_s0 + $0x488] sm:$0xff] }
 0x49c   :  { %v1526_v27 = vmul.f32 0.5, %v1498_v50  ;;  %v4831_v50 = vadd.f32 0.5, %v1347_v42 }
 0x49d   :  { %3441 = vtanh.f32 %v1357_v16  ;;  %v4851_v16 = vadd.f32 0.5, %v1517_v14  ;;  %v1531_v14 = vmul.f32 0.5, %v3436_v20 }
 0x49e   :  { %3443 = vtanh.f32 %v1526_v27  ;;  %v2901_v27 = vld [vmem:[%s5637_s0 + $0x498] sm:$0xff] }
 0x49f   :  { %3445 = vtanh.f32 %v1356_v34  ;;  %v3440_v34 = vpop.eup %3439 }
 0x4a0   :  { %v4740_v15 = vpop.f32.mrf.mxu2  ;;  %3447 = vtanh.f32 %v1525_v31 }
 0x4a1   :  { %v4742_v39 = vpop.f32.mrf.mxu3  ;;  %v1330_v2 = vadd.f32 %v2868_v43, %v4740_v15  ;;  %v2872_v15 = vld [vmem:[%s5637_s0 + $0x4c0] sm:$0xff]  ;;  %v1362_v43 = vmul.f32 0.5, %v3434_v35  ;;  %v2905_v35 = vld [vmem:[%s5637_s0 + $0x4d8] sm:$0xff] }
 0x4a3   :  { %3449 = vtanh.f32 %v1330_v2 }
 0x4a8   :  { %v4744_v48 = vpop.f32.mrf.mxu2 }
 0x4a9   :  { %v4746_v36 = vpop.f32.mrf.mxu3  ;;  %v1331_v40 = vadd.f32 %v2869_v61, %v4744_v48 }
 0x4b0   :  { %v4754_v28 = vpop.f32.mrf.mxu2 }
 0x4b1   :  { %v4759_v38 = vpop.f32.mrf.mxu3  ;;  %v1332_v42 = vadd.f32 %v2870_v13, %v4754_v28  ;;  %v3442_v28 = vpop.eup %3441 }
 0x4b2   :  { %v1501_v47 = vadd.f32 %v2902_v24, %v4759_v38  ;;  %v3444_v13 = vpop.eup %3443  ;;  %v1363_v38 = vmul.f32 0.5, %v3438_v30 }
 0x4b3   :  { %v3446_v48 = vpop.eup %3445 }
 0x4b4   :  { %v3448_v61 = vpop.eup %3447 }
 0x4b5   :  { %v3450_v46 = vpop.eup %3449 }
 0x4b8   :  { %v4776_v57 = vpop.f32.mrf.mxu2 }
 0x4b9   :  { %v4778_v52 = vpop.f32.mrf.mxu3  ;;  %v1333_v21 = vadd.f32 %v2871_v44, %v4776_v57  ;;  %v2904_v57 = vld [vmem:[%s5637_s0 + $0x4c8] sm:$0xff] }
 0x4ba   :  { %v1502_v49 = vadd.f32 %v2903_v29, %v4778_v52  ;;  %v2874_v52 = vld [vmem:[%s5637_s0 + $0x4e0] sm:$0xff]  ;;  %v2906_v44 = vld [vmem:[%s5637_s0 + $0x4e8] sm:$0xff]  ;;  %v2873_v29 = vld [vmem:[%s5637_s0 + $0x4d0] sm:$0xff] }
 0x4bb   :  { %3451 = vtanh.f32 %v1333_v21  ;;  %v1532_v21 = vmul.f32 0.5, %v3440_v34 }
 0x4bc   :  { %3453 = vtanh.f32 %v1502_v49 }
 0x4bd   :  { %3455 = vtanh.f32 %v1332_v42  ;;  %v1533_v42 = vmul.f32 0.5, %v3448_v61 }
 0x4be   :  { %3457 = vtanh.f32 %v1501_v47  ;;  %v2875_v47 = vld [vmem:[%s5637_s0 + $0x4f0] sm:$0xff] }
 0x4bf   :  { %3459 = vtanh.f32 %v1331_v40  ;;  %v1536_v40 = vadd.f32 0.5, %v1532_v21 }
 0x4c0   :  { %v4798_v54 = vpop.f32.mrf.mxu2 }
 0x4c1   :  { %v4803_v33 = vpop.f32.mrf.mxu3  ;;  %v1334_v31 = vadd.f32 %v2872_v15, %v4798_v54  ;;  %v1500_v54 = vadd.f32 %v2901_v27, %v4746_v36  ;;  %v1534_v36 = vmul.f32 0.5, %v3444_v13  ;;  %v3452_v62 = vpop.eup %3451 }
 0x4c2   :  { %v1503_v17 = vadd.f32 %v2904_v57, %v4803_v33  ;;  %v1499_v33 = vadd.f32 %v2900_v45, %v4742_v39  ;;  %v1365_v57 = vmul.f32 0.5, %v3442_v28  ;;  %v1535_v39 = vadd.f32 0.5, %v1531_v14 }
 0x4c3   :  { %v1374_v56 = vmul.f32 0.5, %v1334_v31  ;;  %3461 = vtanh.f32 %v1500_v54  ;;  %v1367_v31 = vadd.f32 0.5, %v1363_v38 }
 0x4c4   :  { %v1543_v49 = vmul.f32 0.5, %v1503_v17  ;;  %3463 = vtanh.f32 %v1499_v33  ;;  %v1538_v17 = vadd.f32 0.5, %v1534_v36 }
 0x4c5   :  { %3465 = vtanh.f32 %v1374_v56  ;;  %v1537_v56 = vadd.f32 0.5, %v1533_v42 }
 0x4c6   :  { %3467 = vtanh.f32 %v1543_v49  ;;  %v1562_v36 = vmul.f32 %v1538_v17, %v4644_v60 }
 0x4c8   :  { %v4813_v59 = vpop.f32.mrf.mxu2 }
 0x4c9   :  { %v4818_v23 = vpop.f32.mrf.mxu3  ;;  %v1335_v30 = vadd.f32 %v2873_v29, %v4813_v59  ;;  %v3454_v59 = vpop.eup %3453 }
 0x4ca   :  { %v1504_v27 = vadd.f32 %v2905_v35, %v4818_v23  ;;  %v2907_v23 = vld [vmem:[%s5637_s0 + $0x4f8] sm:$0xff]  ;;  %v1397_v35 = vmul.f32 %v3452_v62, %v4853_v41 }
 0x4cb   :  { %v1375_v28 = vmul.f32 0.5, %v1335_v30 }
 0x4cc   :  { %v1544_v14 = vmul.f32 0.5, %v1504_v27 }
 0x4d0   :  { %v1299_v2 = vpop.f32.mrf.mxu2 }
 0x4d1   :  { %v1336_v24 = vadd.f32 %v2874_v52, %v1299_v2  ;;  %v1469_v15 = vpop.f32.mrf.mxu3  ;;  %v1366_v52 = vadd.f32 0.5, %v1362_v43  ;;  %v1364_v2 = vmul.f32 0.5, %v3446_v48  ;;  %v3456_v43 = vpop.eup %3455  ;;  %v1566_v48 = vmul.f32 %v3454_v59, %v4855_v22 }
 0x4d2   :  { %v1505_v20 = vadd.f32 %v2906_v44, %v1469_v15  ;;  %v1369_v44 = vadd.f32 0.5, %v1365_v57  ;;  %v3458_v13 = vpop.eup %3457  ;;  %v1396_v61 = vmul.f32 %v3456_v43, %v4842_v26  ;;  %v1561_v26 = vmul.f32 %v1537_v56, %v4652_v18 }
 0x4d3   :  { %v1376_v34 = vmul.f32 0.5, %v1336_v24  ;;  %v1368_v54 = vadd.f32 0.5, %v1364_v2  ;;  %v3460_v15 = vpop.eup %3459  ;;  %v1565_v62 = vmul.f32 %v3458_v13, %v4851_v16  ;;  %v4902_v42 = vadd.f32 %v1566_v48, %v1562_v36 }
 0x4d4   :  { %v1545_v45 = vmul.f32 0.5, %v1505_v20  ;;  %v3462_v20 = vpop.eup %3461  ;;  %v1393_v21 = vmul.f32 %v1369_v44, %v4640_v53  ;;  %v1395_v22 = vmul.f32 %v3460_v15, %v4831_v50  ;;  %v1391_v16 = vmul.f32 %v1367_v31, %v4655_v32 }
 0x4d5   :  { %3469 = vtanh.f32 %v1376_v34  ;;  %v3464_v30 = vpop.eup %3463  ;;  %v1392_v27 = vmul.f32 %v1368_v54, %v4648_v10  ;;  %v1564_v34 = vmul.f32 %v3462_v20, %v4840_v37  ;;  %v1560_v50 = vmul.f32 %v1536_v40, %v4659_v58 }
 0x4d6   :  { %3471 = vtanh.f32 %v1545_v45  ;;  %v3466_v49 = vpop.eup %3465  ;;  %v4898_v2 = vadd.f32 %v1397_v35, %v1393_v21  ;;  %v1394_v45 = vmul.f32 %v3450_v46, %v4823_v25  ;;  %v1563_v59 = vmul.f32 %v3464_v30, %v4829_v19 }
 0x4d7   :  { %3473 = vtanh.f32 %v1375_v28  ;;  %v3468_v53 = vpop.eup %3467  ;;  %v4910_v44 = vadd.f32 %v1565_v62, %v1561_v26  ;;  %v1390_v37 = vmul.f32 %v1366_v52, %v4662_v55  ;;  %v4913_v28 = vadd.f32 %v1395_v22, %v1391_v16  ;;  %v5681_v16 = vld [vmem:[#allocation3_spill] sm:$0xff] }
 0x4d8   :  { %v1302_v29 = vpop.f32.mrf.mxu2  ;;  %3475 = vtanh.f32 %v1544_v14  ;;  %v1559_v32 = vmul.f32 %v1535_v39, %v4665_v51  ;;  %v4917_v46 = vadd.f32 %v1564_v34, %v1560_v50  ;;  %v1382_v39 = vmul.f32 0.5, %v3466_v49 }
 0x4d9   :  { %v1337_v24 = vadd.f32 %v2875_v47, %v1302_v29  ;;  %v1472_v38 = vpop.f32.mrf.mxu3  ;;  %v4906_v47 = vadd.f32 %v1396_v61, %v1392_v27  ;;  %v4920_v31 = vadd.f32 %v1394_v45, %v1390_v37  ;;  %v1551_v54 = vmul.f32 0.5, %v3468_v53  ;;  %v5682_v45 = vld [vmem:[#allocation4_spill] sm:$0xff] }
 0x4da   :  { %v1506_v33 = vadd.f32 %v2907_v23, %v1472_v38  ;;  %v4923_v55 = vadd.f32 %v1563_v59, %v1559_v32  ;;  %v1386_v61 = vadd.f32 0.5, %v1382_v39 }
 0x4db   :  { %v1377_v57 = vmul.f32 0.5, %v1337_v24  ;;  %v3470_v60 = vpop.eup %3469  ;;  %v1555_v36 = vadd.f32 0.5, %v1551_v54 }
 0x4dc   :  { %v1546_v41 = vmul.f32 0.5, %v1506_v33  ;;  %v3472_v10 = vpop.eup %3471  ;;  %v1384_v25 = vmul.f32 0.5, %v3470_v60  ;;  %v5680_v60 = vld [vmem:[#allocation2_spill] sm:$0xff] }
 0x4dd   :  { %3477 = vtanh.f32 %v1377_v57  ;;  %v3474_v18 = vpop.eup %3473  ;;  %v1553_v19 = vmul.f32 0.5, %v3472_v10  ;;  %v5683_v10 = vld [vmem:[#allocation5_spill] sm:$0xff] }
 0x4de   :  { %3479 = vtanh.f32 %v1546_v41  ;;  %v3476_v23 = vpop.eup %3475  ;;  %v1383_v52 = vmul.f32 0.5, %v3474_v18  ;;  %v1388_v14 = vadd.f32 0.5, %v1384_v25 }
 0x4df   :  { %3481 = vtanh.f32 %v4898_v2  ;;  %v1552_v17 = vmul.f32 0.5, %v3476_v23  ;;  %v1557_v35 = vadd.f32 0.5, %v1553_v19 }
 0x4e0   :  { %3483 = vtanh.f32 %v4902_v42  ;;  %v1387_v15 = vadd.f32 0.5, %v1383_v52 }
 0x4e1   :  { %3485 = vtanh.f32 %v4906_v47  ;;  %v1556_v33 = vadd.f32 0.5, %v1552_v17 }
 0x4e2   :  { %3487 = vtanh.f32 %v4910_v44 }
 0x4e3   :  { %v3478_v58 = vpop.eup %3477  ;;  %3489 = vtanh.f32 %v4913_v28 }
 0x4e4   :  { %v3480_v43 = vpop.eup %3479  ;;  %v1385_v40 = vmul.f32 0.5, %v3478_v58  ;;  %3491 = vtanh.f32 %v4917_v46 }
 0x4e5   :  { %v1554_v51 = vmul.f32 0.5, %v3480_v43  ;;  %v3482_v13 = vpop.eup %3481  ;;  %3493 = vtanh.f32 %v4920_v31 }
 0x4e6   :  { %v1389_v29 = vadd.f32 0.5, %v1385_v40  ;;  %v3484_v38 = vpop.eup %3483  ;;  %3495 = vtanh.f32 %v4923_v55 }
 0x4e7   :  { %v1558_v24 = vadd.f32 0.5, %v1554_v51  ;;  %v3486_v48 = vpop.eup %3485 }
 0x4e8   :  { %v1409_v56 = vmul.f32 %v3482_v13, %v1389_v29  ;;  %v3488_v21 = vpop.eup %3487  ;;  %v1408_v57 = vmul.f32 %v3486_v48, %v1388_v14 }
 0x4e9   :  { %v1578_v20 = vmul.f32 %v3484_v38, %v1558_v24  ;;  %v3490_v30 = vpop.eup %3489  ;;  %v1577_v62 = vmul.f32 %v3488_v21, %v1557_v35  ;;  %v2924_v24 = vld [vmem:[%s5637_s0 + $0x500] sm:$0xff]  ;;  %v2956_v38 = vld [vmem:[%s5637_s0 + $0x508] sm:$0xff] }
 0x4ea   :  { %1591 = vmatpush.msra.mxu0 %v1409_v56  ;;  %v3492_v41 = vpop.eup %3491  ;;  %v1407_v49 = vmul.f32 %v3490_v30, %v1387_v15  ;;  %v2925_v56 = vld [vmem:[%s5637_s0 + $0x510] sm:$0xff]  ;;  %v2958_v30 = vld [vmem:[%s5637_s0 + $0x528] sm:$0xff] }
 0x4eb   :  { %1761 = vmatpush.msra.mxu1 %v1578_v20  ;;  %v3494_v27 = vpop.eup %3493  ;;  %v1576_v22 = vmul.f32 %v3492_v41, %v1556_v33  ;;  %v2957_v20 = vld [vmem:[%s5637_s0 + $0x518] sm:$0xff] }
 0x4ec   :  { %1592 = vmatpush.msra.mxu0 %v1408_v57  ;;  %v3496_v53 = vpop.eup %3495  ;;  %v1406_v26 = vmul.f32 %v3494_v27, %v1386_v61  ;;  %v2926_v61 = vld [vmem:[%s5637_s0 + $0x520] sm:$0xff]  ;;  %v2959_v27 = vld [vmem:[%s5637_s0 + $0x538] sm:$0xff] }
 0x4ed   :  { %1762 = vmatpush.msra.mxu1 %v1577_v62  ;;  %v1575_v34 = vmul.f32 %v3496_v53, %v1555_v36  ;;  %v2927_v62 = vld [vmem:[%s5637_s0 + $0x530] sm:$0xff] }
 0x4ee   :  { %1593 = vmatpush.msra.mxu0 %v1407_v49 }
 0x4ef   :  { %1763 = vmatpush.msra.mxu1 %v1576_v22 }
 0x4f0   :  { %1594 = vmatpush.msra.mxu0 %v1406_v26 }
 0x4f1   :  { %1764 = vmatpush.msra.mxu1 %v1575_v34  ;;  %2908 = vmatmul.msk.f32.vlgmr.msra.gmra.mxu0 %vm174_vm0, %v3866_v63 }
 0x4f2   :  { %2940 = vmatmul.msk.f32.vlgmr.msra.gmra.mxu1 %vm174_vm0, %v3866_v63 }
 0x4f9   :  { %2909 = vmatmul.msk.f32.gmra.mxu0 %vm174_vm0, %v3872_v0 }
 0x4fa   :  { %2941 = vmatmul.msk.f32.gmra.mxu1 %vm174_vm0, %v3872_v0 }
 0x501   :  { %2910 = vmatmul.msk.f32.gmra.mxu0 %vm174_vm0, %v3878_v1 }
 0x502   :  { %2942 = vmatmul.msk.f32.gmra.mxu1 %vm174_vm0, %v3878_v1 }
 0x509   :  { %2911 = vmatmul.msk.f32.gmra.mxu0 %vm174_vm0, %v3884_v3 }
 0x50a   :  { %2943 = vmatmul.msk.f32.gmra.mxu1 %vm174_vm0, %v3884_v3 }
 0x511   :  { %2912 = vmatmul.msk.f32.gmra.mxu0 %vm174_vm0, %v3890_v4 }
 0x512   :  { %2944 = vmatmul.msk.f32.gmra.mxu1 %vm174_vm0, %v3890_v4 }
 0x519   :  { %2913 = vmatmul.msk.f32.gmra.mxu0 %vm174_vm0, %v3896_v5 }
 0x51a   :  { %2945 = vmatmul.msk.f32.gmra.mxu1 %vm174_vm0, %v3896_v5 }
 0x521   :  { %2914 = vmatmul.msk.f32.gmra.mxu0 %vm174_vm0, %v3902_v6 }
 0x522   :  { %2946 = vmatmul.msk.f32.gmra.mxu1 %vm174_vm0, %v3902_v6 }
 0x529   :  { %2915 = vmatmul.msk.f32.gmra.mxu0 %vm174_vm0, %v3908_v7 }
 0x52a   :  { %2947 = vmatmul.msk.f32.gmra.mxu1 %vm174_vm0, %v3908_v7 }
 0x531   :  { %2916 = vmatmul.msk.f32.gmra.mxu0 %vm174_vm0, %v3914_v8 }
 0x532   :  { %2948 = vmatmul.msk.f32.gmra.mxu1 %vm174_vm0, %v3914_v8 }
 0x539   :  { %2917 = vmatmul.msk.f32.gmra.mxu0 %vm174_vm0, %v3920_v9 }
 0x53a   :  { %2949 = vmatmul.msk.f32.gmra.mxu1 %vm174_vm0, %v3920_v9 }
 0x541   :  { %2918 = vmatmul.msk.f32.gmra.mxu0 %vm174_vm0, %v3926_v11 }
 0x542   :  { %2950 = vmatmul.msk.f32.gmra.mxu1 %vm174_vm0, %v3926_v11 }
 0x549   :  { %2919 = vmatmul.msk.f32.gmra.mxu0 %vm174_vm0, %v3932_v12 }
 0x54a   :  { %2951 = vmatmul.msk.f32.gmra.mxu1 %vm174_vm0, %v3932_v12 }
 0x551   :  { %2920 = vmatmul.msk.f32.gmra.mxu0 %vm174_vm0, %v5680_v60 }
 0x552   :  { %2952 = vmatmul.msk.f32.gmra.mxu1 %vm174_vm0, %v5680_v60 }
 0x559   :  { %2921 = vmatmul.msk.f32.gmra.mxu0 %vm174_vm0, %v5681_v16 }
 0x55a   :  { %2953 = vmatmul.msk.f32.gmra.mxu1 %vm174_vm0, %v5681_v16 }
 0x561   :  { %2922 = vmatmul.msk.f32.gmra.mxu0 %vm174_vm0, %v5682_v45 }
 0x562   :  { %2954 = vmatmul.msk.f32.gmra.mxu1 %vm174_vm0, %v5682_v45 }
 0x569   :  { %2923 = vmatmul.msk.f32.gmra.mxu0 %vm174_vm0, %v5683_v10 }
 0x56a   :  { %2955 = vmatmul.msk.f32.gmra.mxu1 %vm174_vm0, %v5683_v10 }
 0x56e   :  { %v1596_v50 = vpop.f32.mrf.mxu0 }
 0x56f   :  { %v1766_v59 = vpop.f32.mrf.mxu1  ;;  %v1661_v33 = vadd.f32 %v2924_v24, %v1596_v50 }
 0x570   :  { %v1830_v21 = vadd.f32 %v2956_v38, %v1766_v59 }
 0x571   :  { %v1677_v41 = vmul.f32 0.5, %v1661_v33 }
 0x572   :  { %v1846_v22 = vmul.f32 0.5, %v1830_v21 }
 0x573   :  { %3497 = vtanh.f32 %v1677_v41 }
 0x574   :  { %3499 = vtanh.f32 %v1846_v22 }
 0x576   :  { %v1599_v18 = vpop.f32.mrf.mxu0 }
 0x577   :  { %v1769_v37 = vpop.f32.mrf.mxu1  ;;  %v1662_v57 = vadd.f32 %v2925_v56, %v1599_v18 }
 0x578   :  { %v1831_v36 = vadd.f32 %v2957_v20, %v1769_v37  ;;  %v2961_v20 = vld [vmem:[%s5637_s0 + $0x558] sm:$0xff] }
 0x579   :  { %v1678_v26 = vmul.f32 0.5, %v1662_v57  ;;  %v3498_v57 = vpop.eup %3497 }
 0x57a   :  { %v1847_v59 = vmul.f32 0.5, %v1831_v36  ;;  %v2963_v36 = vld [vmem:[%s5637_s0 + $0x578] sm:$0xff] }
 0x57b   :  { %3501 = vtanh.f32 %v1678_v26 }
 0x57c   :  { %3503 = vtanh.f32 %v1847_v59 }
 0x57e   :  { %v1602_v23 = vpop.f32.mrf.mxu0 }
 0x57f   :  { %v1772_v32 = vpop.f32.mrf.mxu1  ;;  %v1663_v49 = vadd.f32 %v2926_v61, %v1602_v23  ;;  %v2928_v23 = vld [vmem:[%s5637_s0 + $0x540] sm:$0xff]  ;;  %v2931_v61 = vld [vmem:[%s5637_s0 + $0x570] sm:$0xff] }
 0x580   :  { %v1832_v53 = vadd.f32 %v2958_v30, %v1772_v32  ;;  %v2960_v32 = vld [vmem:[%s5637_s0 + $0x548] sm:$0xff] }
 0x581   :  { %v1679_v37 = vmul.f32 0.5, %v1663_v49 }
 0x582   :  { %v1848_v38 = vmul.f32 0.5, %v1832_v53 }
 0x583   :  { %3505 = vtanh.f32 %v1679_v37 }
 0x584   :  { %3507 = vtanh.f32 %v1848_v38 }
 0x586   :  { %v1605_v25 = vpop.f32.mrf.mxu0 }
 0x587   :  { %v1775_v58 = vpop.f32.mrf.mxu1  ;;  %v1664_v34 = vadd.f32 %v2927_v62, %v1605_v25 }
 0x588   :  { %v1833_v18 = vadd.f32 %v2959_v27, %v1775_v58  ;;  %v2929_v58 = vld [vmem:[%s5637_s0 + $0x550] sm:$0xff] }
 0x589   :  { %v1680_v56 = vmul.f32 0.5, %v1664_v34 }
 0x58a   :  { %v1849_v25 = vmul.f32 0.5, %v1833_v18 }
 0x58b   :  { %3509 = vtanh.f32 %v1680_v56 }
 0x58c   :  { %3511 = vtanh.f32 %v1849_v25 }
 0x58e   :  { %v1608_v19 = vpop.f32.mrf.mxu0 }
 0x58f   :  { %v1778_v43 = vpop.f32.mrf.mxu1  ;;  %v1665_v33 = vadd.f32 %v2928_v23, %v1608_v19  ;;  %v3500_v19 = vpop.eup %3499 }
 0x590   :  { %v1834_v21 = vadd.f32 %v2960_v32, %v1778_v43  ;;  %v2930_v43 = vld [vmem:[%s5637_s0 + $0x560] sm:$0xff]  ;;  %v3502_v27 = vpop.eup %3501  ;;  %v1854_v10 = vmul.f32 0.5, %v3500_v19 }
 0x591   :  { %v1693_v22 = vmul.f32 0.5, %v1665_v33  ;;  %v3504_v26 = vpop.eup %3503  ;;  %v1685_v33 = vmul.f32 0.5, %v3498_v57  ;;  %v2935_v57 = vld [vmem:[%s5637_s0 + $0x5b0] sm:$0xff] }
 0x592   :  { %v1862_v34 = vmul.f32 0.5, %v1834_v21  ;;  %v3506_v18 = vpop.eup %3505 }
 0x593   :  { %v3508_v38 = vpop.eup %3507  ;;  %3513 = vtanh.f32 %v1693_v22  ;;  %v5081_v22 = vadd.f32 0.5, %v1685_v33 }
 0x594   :  { %v3510_v32 = vpop.eup %3509  ;;  %3515 = vtanh.f32 %v1862_v34  ;;  %v1856_v19 = vmul.f32 0.5, %v3508_v38  ;;  %v5087_v34 = vadd.f32 0.5, %v1854_v10  ;;  %v2933_v10 = vld [vmem:[%s5637_s0 + $0x590] sm:$0xff] }
 0x596   :  { %v1611_v52 = vpop.f32.mrf.mxu0 }
 0x597   :  { %v1781_v40 = vpop.f32.mrf.mxu1  ;;  %v1666_v30 = vadd.f32 %v2929_v58, %v1611_v52  ;;  %v2962_v52 = vld [vmem:[%s5637_s0 + $0x568] sm:$0xff]  ;;  %v3512_v58 = vpop.eup %3511 }
 0x598   :  { %v1835_v41 = vadd.f32 %v2961_v20, %v1781_v40 }
 0x599   :  { %v1694_v37 = vmul.f32 0.5, %v1666_v30  ;;  %v1687_v30 = vmul.f32 0.5, %v3506_v18  ;;  %v2966_v18 = vld [vmem:[%s5637_s0 + $0x5a8] sm:$0xff] }
 0x59a   :  { %v1863_v23 = vmul.f32 0.5, %v1835_v41  ;;  %v1688_v41 = vmul.f32 0.5, %v3510_v32 }
 0x59b   :  { %3517 = vtanh.f32 %v1694_v37 }
 0x59c   :  { %3519 = vtanh.f32 %v1863_v23  ;;  %v5100_v23 = vadd.f32 0.5, %v1687_v30 }
 0x59e   :  { %v4994_v17 = vpop.f32.mrf.mxu0 }
 0x59f   :  { %v4996_v51 = vpop.f32.mrf.mxu1  ;;  %v1667_v40 = vadd.f32 %v2930_v43, %v4994_v17  ;;  %v1857_v43 = vmul.f32 0.5, %v3512_v58  ;;  %v5111_v58 = vadd.f32 0.5, %v1688_v41 }
 0x5a0   :  { %v1836_v56 = vadd.f32 %v2962_v52, %v4996_v51 }
 0x5a1   :  { %v1695_v21 = vmul.f32 0.5, %v1667_v40  ;;  %v5113_v33 = vadd.f32 0.5, %v1857_v43 }
 0x5a2   :  { %v1864_v51 = vmul.f32 0.5, %v1836_v56 }
 0x5a6   :  { %v1617_v39 = vpop.f32.mrf.mxu0 }
 0x5a7   :  { %v1787_v14 = vpop.f32.mrf.mxu1  ;;  %v1668_v53 = vadd.f32 %v2931_v61, %v1617_v39  ;;  %v1686_v39 = vmul.f32 0.5, %v3502_v27  ;;  %v1855_v61 = vmul.f32 0.5, %v3504_v26  ;;  %v2967_v27 = vld [vmem:[%s5637_s0 + $0x5b8] sm:$0xff]  ;;  %v3514_v26 = vpop.eup %3513 }
 0x5a8   :  { %v1837_v59 = vadd.f32 %v2963_v36, %v1787_v14  ;;  %v2932_v14 = vld [vmem:[%s5637_s0 + $0x580] sm:$0xff]  ;;  %v3516_v40 = vpop.eup %3515 }
 0x5a9   :  { %v1696_v25 = vmul.f32 0.5, %v1668_v53  ;;  %v2934_v53 = vld [vmem:[%s5637_s0 + $0x5a0] sm:$0xff]  ;;  %v5098_v38 = vadd.f32 0.5, %v1855_v61  ;;  %v3518_v32 = vpop.eup %3517  ;;  %v2964_v61 = vld [vmem:[%s5637_s0 + $0x588] sm:$0xff] }
 0x5aa   :  { %v1865_v20 = vmul.f32 0.5, %v1837_v59  ;;  %v5089_v59 = vadd.f32 0.5, %v1686_v39 }
 0x5ab   :  { %3521 = vtanh.f32 %v1696_v25  ;;  %v5109_v25 = vadd.f32 0.5, %v1856_v19  ;;  %v1870_v19 = vmul.f32 0.5, %v3516_v40 }
 0x5ac   :  { %3523 = vtanh.f32 %v1865_v20  ;;  %v2965_v20 = vld [vmem:[%s5637_s0 + $0x598] sm:$0xff] }
 0x5ad   :  { %3525 = vtanh.f32 %v1695_v21  ;;  %v3520_v21 = vpop.eup %3519 }
 0x5ae   :  { %v4998_v29 = vpop.f32.mrf.mxu0  ;;  %3527 = vtanh.f32 %v1864_v51 }
 0x5af   :  { %v5000_v13 = vpop.f32.mrf.mxu1  ;;  %v1669_v52 = vadd.f32 %v2932_v14, %v4998_v29  ;;  %v2936_v29 = vld [vmem:[%s5637_s0 + $0x5c0] sm:$0xff]  ;;  %v1701_v14 = vmul.f32 0.5, %v3514_v26  ;;  %v2969_v26 = vld [vmem:[%s5637_s0 + $0x5d8] sm:$0xff] }
 0x5b1   :  { %3529 = vtanh.f32 %v1669_v52 }
 0x5b6   :  { %v5002_v54 = vpop.f32.mrf.mxu0 }
 0x5b7   :  { %v5004_v35 = vpop.f32.mrf.mxu1  ;;  %v1670_v41 = vadd.f32 %v2933_v10, %v5002_v54 }
 0x5be   :  { %v5012_v15 = vpop.f32.mrf.mxu0 }
 0x5bf   :  { %v5017_v48 = vpop.f32.mrf.mxu1  ;;  %v1671_v39 = vadd.f32 %v2934_v53, %v5012_v15  ;;  %v3522_v15 = vpop.eup %3521 }
 0x5c0   :  { %v1840_v30 = vadd.f32 %v2966_v18, %v5017_v48  ;;  %v3524_v53 = vpop.eup %3523  ;;  %v1702_v48 = vmul.f32 0.5, %v3518_v32 }
 0x5c1   :  { %v3526_v54 = vpop.eup %3525 }
 0x5c2   :  { %v3528_v10 = vpop.eup %3527 }
 0x5c3   :  { %v3530_v16 = vpop.eup %3529 }
 0x5c6   :  { %v5034_v50 = vpop.f32.mrf.mxu0 }
 0x5c7   :  { %v5036_v24 = vpop.f32.mrf.mxu1  ;;  %v1672_v37 = vadd.f32 %v2935_v57, %v5034_v50  ;;  %v2968_v50 = vld [vmem:[%s5637_s0 + $0x5c8] sm:$0xff] }
 0x5c8   :  { %v1841_v56 = vadd.f32 %v2967_v27, %v5036_v24  ;;  %v2938_v24 = vld [vmem:[%s5637_s0 + $0x5e0] sm:$0xff]  ;;  %v2970_v57 = vld [vmem:[%s5637_s0 + $0x5e8] sm:$0xff]  ;;  %v2937_v27 = vld [vmem:[%s5637_s0 + $0x5d0] sm:$0xff] }
 0x5c9   :  { %3531 = vtanh.f32 %v1672_v37  ;;  %v1871_v37 = vmul.f32 0.5, %v3520_v21 }
 0x5ca   :  { %3533 = vtanh.f32 %v1841_v56 }
 0x5cb   :  { %3535 = vtanh.f32 %v1671_v39  ;;  %v1872_v39 = vmul.f32 0.5, %v3528_v10 }
 0x5cc   :  { %3537 = vtanh.f32 %v1840_v30  ;;  %v2939_v30 = vld [vmem:[%s5637_s0 + $0x5f0] sm:$0xff] }
 0x5cd   :  { %3539 = vtanh.f32 %v1670_v41  ;;  %v1875_v41 = vadd.f32 0.5, %v1871_v37 }
 0x5ce   :  { %v5056_v62 = vpop.f32.mrf.mxu0 }
 0x5cf   :  { %v5061_v49 = vpop.f32.mrf.mxu1  ;;  %v1673_v51 = vadd.f32 %v2936_v29, %v5056_v62  ;;  %v1839_v62 = vadd.f32 %v2965_v20, %v5004_v35  ;;  %v1873_v35 = vmul.f32 0.5, %v3524_v53  ;;  %v3532_v60 = vpop.eup %3531 }
 0x5d0   :  { %v1842_v43 = vadd.f32 %v2968_v50, %v5061_v49  ;;  %v1838_v49 = vadd.f32 %v2964_v61, %v5000_v13  ;;  %v1704_v50 = vmul.f32 0.5, %v3522_v15  ;;  %v1874_v13 = vadd.f32 0.5, %v1870_v19 }
 0x5d1   :  { %v1713_v45 = vmul.f32 0.5, %v1673_v51  ;;  %3541 = vtanh.f32 %v1839_v62  ;;  %v1706_v51 = vadd.f32 0.5, %v1702_v48 }
 0x5d2   :  { %v1882_v56 = vmul.f32 0.5, %v1842_v43  ;;  %3543 = vtanh.f32 %v1838_v49  ;;  %v1877_v43 = vadd.f32 0.5, %v1873_v35 }
 0x5d3   :  { %3545 = vtanh.f32 %v1713_v45  ;;  %v1876_v45 = vadd.f32 0.5, %v1872_v39 }
 0x5d4   :  { %3547 = vtanh.f32 %v1882_v56  ;;  %v1901_v35 = vmul.f32 %v1877_v43, %v4902_v42 }
 0x5d6   :  { %v5071_v17 = vpop.f32.mrf.mxu0 }
 0x5d7   :  { %v5076_v36 = vpop.f32.mrf.mxu1  ;;  %v1674_v32 = vadd.f32 %v2937_v27, %v5071_v17  ;;  %v3534_v17 = vpop.eup %3533 }
 0x5d8   :  { %v1843_v20 = vadd.f32 %v2969_v26, %v5076_v36  ;;  %v2971_v36 = vld [vmem:[%s5637_s0 + $0x5f8] sm:$0xff]  ;;  %v1736_v26 = vmul.f32 %v3532_v60, %v5111_v58 }
 0x5d9   :  { %v1714_v15 = vmul.f32 0.5, %v1674_v32 }
 0x5da   :  { %v1883_v19 = vmul.f32 0.5, %v1843_v20 }
 0x5de   :  { %v1638_v52 = vpop.f32.mrf.mxu0 }
 0x5df   :  { %v1675_v18 = vadd.f32 %v2938_v24, %v1638_v52  ;;  %v1808_v29 = vpop.f32.mrf.mxu1  ;;  %v1705_v24 = vadd.f32 0.5, %v1701_v14  ;;  %v1703_v52 = vmul.f32 0.5, %v3526_v54  ;;  %v3536_v14 = vpop.eup %3535  ;;  %v1905_v54 = vmul.f32 %v3534_v17, %v5113_v33 }
 0x5e0   :  { %v1844_v40 = vadd.f32 %v2970_v57, %v1808_v29  ;;  %v1708_v57 = vadd.f32 0.5, %v1704_v50  ;;  %v3538_v53 = vpop.eup %3537  ;;  %v1735_v10 = vmul.f32 %v3536_v14, %v5100_v23  ;;  %v1900_v23 = vmul.f32 %v1876_v45, %v4910_v44 }
 0x5e1   :  { %v1715_v21 = vmul.f32 0.5, %v1675_v18  ;;  %v1707_v62 = vadd.f32 0.5, %v1703_v52  ;;  %v3540_v29 = vpop.eup %3539  ;;  %v1904_v60 = vmul.f32 %v3538_v53, %v5109_v25  ;;  %v5160_v39 = vadd.f32 %v1905_v54, %v1901_v35 }
 0x5e2   :  { %v1884_v61 = vmul.f32 0.5, %v1844_v40  ;;  %v3542_v40 = vpop.eup %3541  ;;  %v1732_v37 = vmul.f32 %v1708_v57, %v4898_v2  ;;  %v1734_v33 = vmul.f32 %v3540_v29, %v5089_v59  ;;  %v1730_v25 = vmul.f32 %v1706_v51, %v4913_v28 }
 0x5e3   :  { %3549 = vtanh.f32 %v1715_v21  ;;  %v3544_v32 = vpop.eup %3543  ;;  %v1731_v20 = vmul.f32 %v1707_v62, %v4906_v47  ;;  %v1903_v21 = vmul.f32 %v3542_v40, %v5098_v38  ;;  %v1899_v59 = vmul.f32 %v1875_v41, %v4917_v46 }
 0x5e4   :  { %3551 = vtanh.f32 %v1884_v61  ;;  %v3546_v56 = vpop.eup %3545  ;;  %v5156_v52 = vadd.f32 %v1736_v26, %v1732_v37  ;;  %v1733_v61 = vmul.f32 %v3530_v16, %v5081_v22  ;;  %v1902_v17 = vmul.f32 %v3544_v32, %v5087_v34 }
 0x5e5   :  { %3553 = vtanh.f32 %v1714_v15  ;;  %v3548_v2 = vpop.eup %3547  ;;  %v5168_v57 = vadd.f32 %v1904_v60, %v1900_v23  ;;  %v1729_v38 = vmul.f32 %v1705_v24, %v4920_v31  ;;  %v5171_v15 = vadd.f32 %v1734_v33, %v1730_v25  ;;  %v5685_v25 = vld [vmem:[#allocation3_spill] sm:$0xff] }
 0x5e6   :  { %v1641_v27 = vpop.f32.mrf.mxu0  ;;  %3555 = vtanh.f32 %v1883_v19  ;;  %v1898_v28 = vmul.f32 %v1874_v13, %v4923_v55  ;;  %v5175_v16 = vadd.f32 %v1903_v21, %v1899_v59  ;;  %v1721_v13 = vmul.f32 0.5, %v3546_v56 }
 0x5e7   :  { %v1676_v18 = vadd.f32 %v2939_v30, %v1641_v27  ;;  %v1811_v48 = vpop.f32.mrf.mxu1  ;;  %v5164_v30 = vadd.f32 %v1735_v10, %v1731_v20  ;;  %v5178_v51 = vadd.f32 %v1733_v61, %v1729_v38  ;;  %v1890_v62 = vmul.f32 0.5, %v3548_v2  ;;  %v5686_v61 = vld [vmem:[#allocation4_spill] sm:$0xff] }
 0x5e8   :  { %v1845_v49 = vadd.f32 %v2971_v36, %v1811_v48  ;;  %v5181_v31 = vadd.f32 %v1902_v17, %v1898_v28  ;;  %v1725_v10 = vadd.f32 0.5, %v1721_v13  ;;  %v2988_v13 = vld [vmem:[%s5637_s0 + $0x600] sm:$0xff] }
 0x5e9   :  { %v1716_v50 = vmul.f32 0.5, %v1676_v18  ;;  %v3550_v42 = vpop.eup %3549  ;;  %v1894_v35 = vadd.f32 0.5, %v1890_v62 }
 0x5ea   :  { %v1885_v58 = vmul.f32 0.5, %v1845_v49  ;;  %v3552_v47 = vpop.eup %3551  ;;  %v1723_v22 = vmul.f32 0.5, %v3550_v42  ;;  %v5684_v42 = vld [vmem:[#allocation2_spill] sm:$0xff] }
 0x5eb   :  { %3557 = vtanh.f32 %v1716_v50  ;;  %v3554_v44 = vpop.eup %3553  ;;  %v1892_v34 = vmul.f32 0.5, %v3552_v47  ;;  %v5687_v47 = vld [vmem:[#allocation5_spill] sm:$0xff] }
 0x5ec   :  { %3559 = vtanh.f32 %v1885_v58  ;;  %v3556_v36 = vpop.eup %3555  ;;  %v1722_v24 = vmul.f32 0.5, %v3554_v44  ;;  %v1727_v19 = vadd.f32 0.5, %v1723_v22 }
 0x5ed   :  { %3561 = vtanh.f32 %v5156_v52  ;;  %v1891_v43 = vmul.f32 0.5, %v3556_v36  ;;  %v1896_v26 = vadd.f32 0.5, %v1892_v34 }
 0x5ee   :  { %3563 = vtanh.f32 %v5160_v39  ;;  %v1726_v29 = vadd.f32 0.5, %v1722_v24 }
 0x5ef   :  { %3565 = vtanh.f32 %v5164_v30  ;;  %v1895_v49 = vadd.f32 0.5, %v1891_v43  ;;  %v2992_v43 = vld [vmem:[%s5637_s0 + $0x640] sm:$0xff] }
 0x5f0   :  { %3567 = vtanh.f32 %v5168_v57 }
 0x5f1   :  { %v3558_v46 = vpop.eup %3557  ;;  %3569 = vtanh.f32 %v5171_v15 }
 0x5f2   :  { %v3560_v14 = vpop.eup %3559  ;;  %v1724_v41 = vmul.f32 0.5, %v3558_v46  ;;  %3571 = vtanh.f32 %v5175_v16 }
 0x5f3   :  { %v1893_v55 = vmul.f32 0.5, %v3560_v14  ;;  %v3562_v53 = vpop.eup %3561  ;;  %3573 = vtanh.f32 %v5178_v51 }
 0x5f4   :  { %v1728_v27 = vadd.f32 0.5, %v1724_v41  ;;  %v3564_v48 = vpop.eup %3563  ;;  %3575 = vtanh.f32 %v5181_v31 }
 0x5f5   :  { %v1897_v18 = vadd.f32 0.5, %v1893_v55  ;;  %v3566_v54 = vpop.eup %3565  ;;  %v3024_v55 = vld [vmem:[%s5637_s0 + $0x648] sm:$0xff] }
 0x5f6   :  { %v1748_v45 = vmul.f32 %v3562_v53, %v1728_v27  ;;  %v3568_v37 = vpop.eup %3567  ;;  %v1747_v50 = vmul.f32 %v3566_v54, %v1727_v19  ;;  %v3020_v27 = vld [vmem:[%s5637_s0 + $0x608] sm:$0xff] }
 0x5f7   :  { %v1917_v40 = vmul.f32 %v3564_v48, %v1897_v18  ;;  %v3570_v32 = vpop.eup %3569  ;;  %v1916_v60 = vmul.f32 %v3568_v37, %v1896_v26 }
 0x5f8   :  { %1930 = vmatpush.msrb.mxu2 %v1748_v45  ;;  %v3572_v58 = vpop.eup %3571  ;;  %v1746_v56 = vmul.f32 %v3570_v32, %v1726_v29  ;;  %v2989_v29 = vld [vmem:[%s5637_s0 + $0x610] sm:$0xff]  ;;  %v3021_v45 = vld [vmem:[%s5637_s0 + $0x618] sm:$0xff] }
 0x5f9   :  { %2100 = vmatpush.msrb.mxu3 %v1917_v40  ;;  %v3574_v20 = vpop.eup %3573  ;;  %v1915_v33 = vmul.f32 %v3572_v58, %v1895_v49  ;;  %v2993_v40 = vld [vmem:[%s5637_s0 + $0x650] sm:$0xff] }
 0x5fa   :  { %1931 = vmatpush.msrb.mxu2 %v1747_v50  ;;  %v3576_v2 = vpop.eup %3575  ;;  %v1745_v23 = vmul.f32 %v3574_v20, %v1725_v10  ;;  %v3025_v50 = vld [vmem:[%s5637_s0 + $0x658] sm:$0xff] }
 0x5fb   :  { %2101 = vmatpush.msrb.mxu3 %v1916_v60  ;;  %v1914_v21 = vmul.f32 %v3576_v2, %v1894_v35 }
 0x5fc   :  { %1932 = vmatpush.msrb.mxu2 %v1746_v56 }
 0x5fd   :  { %2102 = vmatpush.msrb.mxu3 %v1915_v33 }
 0x5fe   :  { %1933 = vmatpush.msrb.mxu2 %v1745_v23 }
 0x5ff   :  { %2103 = vmatpush.msrb.mxu3 %v1914_v21  ;;  %2972 = vmatmul.msk.f32.vlgmr.msrb.gmra.mxu2 %vm174_vm0, %v3866_v63 }
 0x600   :  { %3004 = vmatmul.msk.f32.vlgmr.msrb.gmra.mxu3 %vm174_vm0, %v3866_v63 }
 0x607   :  { %2973 = vmatmul.msk.f32.gmra.mxu2 %vm174_vm0, %v3872_v0 }
 0x608   :  { %3005 = vmatmul.msk.f32.gmra.mxu3 %vm174_vm0, %v3872_v0 }
 0x60f   :  { %2974 = vmatmul.msk.f32.gmra.mxu2 %vm174_vm0, %v3878_v1 }
 0x610   :  { %3006 = vmatmul.msk.f32.gmra.mxu3 %vm174_vm0, %v3878_v1 }
 0x617   :  { %2975 = vmatmul.msk.f32.gmra.mxu2 %vm174_vm0, %v3884_v3 }
 0x618   :  { %3007 = vmatmul.msk.f32.gmra.mxu3 %vm174_vm0, %v3884_v3 }
 0x61f   :  { %2976 = vmatmul.msk.f32.gmra.mxu2 %vm174_vm0, %v3890_v4 }
 0x620   :  { %3008 = vmatmul.msk.f32.gmra.mxu3 %vm174_vm0, %v3890_v4 }
 0x627   :  { %2977 = vmatmul.msk.f32.gmra.mxu2 %vm174_vm0, %v3896_v5 }
 0x628   :  { %3009 = vmatmul.msk.f32.gmra.mxu3 %vm174_vm0, %v3896_v5 }
 0x62f   :  { %2978 = vmatmul.msk.f32.gmra.mxu2 %vm174_vm0, %v3902_v6 }
 0x630   :  { %3010 = vmatmul.msk.f32.gmra.mxu3 %vm174_vm0, %v3902_v6 }
 0x637   :  { %2979 = vmatmul.msk.f32.gmra.mxu2 %vm174_vm0, %v3908_v7 }
 0x638   :  { %3011 = vmatmul.msk.f32.gmra.mxu3 %vm174_vm0, %v3908_v7 }
 0x63f   :  { %2980 = vmatmul.msk.f32.gmra.mxu2 %vm174_vm0, %v3914_v8 }
 0x640   :  { %3012 = vmatmul.msk.f32.gmra.mxu3 %vm174_vm0, %v3914_v8 }
 0x647   :  { %2981 = vmatmul.msk.f32.gmra.mxu2 %vm174_vm0, %v3920_v9 }
 0x648   :  { %3013 = vmatmul.msk.f32.gmra.mxu3 %vm174_vm0, %v3920_v9 }
 0x64f   :  { %2982 = vmatmul.msk.f32.gmra.mxu2 %vm174_vm0, %v3926_v11 }
 0x650   :  { %3014 = vmatmul.msk.f32.gmra.mxu3 %vm174_vm0, %v3926_v11 }
 0x657   :  { %2983 = vmatmul.msk.f32.gmra.mxu2 %vm174_vm0, %v3932_v12 }
 0x658   :  { %3015 = vmatmul.msk.f32.gmra.mxu3 %vm174_vm0, %v3932_v12 }
 0x65f   :  { %2984 = vmatmul.msk.f32.gmra.mxu2 %vm174_vm0, %v5684_v42 }
 0x660   :  { %3016 = vmatmul.msk.f32.gmra.mxu3 %vm174_vm0, %v5684_v42 }
 0x667   :  { %2985 = vmatmul.msk.f32.gmra.mxu2 %vm174_vm0, %v5685_v25 }
 0x668   :  { %3017 = vmatmul.msk.f32.gmra.mxu3 %vm174_vm0, %v5685_v25 }
 0x66f   :  { %2986 = vmatmul.msk.f32.gmra.mxu2 %vm174_vm0, %v5686_v61 }
 0x670   :  { %3018 = vmatmul.msk.f32.gmra.mxu3 %vm174_vm0, %v5686_v61 }
 0x677   :  { %2987 = vmatmul.msk.f32.gmra.mxu2 %vm174_vm0, %v5687_v47 }
 0x678   :  { %3019 = vmatmul.msk.f32.gmra.mxu3 %vm174_vm0, %v5687_v47 }
 0x682   :  { %v1935_v59 = vpop.f32.mrf.mxu2 }
 0x683   :  { %v2105_v17 = vpop.f32.mrf.mxu3  ;;  %v2000_v18 = vadd.f32 %v2988_v13, %v1935_v59  ;;  %v2996_v59 = vld [vmem:[%s5637_s0 + $0x680] sm:$0xff] }
 0x684   :  { %v2169_v48 = vadd.f32 %v3020_v27, %v2105_v17 }
 0x685   :  { %v2016_v37 = vmul.f32 0.5, %v2000_v18 }
 0x686   :  { %v2185_v32 = vmul.f32 0.5, %v2169_v48 }
 0x68a   :  { %v1938_v44 = vpop.f32.mrf.mxu2 }
 0x68b   :  { %v2108_v38 = vpop.f32.mrf.mxu3  ;;  %v2001_v10 = vadd.f32 %v2989_v29, %v1938_v44  ;;  %v3028_v44 = vld [vmem:[%s5637_s0 + $0x688] sm:$0xff] }
 0x68c   :  { %v2170_v35 = vadd.f32 %v3021_v45, %v2108_v38  ;;  %v2997_v45 = vld [vmem:[%s5637_s0 + $0x690] sm:$0xff] }
 0x68d   :  { %v2017_v33 = vmul.f32 0.5, %v2001_v10 }
 0x68e   :  { %v2186_v2 = vmul.f32 0.5, %v2170_v35 }
 0x692   :  { %v5252_v36 = vpop.f32.mrf.mxu2 }
 0x693   :  { %v5254_v28 = vpop.f32.mrf.mxu3 }
 0x69a   :  { %v5256_v22 = vpop.f32.mrf.mxu2 }
 0x69b   :  { %v5258_v46 = vpop.f32.mrf.mxu3 }
 0x6a2   :  { %v1947_v34 = vpop.f32.mrf.mxu2 }
 0x6a3   :  { %v2117_v14 = vpop.f32.mrf.mxu3  ;;  %v2004_v53 = vadd.f32 %v2992_v43, %v1947_v34 }
 0x6a4   :  { %v2173_v26 = vadd.f32 %v3024_v55, %v2117_v14 }
 0x6a5   :  { %v2032_v54 = vmul.f32 0.5, %v2004_v53 }
 0x6a6   :  { %v2201_v49 = vmul.f32 0.5, %v2173_v26 }
 0x6a7   :  { %3577 = vtanh.f32 %v2032_v54 }
 0x6a8   :  { %3579 = vtanh.f32 %v2201_v49 }
 0x6a9   :  { %3581 = vtanh.f32 %v2016_v37 }
 0x6aa   :  { %v1950_v24 = vpop.f32.mrf.mxu2  ;;  %3583 = vtanh.f32 %v2185_v32 }
 0x6ab   :  { %v2120_v41 = vpop.f32.mrf.mxu3  ;;  %v2005_v58 = vadd.f32 %v2993_v40, %v1950_v24  ;;  %3585 = vtanh.f32 %v2017_v33  ;;  %v3029_v40 = vld [vmem:[%s5637_s0 + $0x698] sm:$0xff] }
 0x6ac   :  { %v2174_v20 = vadd.f32 %v3025_v50, %v2120_v41  ;;  %3587 = vtanh.f32 %v2186_v2 }
 0x6ad   :  { %v2033_v23 = vmul.f32 0.5, %v2005_v58  ;;  %v3578_v17 = vpop.eup %3577 }
 0x6ae   :  { %v2202_v21 = vmul.f32 0.5, %v2174_v20  ;;  %v3580_v38 = vpop.eup %3579  ;;  %v2040_v55 = vmul.f32 0.5, %v3578_v17 }
 0x6af   :  { %v3582_v14 = vpop.eup %3581  ;;  %3589 = vtanh.f32 %v2033_v23  ;;  %v2209_v27 = vmul.f32 0.5, %v3580_v38 }
 0x6b0   :  { %v3584_v43 = vpop.eup %3583  ;;  %3591 = vtanh.f32 %v2202_v21  ;;  %v2024_v53 = vmul.f32 0.5, %v3582_v14  ;;  %v2044_v29 = vadd.f32 0.5, %v2040_v55 }
 0x6b1   :  { %v3586_v26 = vpop.eup %3585  ;;  %v2193_v18 = vmul.f32 0.5, %v3584_v43  ;;  %v2213_v49 = vadd.f32 0.5, %v2209_v27 }
 0x6b2   :  { %v5269_v19 = vpop.f32.mrf.mxu2  ;;  %v3588_v48 = vpop.eup %3587  ;;  %v2028_v10 = vadd.f32 0.5, %v2024_v53  ;;  %v2068_v2 = vmul.f32 %v2044_v29, %v5178_v51 }
 0x6b3   :  { %v5274_v62 = vpop.f32.mrf.mxu3  ;;  %v2197_v35 = vadd.f32 0.5, %v2193_v18  ;;  %v2237_v17 = vmul.f32 %v2213_v49, %v5181_v31 }
 0x6b5   :  { %v3590_v54 = vpop.eup %3589 }
 0x6b6   :  { %v3592_v37 = vpop.eup %3591  ;;  %v2041_v23 = vmul.f32 0.5, %v3590_v54 }
 0x6b8   :  { %v2045_v43 = vadd.f32 0.5, %v2041_v23 }
 0x6ba   :  { %v5288_v60 = vpop.f32.mrf.mxu2  ;;  %v2069_v31 = vmul.f32 %v2045_v43, %v5171_v15  ;;  %v2991_v15 = vld [vmem:[%s5637_s0 + $0x630] sm:$0xff] }
 0x6bb   :  { %v5290_v56 = vpop.f32.mrf.mxu3 }
 0x6c2   :  { %v1959_v34 = vpop.f32.mrf.mxu2 }
 0x6c3   :  { %v2008_v24 = vadd.f32 %v2996_v59, %v1959_v34  ;;  %v2129_v41 = vpop.f32.mrf.mxu3  ;;  %v2025_v34 = vmul.f32 0.5, %v3586_v26 }
 0x6c4   :  { %v2177_v13 = vadd.f32 %v3028_v44, %v2129_v41  ;;  %v2210_v44 = vmul.f32 0.5, %v3592_v37 }
 0x6c5   :  { %3593 = vtanh.f32 %v2008_v24  ;;  %v2194_v24 = vmul.f32 0.5, %v3588_v48 }
 0x6c6   :  { %3595 = vtanh.f32 %v2177_v13  ;;  %v2214_v55 = vadd.f32 0.5, %v2210_v44  ;;  %v2029_v13 = vadd.f32 0.5, %v2025_v34 }
 0x6c7   :  { %v2198_v53 = vadd.f32 0.5, %v2194_v24 }
 0x6c8   :  { %v2238_v54 = vmul.f32 %v2214_v55, %v5175_v16 }
 0x6ca   :  { %v1962_v50 = vpop.f32.mrf.mxu2 }
 0x6cb   :  { %v3594_v32 = vpop.eup %3593  ;;  %v2009_v58 = vadd.f32 %v2997_v45, %v1962_v50  ;;  %v2132_v20 = vpop.f32.mrf.mxu3  ;;  %v3022_v50 = vld [vmem:[%s5637_s0 + $0x628] sm:$0xff] }
 0x6cc   :  { %v3596_v33 = vpop.eup %3595  ;;  %v2072_v21 = vmul.f32 %v3594_v32, %v2028_v10  ;;  %v2178_v59 = vadd.f32 %v3029_v40, %v2132_v20  ;;  %v2990_v10 = vld [vmem:[%s5637_s0 + $0x620] sm:$0xff]  ;;  %v3023_v32 = vld [vmem:[%s5637_s0 + $0x638] sm:$0xff]  ;;  %v2003_v20 = vadd.f32 %v2991_v15, %v5256_v22 }
 0x6cd   :  { %v2241_v38 = vmul.f32 %v3596_v33, %v2197_v35  ;;  %3597 = vtanh.f32 %v2009_v58  ;;  %v2002_v16 = vadd.f32 %v2990_v10, %v5252_v36  ;;  %v2171_v35 = vadd.f32 %v3022_v50, %v5254_v28  ;;  %v2995_v58 = vld [vmem:[%s5637_s0 + $0x670] sm:$0xff]  ;;  %v3027_v33 = vld [vmem:[%s5637_s0 + $0x678] sm:$0xff]  ;;  %v2994_v36 = vld [vmem:[%s5637_s0 + $0x660] sm:$0xff] }
 0x6ce   :  { %v5306_v14 = vadd.f32 %v2072_v21, %v2068_v2  ;;  %3599 = vtanh.f32 %v2178_v59  ;;  %v2172_v23 = vadd.f32 %v3023_v32, %v5258_v46  ;;  %v3026_v28 = vld [vmem:[%s5637_s0 + $0x668] sm:$0xff]  ;;  %v2176_v44 = vadd.f32 %v3027_v33, %v5290_v56  ;;  %v3002_v32 = vld [vmem:[%s5637_s0 + $0x6e0] sm:$0xff] }
 0x6cf   :  { %v5308_v41 = vadd.f32 %v2241_v38, %v2237_v17  ;;  %v2018_v59 = vmul.f32 0.5, %v2002_v16  ;;  %v2007_v17 = vadd.f32 %v2995_v58, %v5288_v60  ;;  %v2187_v22 = vmul.f32 0.5, %v2171_v35  ;;  %v2999_v60 = vld [vmem:[%s5637_s0 + $0x6b0] sm:$0xff]  ;;  %v3032_v50 = vld [vmem:[%s5637_s0 + $0x6c8] sm:$0xff] }
 0x6d0   :  { %v2019_v38 = vmul.f32 0.5, %v2003_v20  ;;  %v2006_v34 = vadd.f32 %v2994_v36, %v5269_v19  ;;  %v2188_v24 = vmul.f32 0.5, %v2172_v23  ;;  %v2175_v46 = vadd.f32 %v3026_v28, %v5274_v62  ;;  %v3031_v19 = vld [vmem:[%s5637_s0 + $0x6b8] sm:$0xff]  ;;  %v2998_v62 = vld [vmem:[%s5637_s0 + $0x6a0] sm:$0xff]  ;;  %v3034_v20 = vld [vmem:[%s5637_s0 + $0x6e8] sm:$0xff] }
 0x6d1   :  { %3601 = vtanh.f32 %v2018_v59  ;;  %v2035_v43 = vmul.f32 0.5, %v2007_v17  ;;  %v2204_v55 = vmul.f32 0.5, %v2176_v44  ;;  %v3001_v23 = vld [vmem:[%s5637_s0 + $0x6d0] sm:$0xff] }
 0x6d2   :  { %v1965_v27 = vpop.f32.mrf.mxu2  ;;  %3603 = vtanh.f32 %v2187_v22 }
 0x6d3   :  { %v3598_v51 = vpop.eup %3597  ;;  %v2135_v18 = vpop.f32.mrf.mxu3  ;;  %3605 = vtanh.f32 %v2019_v38  ;;  %v2010_v16 = vadd.f32 %v2998_v62, %v1965_v27 }
 0x6d4   :  { %v3600_v29 = vpop.eup %3599  ;;  %v2073_v45 = vmul.f32 %v3598_v51, %v2029_v13  ;;  %v2034_v13 = vmul.f32 0.5, %v2006_v34  ;;  %3607 = vtanh.f32 %v2188_v24 }
 0x6d5   :  { %v2242_v26 = vmul.f32 %v3600_v29, %v2198_v53  ;;  %v2203_v53 = vmul.f32 0.5, %v2175_v46  ;;  %3609 = vtanh.f32 %v2035_v43 }
 0x6d6   :  { %v5312_v49 = vadd.f32 %v2073_v45, %v2069_v31  ;;  %3611 = vtanh.f32 %v2204_v55  ;;  %v3030_v31 = vld [vmem:[%s5637_s0 + $0x6a8] sm:$0xff] }
 0x6d7   :  { %v5314_v40 = vadd.f32 %v2242_v26, %v2238_v54  ;;  %v3602_v29 = vpop.eup %3601  ;;  %3613 = vtanh.f32 %v2034_v13  ;;  %v3000_v54 = vld [vmem:[%s5637_s0 + $0x6c0] sm:$0xff]  ;;  %v2179_v58 = vadd.f32 %v3030_v31, %v2135_v18  ;;  %v3033_v18 = vld [vmem:[%s5637_s0 + $0x6d8] sm:$0xff] }
 0x6d8   :  { %v3604_v26 = vpop.eup %3603  ;;  %3615 = vtanh.f32 %v2203_v53  ;;  %v2026_v59 = vmul.f32 0.5, %v3602_v29 }
 0x6d9   :  { %v3606_v15 = vpop.eup %3605  ;;  %v2195_v22 = vmul.f32 0.5, %v3604_v26  ;;  %v3003_v26 = vld [vmem:[%s5637_s0 + $0x6f0] sm:$0xff] }
 0x6da   :  { %v1968_v48 = vpop.f32.mrf.mxu2  ;;  %v3608_v35 = vpop.eup %3607  ;;  %v2027_v44 = vmul.f32 0.5, %v3606_v15  ;;  %v2030_v29 = vadd.f32 0.5, %v2026_v59 }
 0x6db   :  { %v2138_v37 = vpop.f32.mrf.mxu3  ;;  %v2011_v45 = vadd.f32 %v2999_v60, %v1968_v48  ;;  %v3610_v33 = vpop.eup %3609  ;;  %v2196_v43 = vmul.f32 0.5, %v3608_v35  ;;  %v2199_v31 = vadd.f32 0.5, %v2195_v22 }
 0x6dc   :  { %v2180_v10 = vadd.f32 %v3031_v19, %v2138_v37  ;;  %v3612_v27 = vpop.eup %3611  ;;  %v2043_v34 = vmul.f32 0.5, %v3610_v33 }
 0x6dd   :  { %3617 = vtanh.f32 %v2011_v45  ;;  %v3614_v17 = vpop.eup %3613  ;;  %v2212_v55 = vmul.f32 0.5, %v3612_v27 }
 0x6de   :  { %3619 = vtanh.f32 %v2180_v10  ;;  %v2042_v60 = vmul.f32 0.5, %v3614_v17  ;;  %v2047_v15 = vadd.f32 0.5, %v2043_v34 }
 0x6df   :  { %3621 = vtanh.f32 %v2010_v16  ;;  %v2216_v35 = vadd.f32 0.5, %v2212_v55 }
 0x6e0   :  { %3623 = vtanh.f32 %v2179_v58  ;;  %v2046_v33 = vadd.f32 0.5, %v2042_v60 }
 0x6e1   :  { %v2240_v22 = vmul.f32 %v2216_v35, %v5160_v39 }
 0x6e2   :  { %v1971_v2 = vpop.f32.mrf.mxu2  ;;  %v2070_v34 = vmul.f32 %v2046_v33, %v5164_v30 }
 0x6e3   :  { %v2141_v21 = vpop.f32.mrf.mxu3  ;;  %v2012_v48 = vadd.f32 %v3000_v54, %v1971_v2 }
 0x6e4   :  { %v2181_v37 = vadd.f32 %v3032_v50, %v2141_v21  ;;  %v3616_v21 = vpop.eup %3615  ;;  %v2031_v50 = vadd.f32 0.5, %v2027_v44 }
 0x6e5   :  { %v2052_v24 = vmul.f32 0.5, %v2012_v48  ;;  %v3618_v62 = vpop.eup %3617  ;;  %v2211_v45 = vmul.f32 0.5, %v3616_v21 }
 0x6e6   :  { %v2221_v13 = vmul.f32 0.5, %v2181_v37  ;;  %v3620_v10 = vpop.eup %3619  ;;  %v2075_v37 = vmul.f32 %v3618_v62, %v2031_v50 }
 0x6e7   :  { %3625 = vtanh.f32 %v2052_v24  ;;  %v3622_v16 = vpop.eup %3621  ;;  %v2215_v27 = vadd.f32 0.5, %v2211_v45 }
 0x6e8   :  { %3627 = vtanh.f32 %v2221_v13 }
 0x6ea   :  { %v1974_v51 = vpop.f32.mrf.mxu2 }
 0x6eb   :  { %v2144_v56 = vpop.f32.mrf.mxu3  ;;  %v2013_v46 = vadd.f32 %v3001_v23, %v1974_v51 }
 0x6ec   :  { %v2182_v53 = vadd.f32 %v3033_v18, %v2144_v56  ;;  %v3035_v56 = vld [vmem:[%s5637_s0 + $0x6f8] sm:$0xff] }
 0x6ed   :  { %v2053_v51 = vmul.f32 0.5, %v2013_v46 }
 0x6ee   :  { %v2222_v58 = vmul.f32 0.5, %v2182_v53 }
 0x6f2   :  { %v1977_v36 = vpop.f32.mrf.mxu2 }
 0x6f3   :  { %v2014_v2 = vadd.f32 %v3002_v32, %v1977_v36  ;;  %v2147_v28 = vpop.f32.mrf.mxu3  ;;  %v2200_v32 = vadd.f32 0.5, %v2196_v43  ;;  %v2239_v43 = vmul.f32 %v2215_v27, %v5168_v57 }
 0x6f4   :  { %v2183_v38 = vadd.f32 %v3034_v20, %v2147_v28  ;;  %v3624_v20 = vpop.eup %3623  ;;  %v2074_v28 = vmul.f32 %v3622_v16, %v2030_v29 }
 0x6f5   :  { %v2054_v19 = vmul.f32 0.5, %v2014_v2  ;;  %v2244_v59 = vmul.f32 %v3620_v10, %v2200_v32  ;;  %v2071_v2 = vmul.f32 %v2047_v15, %v5156_v52  ;;  %v2243_v44 = vmul.f32 %v3624_v20, %v2199_v31  ;;  %v3626_v21 = vpop.eup %3625 }
 0x6f6   :  { %v2223_v54 = vmul.f32 0.5, %v2183_v38  ;;  %v3628_v46 = vpop.eup %3627  ;;  %v5392_v13 = vadd.f32 %v2074_v28, %v2070_v34  ;;  %v2060_v10 = vmul.f32 0.5, %v3626_v21 }
 0x6f7   :  { %3629 = vtanh.f32 %v2054_v19  ;;  %v5387_v24 = vadd.f32 %v2075_v37, %v2071_v2  ;;  %v5390_v55 = vadd.f32 %v2244_v59, %v2240_v22  ;;  %v5394_v39 = vadd.f32 %v2243_v44, %v2239_v43  ;;  %v3056_v43 = vld [vmem:[%s5637_s0 + $0x740] sm:$0xff] }
 0x6f8   :  { %3631 = vtanh.f32 %v2223_v54 }
 0x6f9   :  { %3633 = vtanh.f32 %v2053_v51 }
 0x6fa   :  { %v1980_v48 = vpop.f32.mrf.mxu2  ;;  %3635 = vtanh.f32 %v2222_v58 }
 0x6fb   :  { %v2015_v23 = vadd.f32 %v3003_v26, %v1980_v48  ;;  %v2150_v36 = vpop.f32.mrf.mxu3 }
 0x6fc   :  { %v2184_v18 = vadd.f32 %v3035_v56, %v2150_v36  ;;  %v2229_v56 = vmul.f32 0.5, %v3628_v46  ;;  %v2064_v36 = vadd.f32 0.5, %v2060_v10 }
 0x6fd   :  { %v2055_v17 = vmul.f32 0.5, %v2015_v23  ;;  %v3630_v52 = vpop.eup %3629 }
 0x6fe   :  { %v2224_v38 = vmul.f32 0.5, %v2184_v18  ;;  %v3632_v53 = vpop.eup %3631  ;;  %v2062_v30 = vmul.f32 0.5, %v3630_v52  ;;  %v2233_v18 = vadd.f32 0.5, %v2229_v56  ;;  %v3088_v52 = vld [vmem:[%s5637_s0 + $0x748] sm:$0xff]  ;;  %v3089_v56 = vld [vmem:[%s5637_s0 + $0x758] sm:$0xff] }
 0x6ff   :  { %3637 = vtanh.f32 %v2055_v17  ;;  %v3634_v60 = vpop.eup %3633  ;;  %v2231_v29 = vmul.f32 0.5, %v3632_v53  ;;  %v3052_v53 = vld [vmem:[%s5637_s0 + $0x700] sm:$0xff] }
 0x700   :  { %3639 = vtanh.f32 %v2224_v38  ;;  %v3636_v19 = vpop.eup %3635  ;;  %v2061_v31 = vmul.f32 0.5, %v3634_v60  ;;  %v2066_v50 = vadd.f32 0.5, %v2062_v30 }
 0x701   :  { %3641 = vtanh.f32 %v5387_v24  ;;  %v2230_v54 = vmul.f32 0.5, %v3636_v19  ;;  %v2235_v16 = vadd.f32 0.5, %v2231_v29  ;;  %v3084_v19 = vld [vmem:[%s5637_s0 + $0x708] sm:$0xff] }
 0x702   :  { %3643 = vtanh.f32 %v5390_v55  ;;  %v2065_v58 = vadd.f32 0.5, %v2061_v31 }
 0x703   :  { %3645 = vtanh.f32 %v5392_v13  ;;  %v2234_v33 = vadd.f32 0.5, %v2230_v54  ;;  %v3085_v54 = vld [vmem:[%s5637_s0 + $0x718] sm:$0xff] }
 0x704   :  { %3647 = vtanh.f32 %v5394_v39 }
 0x705   :  { %v3638_v62 = vpop.eup %3637  ;;  %3649 = vtanh.f32 %v5312_v49 }
 0x706   :  { %v3640_v57 = vpop.eup %3639  ;;  %v2063_v45 = vmul.f32 0.5, %v3638_v62  ;;  %3651 = vtanh.f32 %v5314_v40 }
 0x707   :  { %v2232_v26 = vmul.f32 0.5, %v3640_v57  ;;  %v3642_v51 = vpop.eup %3641  ;;  %3653 = vtanh.f32 %v5306_v14 }
 0x708   :  { %v2067_v15 = vadd.f32 0.5, %v2063_v45  ;;  %v3644_v35 = vpop.eup %3643  ;;  %3655 = vtanh.f32 %v5308_v41  ;;  %v3053_v45 = vld [vmem:[%s5637_s0 + $0x710] sm:$0xff] }
 0x709   :  { %v2236_v32 = vadd.f32 0.5, %v2232_v26  ;;  %v3646_v20 = vpop.eup %3645 }
 0x70a   :  { %v2087_v48 = vmul.f32 %v3642_v51, %v2067_v15  ;;  %v3648_v23 = vpop.eup %3647  ;;  %v2086_v27 = vmul.f32 %v3646_v20, %v2066_v50  ;;  %v3057_v50 = vld [vmem:[%s5637_s0 + $0x750] sm:$0xff] }
 0x70b   :  { %v2256_v37 = vmul.f32 %v3644_v35, %v2236_v32  ;;  %v3650_v59 = vpop.eup %3649  ;;  %v2255_v2 = vmul.f32 %v3648_v23, %v2235_v16 }
 0x70c   :  { %2269 = vmatpush.msrb.mxu0 %v2087_v48  ;;  %v3652_v28 = vpop.eup %3651  ;;  %v2085_v17 = vmul.f32 %v3650_v59, %v2065_v58 }
 0x70d   :  { %2439 = vmatpush.msrb.mxu1 %v2256_v37  ;;  %v3654_v22 = vpop.eup %3653  ;;  %v2254_v44 = vmul.f32 %v3652_v28, %v2234_v33 }
 0x70e   :  { %2270 = vmatpush.msrb.mxu0 %v2086_v27  ;;  %v3656_v38 = vpop.eup %3655  ;;  %v2084_v21 = vmul.f32 %v3654_v22, %v2064_v36  ;;  %v3060_v27 = vld [vmem:[%s5637_s0 + $0x780] sm:$0xff] }
 0x70f   :  { %2440 = vmatpush.msrb.mxu1 %v2255_v2  ;;  %v2253_v34 = vmul.f32 %v3656_v38, %v2233_v18  ;;  %v3092_v18 = vld [vmem:[%s5637_s0 + $0x788] sm:$0xff] }
 0x710   :  { %2271 = vmatpush.msrb.mxu0 %v2085_v17 }
 0x711   :  { %2441 = vmatpush.msrb.mxu1 %v2254_v44 }
 0x712   :  { %2272 = vmatpush.msrb.mxu0 %v2084_v21 }
 0x713   :  { %2442 = vmatpush.msrb.mxu1 %v2253_v34  ;;  %3036 = vmatmul.msk.f32.vlgmr.msrb.gmra.mxu0 %vm174_vm0, %v3866_v63 }
 0x714   :  { %3068 = vmatmul.msk.f32.vlgmr.msrb.gmra.mxu1 %vm174_vm0, %v3866_v63  ;;  %v18_v63 = vld [vmem:[%s5638_s2] sm:$0xff] }
 0x71b   :  { %3037 = vmatmul.msk.f32.gmra.mxu0 %vm174_vm0, %v3872_v0 }
 0x71c   :  { %3069 = vmatmul.msk.f32.gmra.mxu1 %vm174_vm0, %v3872_v0  ;;  %v3737_v0 = vmov 0  }
 0x71d   :  { %3110 = vset.pattern.permute.xlu1 %v3737_v0  ;;  %3111 = vset.pattern.permute.xlu2 %v3737_v0 }
 0x71e   :  { %2598 = vperm.xlu1 %3110, %v18_v63   ;;  %3112 = vset.pattern.permute.xlu0 %v3737_v0 }
 0x723   :  { %3038 = vmatmul.msk.f32.gmra.mxu0 %vm174_vm0, %v3878_v1 }
 0x724   :  { %3070 = vmatmul.msk.f32.gmra.mxu1 %vm174_vm0, %v3878_v1  ;;  %v19_v1 = vld [vmem:[%s5638_s2 + $0x8] sm:$0xff] }
 0x726   :  { %2603 = vperm.xlu1 %3110, %v19_v1  }
 0x72b   :  { %3039 = vmatmul.msk.f32.gmra.mxu0 %vm174_vm0, %v3884_v3 }
 0x72c   :  { %3071 = vmatmul.msk.f32.gmra.mxu1 %vm174_vm0, %v3884_v3 }
 0x733   :  { %3040 = vmatmul.msk.f32.gmra.mxu0 %vm174_vm0, %v3890_v4 }
 0x734   :  { %3072 = vmatmul.msk.f32.gmra.mxu1 %vm174_vm0, %v3890_v4 }
 0x73b   :  { %3041 = vmatmul.msk.f32.gmra.mxu0 %vm174_vm0, %v3896_v5 }
 0x73c   :  { %3073 = vmatmul.msk.f32.gmra.mxu1 %vm174_vm0, %v3896_v5  ;;  %v20_v5 = vld [vmem:[%s5638_s2 + $0x10] sm:$0xff] }
 0x73d   :  { %2608 = vperm.xlu2 %3111, %v20_v5  }
 0x743   :  { %3042 = vmatmul.msk.f32.gmra.mxu0 %vm174_vm0, %v3902_v6 }
 0x744   :  { %3074 = vmatmul.msk.f32.gmra.mxu1 %vm174_vm0, %v3902_v6 }
 0x74b   :  { %3043 = vmatmul.msk.f32.gmra.mxu0 %vm174_vm0, %v3908_v7 }
 0x74c   :  { %3075 = vmatmul.msk.f32.gmra.mxu1 %vm174_vm0, %v3908_v7 }
 0x753   :  { %3044 = vmatmul.msk.f32.gmra.mxu0 %vm174_vm0, %v3914_v8 }
 0x754   :  { %3076 = vmatmul.msk.f32.gmra.mxu1 %vm174_vm0, %v3914_v8  ;;  %v21_v8 = vld [vmem:[%s5638_s2 + $0x18] sm:$0xff] }
 0x755   :  { %2613 = vperm.xlu2 %3111, %v21_v8  }
 0x75b   :  { %3045 = vmatmul.msk.f32.gmra.mxu0 %vm174_vm0, %v3920_v9 }
 0x75c   :  { %3077 = vmatmul.msk.f32.gmra.mxu1 %vm174_vm0, %v3920_v9 }
 0x763   :  { %3046 = vmatmul.msk.f32.gmra.mxu0 %vm174_vm0, %v3926_v11 }
 0x764   :  { %3078 = vmatmul.msk.f32.gmra.mxu1 %vm174_vm0, %v3926_v11 }
 0x76b   :  { %3047 = vmatmul.msk.f32.gmra.mxu0 %vm174_vm0, %v3932_v12 }
 0x76c   :  { %3079 = vmatmul.msk.f32.gmra.mxu1 %vm174_vm0, %v3932_v12 }
 0x773   :  { %3048 = vmatmul.msk.f32.gmra.mxu0 %vm174_vm0, %v5684_v42 }
 0x774   :  { %3080 = vmatmul.msk.f32.gmra.mxu1 %vm174_vm0, %v5684_v42 }
 0x77b   :  { %3049 = vmatmul.msk.f32.gmra.mxu0 %vm174_vm0, %v5685_v25 }
 0x77c   :  { %3081 = vmatmul.msk.f32.gmra.mxu1 %vm174_vm0, %v5685_v25 }
 0x783   :  { %3050 = vmatmul.msk.f32.gmra.mxu0 %vm174_vm0, %v5686_v61 }
 0x784   :  { %3082 = vmatmul.msk.f32.gmra.mxu1 %vm174_vm0, %v5686_v61 }
 0x78b   :  { %3051 = vmatmul.msk.f32.gmra.mxu0 %vm174_vm0, %v5687_v47 }
 0x78c   :  { %3083 = vmatmul.msk.f32.gmra.mxu1 %vm174_vm0, %v5687_v47 }
 0x790   :  { %v2274_v3 = vpop.f32.mrf.mxu0 }
 0x791   :  { %v2444_v4 = vpop.f32.mrf.mxu1  ;;  %v2339_v57 = vadd.f32 %v3052_v53, %v2274_v3 }
 0x792   :  { %v2508_v31 = vadd.f32 %v3084_v19, %v2444_v4 }
 0x793   :  { %v2355_v15 = vmul.f32 0.5, %v2339_v57 }
 0x794   :  { %v2524_v16 = vmul.f32 0.5, %v2508_v31 }
 0x798   :  { %v2277_v6 = vpop.f32.mrf.mxu0 }
 0x799   :  { %v2447_v7 = vpop.f32.mrf.mxu1  ;;  %v2340_v51 = vadd.f32 %v3053_v45, %v2277_v6  ;;  %v3061_v6 = vld [vmem:[%s5637_s0 + $0x790] sm:$0xff] }
 0x79a   :  { %v2509_v32 = vadd.f32 %v3085_v54, %v2447_v7 }
 0x79b   :  { %v2356_v33 = vmul.f32 0.5, %v2340_v51 }
 0x79c   :  { %v2525_v37 = vmul.f32 0.5, %v2509_v32 }
 0x7a0   :  { %v5480_v9 = vpop.f32.mrf.mxu0 }
 0x7a1   :  { %v5482_v11 = vpop.f32.mrf.mxu1 }
 0x7a8   :  { %v5484_v12 = vpop.f32.mrf.mxu0 }
 0x7a9   :  { %v5486_v42 = vpop.f32.mrf.mxu1 }
 0x7b0   :  { %v2286_v25 = vpop.f32.mrf.mxu0 }
 0x7b1   :  { %v2456_v61 = vpop.f32.mrf.mxu1  ;;  %v2343_v30 = vadd.f32 %v3056_v43, %v2286_v25  ;;  %v3093_v25 = vld [vmem:[%s5637_s0 + $0x798] sm:$0xff] }
 0x7b2   :  { %v2512_v29 = vadd.f32 %v3088_v52, %v2456_v61 }
 0x7b3   :  { %v2371_v26 = vmul.f32 0.5, %v2343_v30 }
 0x7b4   :  { %v2540_v10 = vmul.f32 0.5, %v2512_v29 }
 0x7b5   :  { %3657 = vtanh.f32 %v2371_v26 }
 0x7b6   :  { %3659 = vtanh.f32 %v2540_v10 }
 0x7b7   :  { %3661 = vtanh.f32 %v2355_v15 }
 0x7b8   :  { %v2289_v47 = vpop.f32.mrf.mxu0  ;;  %3663 = vtanh.f32 %v2524_v16 }
 0x7b9   :  { %v2459_v46 = vpop.f32.mrf.mxu1  ;;  %v2344_v58 = vadd.f32 %v3057_v50, %v2289_v47  ;;  %3665 = vtanh.f32 %v2356_v33 }
 0x7ba   :  { %v2513_v20 = vadd.f32 %v3089_v56, %v2459_v46  ;;  %3667 = vtanh.f32 %v2525_v37 }
 0x7bb   :  { %v2372_v23 = vmul.f32 0.5, %v2344_v58  ;;  %v3658_v59 = vpop.eup %3657 }
 0x7bc   :  { %v2541_v36 = vmul.f32 0.5, %v2513_v20  ;;  %v3660_v2 = vpop.eup %3659  ;;  %v2379_v21 = vmul.f32 0.5, %v3658_v59 }
 0x7bd   :  { %v3662_v17 = vpop.eup %3661  ;;  %3669 = vtanh.f32 %v2372_v23  ;;  %v2548_v63 = vmul.f32 0.5, %v3660_v2 }
 0x7be   :  { %v3664_v38 = vpop.eup %3663  ;;  %3671 = vtanh.f32 %v2541_v36  ;;  %v2363_v0 = vmul.f32 0.5, %v3662_v17  ;;  %v2383_v5 = vadd.f32 0.5, %v2379_v21 }
 0x7bf   :  { %v3666_v1 = vpop.eup %3665  ;;  %v2532_v3 = vmul.f32 0.5, %v3664_v38  ;;  %v2552_v8 = vadd.f32 0.5, %v2548_v63  ;;  %v3055_v38 = vld [vmem:[%s5637_s0 + $0x730] sm:$0xff] }
 0x7c0   :  { %v5497_v60 = vpop.f32.mrf.mxu0  ;;  %v3668_v4 = vpop.eup %3667  ;;  %v2367_v47 = vadd.f32 0.5, %v2363_v0  ;;  %v2407_v29 = vmul.f32 %v2383_v5, %v5306_v14  ;;  %v2364_v50 = vmul.f32 0.5, %v3666_v1 }
 0x7c1   :  { %v5502_v62 = vpop.f32.mrf.mxu1  ;;  %v2536_v52 = vadd.f32 0.5, %v2532_v3  ;;  %v2576_v54 = vmul.f32 %v2552_v8, %v5308_v41  ;;  %v2533_v51 = vmul.f32 0.5, %v3668_v4  ;;  %v2342_v3 = vadd.f32 %v3055_v38, %v5484_v12  ;;  %v3096_v12 = vld [vmem:[%s5637_s0 + $0x7c8] sm:$0xff] }
 0x7c2   :  { %v2368_v58 = vadd.f32 0.5, %v2364_v50 }
 0x7c3   :  { %v3670_v7 = vpop.eup %3669  ;;  %v2537_v33 = vadd.f32 0.5, %v2533_v51  ;;  %v2358_v8 = vmul.f32 0.5, %v2342_v3 }
 0x7c4   :  { %v3672_v61 = vpop.eup %3671  ;;  %v2380_v57 = vmul.f32 0.5, %v3670_v7  ;;  %v3059_v7 = vld [vmem:[%s5637_s0 + $0x770] sm:$0xff] }
 0x7c5   :  { %v2549_v26 = vmul.f32 0.5, %v3672_v61 }
 0x7c6   :  { %v2384_v16 = vadd.f32 0.5, %v2380_v57 }
 0x7c7   :  { %v2553_v32 = vadd.f32 0.5, %v2549_v26 }
 0x7c8   :  { %v5516_v35 = vpop.f32.mrf.mxu0  ;;  %v2408_v41 = vmul.f32 %v2384_v16, %v5312_v49  ;;  %v3058_v49 = vld [vmem:[%s5637_s0 + $0x760] sm:$0xff] }
 0x7c9   :  { %v5518_v48 = vpop.f32.mrf.mxu1  ;;  %v2345_v63 = vadd.f32 %v3058_v49, %v5497_v60  ;;  %v3064_v60 = vld [vmem:[%s5637_s0 + $0x7c0] sm:$0xff] }
 0x7cb   :  { %v2373_v5 = vmul.f32 0.5, %v2345_v63 }
 0x7d0   :  { %v2298_v28 = vpop.f32.mrf.mxu0 }
 0x7d1   :  { %v2347_v22 = vadd.f32 %v3060_v27, %v2298_v28  ;;  %v2468_v44 = vpop.f32.mrf.mxu1  ;;  %v2577_v27 = vmul.f32 %v2553_v32, %v5314_v40  ;;  %v3086_v28 = vld [vmem:[%s5637_s0 + $0x728] sm:$0xff] }
 0x7d2   :  { %v2516_v34 = vadd.f32 %v3092_v18, %v2468_v44  ;;  %v3054_v18 = vld [vmem:[%s5637_s0 + $0x720] sm:$0xff]  ;;  %v3090_v40 = vld [vmem:[%s5637_s0 + $0x768] sm:$0xff]  ;;  %v2510_v44 = vadd.f32 %v3086_v28, %v5482_v11 }
 0x7d3   :  { %3673 = vtanh.f32 %v2347_v22  ;;  %v2341_v22 = vadd.f32 %v3054_v18, %v5480_v9  ;;  %v2514_v9 = vadd.f32 %v3090_v40, %v5502_v62  ;;  %v3091_v62 = vld [vmem:[%s5637_s0 + $0x778] sm:$0xff] }
 0x7d4   :  { %3675 = vtanh.f32 %v2516_v34  ;;  %v3087_v34 = vld [vmem:[%s5637_s0 + $0x738] sm:$0xff]  ;;  %v2526_v11 = vmul.f32 0.5, %v2510_v44 }
 0x7d5   :  { %v2357_v1 = vmul.f32 0.5, %v2341_v22  ;;  %v2511_v4 = vadd.f32 %v3087_v34, %v5486_v42  ;;  %v5608_v34 = vpop.permute.xlu1 %2598 }
 0x7d7   :  { %v2527_v42 = vmul.f32 0.5, %v2511_v4 }
 0x7d8   :  { %v2301_v46 = vpop.f32.mrf.mxu0 }
 0x7d9   :  { %v3674_v43 = vpop.eup %3673  ;;  %v2348_v53 = vadd.f32 %v3061_v6, %v2301_v46  ;;  %v2471_v19 = vpop.f32.mrf.mxu1  ;;  %v2542_v6 = vmul.f32 0.5, %v2514_v9  ;;  %v3094_v46 = vld [vmem:[%s5637_s0 + $0x7a8] sm:$0xff] }
 0x7da   :  { %v3676_v30 = vpop.eup %3675  ;;  %v2411_v31 = vmul.f32 %v3674_v43, %v2367_v47  ;;  %v2517_v45 = vadd.f32 %v3093_v25, %v2471_v19  ;;  %v3062_v25 = vld [vmem:[%s5637_s0 + $0x7a0] sm:$0xff]  ;;  %v2346_v47 = vadd.f32 %v3059_v7, %v5516_v35 }
 0x7db   :  { %v2580_v10 = vmul.f32 %v3676_v30, %v2536_v52  ;;  %3677 = vtanh.f32 %v2348_v53  ;;  %v2515_v53 = vadd.f32 %v3091_v62, %v5518_v48  ;;  %v3097_v48 = vld [vmem:[%s5637_s0 + $0x7d8] sm:$0xff] }
 0x7dc   :  { %v5534_v15 = vadd.f32 %v2411_v31, %v2407_v29  ;;  %3679 = vtanh.f32 %v2517_v45 }
 0x7dd   :  { %v5536_v56 = vadd.f32 %v2580_v10, %v2576_v54  ;;  %3681 = vtanh.f32 %v2357_v1  ;;  %v2374_v54 = vmul.f32 0.5, %v2346_v47  ;;  %v2543_v26 = vmul.f32 0.5, %v2515_v53  ;;  %v3065_v10 = vld [vmem:[%s5637_s0 + $0x7d0] sm:$0xff] }
 0x7de   :  { %3683 = vtanh.f32 %v2526_v11 }
 0x7df   :  { %3685 = vtanh.f32 %v2373_v5 }
 0x7e0   :  { %v2304_v20 = vpop.f32.mrf.mxu0  ;;  %3687 = vtanh.f32 %v2542_v6 }
 0x7e1   :  { %v3678_v14 = vpop.eup %3677  ;;  %v2474_v37 = vpop.f32.mrf.mxu1  ;;  %3689 = vtanh.f32 %v2358_v8  ;;  %v2349_v30 = vadd.f32 %v3062_v25, %v2304_v20 }
 0x7e2   :  { %v3680_v23 = vpop.eup %3679  ;;  %v2412_v36 = vmul.f32 %v3678_v14, %v2368_v58  ;;  %3691 = vtanh.f32 %v2527_v42  ;;  %v2518_v57 = vadd.f32 %v3094_v46, %v2474_v37  ;;  %v3063_v58 = vld [vmem:[%s5637_s0 + $0x7b0] sm:$0xff] }
 0x7e3   :  { %v2581_v59 = vmul.f32 %v3680_v23, %v2537_v33  ;;  %v3682_v45 = vpop.eup %3681 }
 0x7e4   :  { %v5543_v2 = vadd.f32 %v2412_v36, %v2408_v41  ;;  %v3684_v35 = vpop.eup %3683  ;;  %v2365_v37 = vmul.f32 0.5, %v3682_v45  ;;  %v3095_v41 = vld [vmem:[%s5637_s0 + $0x7b8] sm:$0xff] }
 0x7e5   :  { %v5548_v17 = vadd.f32 %v2581_v59, %v2577_v27  ;;  %v3686_v50 = vpop.eup %3685  ;;  %v2534_v59 = vmul.f32 0.5, %v3684_v35 }
 0x7e6   :  { %v3688_v51 = vpop.eup %3687  ;;  %v2381_v23 = vmul.f32 0.5, %v3686_v50  ;;  %v2369_v9 = vadd.f32 0.5, %v2365_v37 }
 0x7e7   :  { %v3690_v32 = vpop.eup %3689  ;;  %v2550_v18 = vmul.f32 0.5, %v3688_v51 }
 0x7e8   :  { %v5561_v21 = vpop.f32.mrf.mxu0  ;;  %v3692_v33 = vpop.eup %3691  ;;  %v2385_v1 = vadd.f32 0.5, %v2381_v23  ;;  %v2366_v6 = vmul.f32 0.5, %v3690_v32 }
 0x7e9   :  { %v5567_v0 = vpop.f32.mrf.mxu1  ;;  %v2350_v22 = vadd.f32 %v3063_v58, %v5561_v21  ;;  %v2554_v4 = vadd.f32 0.5, %v2550_v18  ;;  %v2535_v62 = vmul.f32 0.5, %v3692_v33 }
 0x7ea   :  { %v2519_v38 = vadd.f32 %v3095_v41, %v5567_v0  ;;  %v3098_v0 = vld [vmem:[%s5637_s0 + $0x7e8] sm:$0xff]  ;;  %v2409_v47 = vmul.f32 %v2385_v1, %v5392_v13  ;;  %v2370_v51 = vadd.f32 0.5, %v2366_v6 }
 0x7eb   :  { %v2539_v37 = vadd.f32 0.5, %v2535_v62 }
 0x7f0   :  { %v2310_v61 = vpop.f32.mrf.mxu0 }
 0x7f1   :  { %v2351_v43 = vadd.f32 %v3064_v60, %v2310_v61  ;;  %v2480_v52 = vpop.f32.mrf.mxu1 }
 0x7f2   :  { %v2520_v19 = vadd.f32 %v3096_v12, %v2480_v52 }
 0x7f3   :  { %v2391_v29 = vmul.f32 0.5, %v2351_v43 }
 0x7f4   :  { %v2560_v31 = vmul.f32 0.5, %v2520_v19 }
 0x7f5   :  { %3693 = vtanh.f32 %v2391_v29 }
 0x7f6   :  { %3695 = vtanh.f32 %v2560_v31 }
 0x7f7   :  { %3697 = vtanh.f32 %v2349_v30 }
 0x7f8   :  { %3699 = vtanh.f32 %v2518_v57  ;;  %v2313_v16 = vpop.f32.mrf.mxu0 }
 0x7f9   :  { %3701 = vtanh.f32 %v2374_v54  ;;  %v2352_v20 = vadd.f32 %v3065_v10, %v2313_v16  ;;  %v2483_v14 = vpop.f32.mrf.mxu1 }
 0x7fa   :  { %3703 = vtanh.f32 %v2543_v26  ;;  %v2521_v36 = vadd.f32 %v3097_v48, %v2483_v14  ;;  %v2604_v14 = vpop.permute.xlu1 %2603 }
 0x7fb   :  { %v3694_v27 = vpop.eup %3693  ;;  %3705 = vtanh.f32 %v5534_v15  ;;  %v2392_v28 = vmul.f32 0.5, %v2352_v20  ;;  %v3066_v15 = vld [vmem:[%s5637_s0 + $0x7e0] sm:$0xff]  ;;  %v3099_v20 = vld [vmem:[%s5637_s0 + $0x7f8] sm:$0xff] }
 0x7fc   :  { %v3696_v49 = vpop.eup %3695  ;;  %3707 = vtanh.f32 %v5536_v56  ;;  %v2561_v40 = vmul.f32 0.5, %v2521_v36  ;;  %v2399_v3 = vmul.f32 0.5, %v3694_v27  ;;  %v2538_v56 = vadd.f32 0.5, %v2534_v59 }
 0x7fd   :  { %v3698_v44 = vpop.eup %3697  ;;  %3709 = vtanh.f32 %v2392_v28  ;;  %v2568_v21 = vmul.f32 0.5, %v3696_v49 }
 0x7fe   :  { %v3700_v63 = vpop.eup %3699  ;;  %3711 = vtanh.f32 %v2561_v40  ;;  %v2413_v7 = vmul.f32 %v3698_v44, %v2369_v9  ;;  %v2403_v46 = vadd.f32 0.5, %v2399_v3 }
 0x7ff   :  { %v3702_v11 = vpop.eup %3701  ;;  %3713 = vtanh.f32 %v5543_v2  ;;  %v2582_v12 = vmul.f32 %v3700_v63, %v2538_v56  ;;  %v2578_v2 = vmul.f32 %v2554_v4, %v5394_v39  ;;  %v2572_v19 = vadd.f32 0.5, %v2568_v21  ;;  %v3067_v39 = vld [vmem:[%s5637_s0 + $0x7f0] sm:$0xff] }
 0x800   :  { %v3704_v5 = vpop.eup %3703  ;;  %3715 = vtanh.f32 %v2350_v22  ;;  %v2316_v60 = vpop.f32.mrf.mxu0  ;;  %v2382_v53 = vmul.f32 0.5, %v3702_v11  ;;  %v2417_v31 = vadd.f32 %v2413_v7, %v2409_v47 }
 0x801   :  { %v3706_v8 = vpop.eup %3705  ;;  %3717 = vtanh.f32 %v2519_v38  ;;  %v2353_v42 = vadd.f32 %v3066_v15, %v2316_v60  ;;  %v2486_v25 = vpop.f32.mrf.mxu1  ;;  %v2551_v57 = vmul.f32 0.5, %v3704_v5  ;;  %v2586_v26 = vadd.f32 %v2582_v12, %v2578_v2 }
 0x802   :  { %v3708_v61 = vpop.eup %3707  ;;  %v2522_v43 = vadd.f32 %v3098_v0, %v2486_v25  ;;  %3719 = vtanh.f32 %v5548_v17  ;;  %v2423_v48 = vmul.f32 %v3706_v8, %v2403_v46  ;;  %v2386_v16 = vadd.f32 0.5, %v2382_v53  ;;  %v2609_v12 = vpop.permute.xlu2 %2608 }
 0x803   :  { %v3710_v52 = vpop.eup %3709  ;;  %v2393_v30 = vmul.f32 0.5, %v2353_v42  ;;  %v2592_v58 = vmul.f32 %v3708_v61, %v2572_v19  ;;  %v2555_v23 = vadd.f32 0.5, %v2551_v57 }
 0x804   :  { %v3712_v29 = vpop.eup %3711  ;;  %v2400_v45 = vmul.f32 0.5, %v3710_v52  ;;  %v2562_v54 = vmul.f32 0.5, %v2522_v43  ;;  %v2616_v22 = vmul.f32 %v5608_v34, %v2423_v48  ;;  %v2410_v63 = vmul.f32 %v2386_v16, %v5387_v24 }
 0x805   :  { %v3714_v35 = vpop.eup %3713  ;;  %v2569_v10 = vmul.f32 0.5, %v3712_v29  ;;  %3721 = vtanh.f32 %v2393_v30  ;;  %v2634_v9 = vmul.f32 %v5608_v34, %v2592_v58  ;;  %v2579_v11 = vmul.f32 %v2555_v23, %v5390_v55 }
 0x806   :  { %v3716_v13 = vpop.eup %3715  ;;  %v2404_v50 = vadd.f32 0.5, %v2400_v45  ;;  %3723 = vtanh.f32 %v2562_v54 }
 0x807   :  { %v3718_v17 = vpop.eup %3717  ;;  %v2573_v32 = vadd.f32 0.5, %v2569_v10  ;;  %3725 = vtanh.f32 %v2417_v31  ;;  %v2414_v27 = vmul.f32 %v3716_v13, %v2370_v51  ;;  %v2629_v51 = vlaneseq }
 0x808   :  { %v3720_v33 = vpop.eup %3719  ;;  %v2319_v41 = vpop.f32.mrf.mxu0  ;;  %v2424_v36 = vmul.f32 %v3714_v35, %v2404_v50  ;;  %3727 = vtanh.f32 %v2586_v26  ;;  %v2583_v49 = vmul.f32 %v3718_v17, %v2539_v37 }
 0x809   :  { %v2354_v59 = vadd.f32 %v3067_v39, %v2319_v41  ;;  %v2489_v18 = vpop.f32.mrf.mxu1  ;;  %v2593_v28 = vmul.f32 %v3720_v33, %v2573_v32  ;;  %v2418_v6 = vadd.f32 %v2414_v27, %v2410_v63  ;;  %vm2631_vm1 = vcmp.lt.s32.totalorder %v2629_v51, 128 }
 0x80a   :  { %v2523_v40 = vadd.f32 %v3099_v20, %v2489_v18  ;;  %v2617_v44 = vmul.f32 %v2604_v14, %v2424_v36  ;;  %v2587_v8 = vadd.f32 %v2583_v49, %v2579_v11  ;;  %v2614_v31 = vpop.permute.xlu2 %2613 }
 0x80b   :  { %v3722_v38 = vpop.eup %3721  ;;  %v2394_v1 = vmul.f32 0.5, %v2354_v59  ;;  %v2635_v3 = vmul.f32 %v2604_v14, %v2593_v28 }
 0x80c   :  { %v3724_v15 = vpop.eup %3723  ;;  %v2401_v56 = vmul.f32 0.5, %v3722_v38  ;;  %v2563_v4 = vmul.f32 0.5, %v2523_v40  ;;  %v2620_v21 = vadd.f32 %v2617_v44, %v2616_v22 }
 0x80d   :  { %v2570_v0 = vmul.f32 0.5, %v3724_v15  ;;  %3729 = vtanh.f32 %v2394_v1  ;;  %v2638_v5 = vadd.f32 %v2635_v3, %v2634_v9  ;;  %v3726_v7 = vpop.eup %3725 }
 0x80e   :  { %v2405_v60 = vadd.f32 0.5, %v2401_v56  ;;  %3731 = vtanh.f32 %v2563_v4  ;;  %v3728_v62 = vpop.eup %3727 }
 0x80f   :  { %v2574_v24 = vadd.f32 0.5, %v2570_v0  ;;  %3733 = vtanh.f32 %v2418_v6 }
 0x810   :  { %v2425_v34 = vmul.f32 %v3726_v7, %v2405_v60  ;;  %3735 = vtanh.f32 %v2587_v8 }
 0x811   :  { %v2594_v42 = vmul.f32 %v3728_v62, %v2574_v24 }
 0x812   :  { %v2618_v25 = vmul.f32 %v2609_v12, %v2425_v34 }
 0x813   :  { %v3730_v55 = vpop.eup %3729  ;;  %v2636_v61 = vmul.f32 %v2609_v12, %v2594_v42 }
 0x814   :  { %v3732_v47 = vpop.eup %3731  ;;  %v2402_v46 = vmul.f32 0.5, %v3730_v55  ;;  %v2621_v43 = vadd.f32 %v2620_v21, %v2618_v25 }
 0x815   :  { %v2571_v52 = vmul.f32 0.5, %v3732_v47  ;;  %v2639_v2 = vadd.f32 %v2638_v5, %v2636_v61  ;;  %v3734_v19 = vpop.eup %3733 }
 0x816   :  { %v2406_v53 = vadd.f32 0.5, %v2402_v46  ;;  %v3736_v29 = vpop.eup %3735 }
 0x817   :  { %v2575_v30 = vadd.f32 0.5, %v2571_v52 }
 0x818   :  { %v2426_v57 = vmul.f32 %v3734_v19, %v2406_v53 }
 0x819   :  { %v2595_v45 = vmul.f32 %v3736_v29, %v2575_v30 }
 0x81a   :  { %v2619_v54 = vmul.f32 %v2614_v31, %v2426_v57 }
 0x81b   :  { %v2637_v35 = vmul.f32 %v2614_v31, %v2595_v45 }
 0x81c   :  { %v2622_v26 = vadd.f32 %v2621_v43, %v2619_v54 }
 0x81d   :  { %v2640_v10 = vadd.f32 %v2639_v2, %v2637_v35 }
 0x81e   :  { %v2623_v13 = vrot.slane %v2622_v26, 4 }
 0x81f   :  { %v2641_v50 = vrot.slane %v2640_v10, 4 }
 0x820   :  { %v2624_v48 = vadd.f32 %v2623_v13, %v2622_v26 }
 0x821   :  { %v2642_v39 = vadd.f32 %v2641_v50, %v2640_v10 }
 0x822   :  { %v2625_v17 = vrot.slane %v2624_v48, 2 }
 0x823   :  { %v2643_v16 = vrot.slane %v2642_v39, 2 }
 0x824   :  { %v2626_v32 = vadd.f32 %v2625_v17, %v2624_v48 }
 0x825   :  { %v2644_v58 = vadd.f32 %v2643_v16, %v2642_v39 }
 0x826   :  { %v2627_v20 = vrot.slane %v2626_v32, 1 }
 0x827   :  { %v2645_v14 = vrot.slane %v2644_v58, 1 }
 0x828   :  { %v2628_v33 = vadd.f32 %v2627_v20, %v2626_v32 }
 0x829   :  { %v2646_v37 = vadd.f32 %v2645_v14, %v2644_v58 }
 0x82a   :  { %2633 = vst.msk [vmem:[%s5639_s3] sm:$0x1] %vm2631_vm1, %v2628_v33 }
 0x82b   :  { %2647 = vst.msk [vmem:[%s5639_s3 + $0x1] sm:$0x1] %vm2631_vm1, %v2646_v37 }

</bundles_post_ra>
